<compile_context>
chip_gen: v6e
topology: v6e:2x2x1
jax: 0.10.0
libtpu: 0.0.40
codegen_flags: <defaults>
</compile_context>

<pallas_src>
import jax
import jax.numpy as jnp
from jax import lax
from jax.experimental import pallas as pl
from jax.experimental.pallas import tpu as pltpu

D_IN = 512   # LSTM input size (nn.LSTM(512, 128))
H = 128      # LSTM hidden size


def _bilstm_fc_kernel(xf_ref, xb_ref,
                      wih_f_ref, whh_f_ref, b_f_ref,
                      wih_b_ref, whh_b_ref, b_b_ref,
                      wfc_f_ref, wfc_b_ref,
                      of_ref, ob_ref,
                      zf_ref, zb_ref,
                      hf_ref, cf_ref, hb_ref, cb_ref):
    B = hf_ref.shape[0]          # padded batch (sublane multiple of 8)
    C = of_ref.shape[1]          # time steps in this chunk (lane-dense out tile)

    # Zero the recurrent state once, at the first chunk (state persists in scratch
    # across grid steps; the T grid axis is marked "arbitrary").
    @pl.when(pl.program_id(0) == 0)
    def _():
        hf_ref[...] = jnp.zeros_like(hf_ref)
        cf_ref[...] = jnp.zeros_like(cf_ref)
        hb_ref[...] = jnp.zeros_like(hb_ref)
        cb_ref[...] = jnp.zeros_like(cb_ref)

    # ---- per-chunk input projections: one big bf16 MXU matmul per direction,
    #      gate bias folded in (off the serial per-step path) ----
    zf_ref[...] = (jnp.dot(xf_ref[...], wih_f_ref[...],
                           preferred_element_type=jnp.float32) + b_f_ref[...])
    zb_ref[...] = (jnp.dot(xb_ref[...], wih_b_ref[...],
                           preferred_element_type=jnp.float32) + b_b_ref[...])

    # Hoisted small operands (JAX does not CSE broadcasts/iotas -> build once).
    wfc_f = wfc_f_ref[...]                                    # (1, H)
    wfc_b = wfc_b_ref[...]                                    # (1, H)
    lane_ids = lax.broadcasted_iota(jnp.int32, (B, C), 1)     # (B, C)

    def cell(z_pre, h, c, whh_ref):
        z = z_pre + jnp.dot(h, whh_ref[...], preferred_element_type=jnp.float32)
        i = jax.nn.sigmoid(z[:, 0 * H:1 * H])
        f = jax.nn.sigmoid(z[:, 1 * H:2 * H])
        g = jnp.tanh(z[:, 2 * H:3 * H])
        o = jax.nn.sigmoid(z[:, 3 * H:4 * H])
        c_new = f * c + i * g
        h_new = o * jnp.tanh(c_new)
        return h_new, c_new

    def step(j):
        off = pl.multiple_of(j * B, 8)
        # Two independent dependence chains -> the scheduler interleaves them.
        hfn, cfn = cell(zf_ref[pl.ds(off, B), :],
                        hf_ref[...], cf_ref[...], whh_f_ref)
        hbn, cbn = cell(zb_ref[pl.ds(off, B), :],
                        hb_ref[...], cb_ref[...], whh_b_ref)
        hf_ref[...] = hfn
        cf_ref[...] = cfn
        hb_ref[...] = hbn
        cb_ref[...] = cbn
        # Fused FC (256 -> 1): VPU multiply + lane reduction per direction, then a
        # static-address select into the lane-dense (B, C) output tile (no dynamic
        # lane stores, no (T, B, H) hidden buffers, no lane-padded (T*B, 1) buffers).
        sel = lane_ids == j
        pf = jnp.sum(hfn * wfc_f, axis=-1, keepdims=True)     # (B, 1)
        pb = jnp.sum(hbn * wfc_b, axis=-1, keepdims=True)     # (B, 1)
        of_ref[...] = jnp.where(sel, pf, of_ref[...])
        ob_ref[...] = jnp.where(sel, pb, ob_ref[...])

    # ---- interleaved forward/backward recurrence, unrolled by 2 ----
    @pl.loop(0, C // 2)
    def _(u):
        j = u * 2
        step(j)
        step(j + 1)

    if C % 2:                      # static tail (C is known at trace time)
        @pl.loop(C - 1, C)
        def _(j):
            step(j)


def frames_select_forward(x, params):
    """x: (B, T, 512) float32 -> p: (B, T, 1) float32."""
    B, T, D = x.shape
    assert D == D_IN
    B_pad = -(-B // 8) * 8            # pad batch to a sublane multiple
    C = min(T, 128)                   # time chunk per grid step (lane-dense tile)
    n_chunks = -(-T // C)
    T_pad = n_chunks * C

    # Time-major streams; the backward stream is x reversed in time so both
    # directions are plain forward scans and time padding is strictly after the
    # real steps for both.
    xt = jnp.transpose(x, (1, 0, 2))                       # (T, B, D)
    if B_pad != B:
        xt = jnp.pad(xt, ((0, 0), (0, B_pad - B), (0, 0)))
    xf = xt
    xb = xt[::-1]
    if T_pad != T:
        pad_t = ((0, T_pad - T), (0, 0), (0, 0))
        xf = jnp.pad(xf, pad_t)
        xb = jnp.pad(xb, pad_t)
    xf2d = xf.reshape(T_pad * B_pad, D).astype(jnp.bfloat16)
    xb2d = xb.reshape(T_pad * B_pad, D).astype(jnp.bfloat16)

    # bf16 input-projection weights (matches DEFAULT single-bf16-pass MXU precision;
    # accumulation stays f32 via preferred_element_type).
    wih_f = params["wih_f"].astype(jnp.bfloat16)
    wih_b = params["wih_b"].astype(jnp.bfloat16)

    # VMEM budget from the real chunked allocation (+ headroom), capped for v7x.
    vmem_need = (
        2 * (2 * C * B_pad * D_IN * 2)                     # x chunks, 2 dirs, 2 bufs, bf16
        + 2 * (C * B_pad * 4 * H * 4)                      # zf/zb scratch, f32
        + 2 * (D_IN * 4 * H * 2 + H * 4 * H * 4            # weights per direction
               + 4 * H * 4 + H * 4)
        + 2 * (2 * B_pad * max(C, 128) * 4)                # out tiles (lane-padded), 2 bufs
        + 2 * (4 * B_pad * H * 4)                          # h/c state
    )
    vmem_limit = int(min(max(vmem_need + (8 << 20), 24 << 20), 40 << 20))

    x_spec = pl.BlockSpec((C * B_pad, D_IN), lambda i: (i, 0))
    w_ih_spec = pl.BlockSpec((D_IN, 4 * H), lambda i: (0, 0))
    w_hh_spec = pl.BlockSpec((H, 4 * H), lambda i: (0, 0))
    b_spec = pl.BlockSpec((1, 4 * H), lambda i: (0, 0))
    wfc_spec = pl.BlockSpec((1, H), lambda i: (0, 0))
    out_spec = pl.BlockSpec((B_pad, C), lambda i: (0, i))

    kernel = pl.pallas_call(
        _bilstm_fc_kernel,
        out_shape=(jax.ShapeDtypeStruct((B_pad, T_pad), jnp.float32),
                   jax.ShapeDtypeStruct((B_pad, T_pad), jnp.float32)),
        grid_spec=pltpu.PrefetchScalarGridSpec(
            num_scalar_prefetch=0,
            grid=(n_chunks,),
            in_specs=[x_spec, x_spec,
                      w_ih_spec, w_hh_spec, b_spec,
                      w_ih_spec, w_hh_spec, b_spec,
                      wfc_spec, wfc_spec],
            out_specs=(out_spec, out_spec),
            scratch_shapes=[
                pltpu.VMEM((C * B_pad, 4 * H), jnp.float32),   # z_pre forward chunk
                pltpu.VMEM((C * B_pad, 4 * H), jnp.float32),   # z_pre backward chunk
                pltpu.VMEM((B_pad, H), jnp.float32),           # running h forward
                pltpu.VMEM((B_pad, H), jnp.float32),           # running c forward
                pltpu.VMEM((B_pad, H), jnp.float32),           # running h backward
                pltpu.VMEM((B_pad, H), jnp.float32),           # running c backward
            ]),
        compiler_params=pltpu.CompilerParams(
            dimension_semantics=("arbitrary",),
            vmem_limit_bytes=vmem_limit),
    )
    out_f, out_b = kernel(xf2d, xb2d,
                          wih_f, params["whh_f"], params["b_f"],
                          wih_b, params["whh_b"], params["b_b"],
                          params["wfc_f"], params["wfc_b"])

    # Merge directions + fc bias + sigmoid (tiny (B, T) wrapper op); the backward
    # buffer is in stream order, i.e. time-reversed.
    zlin = out_f[:B, :T] + out_b[:B, :T][:, ::-1] + params["bfc"][0, 0]
    return jax.nn.sigmoid(zlin)[:, :, None]                 # (B, T, 1)


def init_params(key):
    """Deterministic init mirroring PyTorch's uniform(-1/sqrt(H), 1/sqrt(H))."""
    k = 1.0 / (H ** 0.5)
    keys = jax.random.split(key, 9)

    def u(kk, shape):
        return jax.random.uniform(kk, shape, jnp.float32, minval=-k, maxval=k)

    return {
        "wih_f": u(keys[0], (D_IN, 4 * H)),   # weight_ih_l0.T
        "whh_f": u(keys[1], (H, 4 * H)),      # weight_hh_l0.T
        "b_f":   u(keys[2], (1, 4 * H)),      # bias_ih_l0 + bias_hh_l0 (combined)
        "wih_b": u(keys[3], (D_IN, 4 * H)),   # reverse direction
        "whh_b": u(keys[4], (H, 4 * H)),
        "b_b":   u(keys[5], (1, 4 * H)),
        "wfc_f": u(keys[6], (1, H)),          # fc.weight[:, :H]
        "wfc_b": u(keys[7], (1, H)),          # fc.weight[:, H:]
        "bfc":   u(keys[8], (1, 1)),          # fc.bias
    }


def reference_forward(x, params):
    """Pure-JAX reference of the same forward pass (default MXU precision)."""
    B, T, _ = x.shape
    xt = jnp.transpose(x, (1, 0, 2))

    def run_dir(xs, wih, whh, b):
        def step(carry, x_t):
            h, c = carry
            z = (jnp.dot(x_t, wih, preferred_element_type=jnp.float32)
                 + jnp.dot(h, whh, preferred_element_type=jnp.float32) + b)
            i = jax.nn.sigmoid(z[:, 0 * H:1 * H])
            f = jax.nn.sigmoid(z[:, 1 * H:2 * H])
            g = jnp.tanh(z[:, 2 * H:3 * H])
            o = jax.nn.sigmoid(z[:, 3 * H:4 * H])
            c = f * c + i * g
            h = o * jnp.tanh(c)
            return (h, c), h
        init = (jnp.zeros((B, H), jnp.float32), jnp.zeros((B, H), jnp.float32))
        _, hs = lax.scan(step, init, xs)
        return hs                                          # (T, B, H)

    hf = run_dir(xt, params["wih_f"], params["whh_f"], params["b_f"])
    hb = run_dir(xt[::-1], params["wih_b"], params["whh_b"], params["b_b"])[::-1]
    z = (jnp.sum(hf * params["wfc_f"], axis=-1, keepdims=True)
         + jnp.sum(hb * params["wfc_b"], axis=-1, keepdims=True)
         + params["bfc"][0, 0])
    return jnp.transpose(jax.nn.sigmoid(z), (1, 0, 2))     # (B, T, 1)


if __name__ == "__main__":
    key = jax.random.PRNGKey(0)
    pkey, xkey = jax.random.split(key)
    params = init_params(pkey)

    B, T = 2, 8
    x = jax.random.normal(xkey, (B, T, D_IN), dtype=jnp.float32)

    p = frames_select_forward(x, params)
    p = jax.block_until_ready(p)

    assert p.shape == (B, T, 1), p.shape
    p_ref = reference_forward(x, params)
    if not jnp.allclose(p, p_ref, rtol=5e-3, atol=5e-3):
        err = float(jnp.max(jnp.abs(p - p_ref)))
        raise AssertionError(
            f"Pallas kernel output mismatches JAX reference (max abs err {err})")

    print("KERNEL_OK")
</pallas_src>

<mosaic_0001>
module attributes {stable_mosaic.version = 11 : i64} {
  func.func @_bilstm_fc_kernel(%arg0: i32, %arg1: memref<64x512xbf16, #tpu.memory_space<vmem>>, %arg2: memref<64x512xbf16, #tpu.memory_space<vmem>>, %arg3: memref<512x512xbf16, #tpu.memory_space<vmem>>, %arg4: memref<128x512xf32, #tpu.memory_space<vmem>>, %arg5: memref<1x512xf32, #tpu.memory_space<vmem>>, %arg6: memref<512x512xbf16, #tpu.memory_space<vmem>>, %arg7: memref<128x512xf32, #tpu.memory_space<vmem>>, %arg8: memref<1x512xf32, #tpu.memory_space<vmem>>, %arg9: memref<1x128xf32, #tpu.memory_space<vmem>>, %arg10: memref<1x128xf32, #tpu.memory_space<vmem>>, %arg11: memref<8x8xf32, #tpu.memory_space<vmem>>, %arg12: memref<8x8xf32, #tpu.memory_space<vmem>>, %arg13: memref<64x512xf32, #tpu.memory_space<vmem>>, %arg14: memref<64x512xf32, #tpu.memory_space<vmem>>, %arg15: memref<8x128xf32, #tpu.memory_space<vmem>>, %arg16: memref<8x128xf32, #tpu.memory_space<vmem>>, %arg17: memref<8x128xf32, #tpu.memory_space<vmem>>, %arg18: memref<8x128xf32, #tpu.memory_space<vmem>>) attributes {dimension_semantics = [#tpu.dimension_semantics<arbitrary>], iteration_bounds = array<i64: 1>, scalar_prefetch = 0 : i64, scratch_operands = 6 : i64, tpu.core_type = #tpu.core_type<tc>, window_params = [{transform_indices = @transform_0, window_bounds = array<i64: 64, 512>}, {transform_indices = @transform_1, window_bounds = array<i64: 64, 512>}, {pipeline_mode = #tpu.pipeline_mode<synchronous>, transform_indices = @transform_2, window_bounds = array<i64: 512, 512>}, {pipeline_mode = #tpu.pipeline_mode<synchronous>, transform_indices = @transform_3, window_bounds = array<i64: 128, 512>}, {pipeline_mode = #tpu.pipeline_mode<synchronous>, transform_indices = @transform_4, window_bounds = array<i64: 1, 512>}, {pipeline_mode = #tpu.pipeline_mode<synchronous>, transform_indices = @transform_5, window_bounds = array<i64: 512, 512>}, {pipeline_mode = #tpu.pipeline_mode<synchronous>, transform_indices = @transform_6, window_bounds = array<i64: 128, 512>}, {pipeline_mode = #tpu.pipeline_mode<synchronous>, transform_indices = @transform_7, window_bounds = array<i64: 1, 512>}, {pipeline_mode = #tpu.pipeline_mode<synchronous>, transform_indices = @transform_8, window_bounds = array<i64: 1, 128>}, {pipeline_mode = #tpu.pipeline_mode<synchronous>, transform_indices = @transform_9, window_bounds = array<i64: 1, 128>}, {transform_indices = @transform_10, window_bounds = array<i64: 8, 8>}, {transform_indices = @transform_11, window_bounds = array<i64: 8, 8>}]} {
    %c0_i32 = arith.constant 0 : i32
    %0 = arith.cmpi eq, %arg0, %c0_i32 : i32
    %1 = arith.extui %0 : i1 to i32
    %c0_i32_0 = arith.constant 0 : i32
    %2 = arith.cmpi ne, %1, %c0_i32_0 : i32
    scf.if %2 {
      %cst_23 = arith.constant 0.000000e+00 : f32
      %21 = vector.broadcast %cst_23 : f32 to vector<8x128xf32>
      %c0_24 = arith.constant 0 : index
      %c0_25 = arith.constant 0 : index
      %22 = vector.load %arg15[%c0_24, %c0_25] : memref<8x128xf32, #tpu.memory_space<vmem>>, vector<8x128xf32>
      tpu.vector_store %arg15[%c0_24, %c0_25], %21 {strides = array<i32>} : memref<8x128xf32, #tpu.memory_space<vmem>>, vector<8x128xf32>,
      %cst_26 = arith.constant 0.000000e+00 : f32
      %23 = vector.broadcast %cst_26 : f32 to vector<8x128xf32>
      %c0_27 = arith.constant 0 : index
      %c0_28 = arith.constant 0 : index
      %24 = vector.load %arg16[%c0_27, %c0_28] : memref<8x128xf32, #tpu.memory_space<vmem>>, vector<8x128xf32>
      tpu.vector_store %arg16[%c0_27, %c0_28], %23 {strides = array<i32>} : memref<8x128xf32, #tpu.memory_space<vmem>>, vector<8x128xf32>,
      %cst_29 = arith.constant 0.000000e+00 : f32
      %25 = vector.broadcast %cst_29 : f32 to vector<8x128xf32>
      %c0_30 = arith.constant 0 : index
      %c0_31 = arith.constant 0 : index
      %26 = vector.load %arg17[%c0_30, %c0_31] : memref<8x128xf32, #tpu.memory_space<vmem>>, vector<8x128xf32>
      tpu.vector_store %arg17[%c0_30, %c0_31], %25 {strides = array<i32>} : memref<8x128xf32, #tpu.memory_space<vmem>>, vector<8x128xf32>,
      %cst_32 = arith.constant 0.000000e+00 : f32
      %27 = vector.broadcast %cst_32 : f32 to vector<8x128xf32>
      %c0_33 = arith.constant 0 : index
      %c0_34 = arith.constant 0 : index
      %28 = vector.load %arg18[%c0_33, %c0_34] : memref<8x128xf32, #tpu.memory_space<vmem>>, vector<8x128xf32>
      tpu.vector_store %arg18[%c0_33, %c0_34], %27 {strides = array<i32>} : memref<8x128xf32, #tpu.memory_space<vmem>>, vector<8x128xf32>,
    } else {
    }
    %c0 = arith.constant 0 : index
    %c0_1 = arith.constant 0 : index
    %3 = vector.load %arg1[%c0, %c0_1] : memref<64x512xbf16, #tpu.memory_space<vmem>>, vector<64x512xbf16>
    %c0_2 = arith.constant 0 : index
    %c0_3 = arith.constant 0 : index
    %4 = vector.load %arg3[%c0_2, %c0_3] : memref<512x512xbf16, #tpu.memory_space<vmem>>, vector<512x512xbf16>
    %cst = arith.constant dense<0.000000e+00> : vector<64x512xf32>
    %5 = tpu.matmul %3, %4, %cst {dimension_numbers = #tpu.dot_dimension_numbers<[1], [0], [0], [1], [0, 0, 1, 1], [], []>} : vector<64x512xbf16>, vector<512x512xbf16>, vector<64x512xf32> -> vector<64x512xf32>
    %c0_4 = arith.constant 0 : index
    %c0_5 = arith.constant 0 : index
    %6 = vector.load %arg5[%c0_4, %c0_5] : memref<1x512xf32, #tpu.memory_space<vmem>>, vector<1x512xf32>
    %7 = vector.broadcast %6 : vector<1x512xf32> to vector<64x512xf32>
    %8 = arith.addf %5, %7 : vector<64x512xf32>
    %c0_6 = arith.constant 0 : index
    %c0_7 = arith.constant 0 : index
    %9 = vector.load %arg13[%c0_6, %c0_7] : memref<64x512xf32, #tpu.memory_space<vmem>>, vector<64x512xf32>
    tpu.vector_store %arg13[%c0_6, %c0_7], %8 {strides = array<i32>} : memref<64x512xf32, #tpu.memory_space<vmem>>, vector<64x512xf32>,
    %c0_8 = arith.constant 0 : index
    %c0_9 = arith.constant 0 : index
    %10 = vector.load %arg2[%c0_8, %c0_9] : memref<64x512xbf16, #tpu.memory_space<vmem>>, vector<64x512xbf16>
    %c0_10 = arith.constant 0 : index
    %c0_11 = arith.constant 0 : index
    %11 = vector.load %arg6[%c0_10, %c0_11] : memref<512x512xbf16, #tpu.memory_space<vmem>>, vector<512x512xbf16>
    %cst_12 = arith.constant dense<0.000000e+00> : vector<64x512xf32>
    %12 = tpu.matmul %10, %11, %cst_12 {dimension_numbers = #tpu.dot_dimension_numbers<[1], [0], [0], [1], [0, 0, 1, 1], [], []>} : vector<64x512xbf16>, vector<512x512xbf16>, vector<64x512xf32> -> vector<64x512xf32>
    %c0_13 = arith.constant 0 : index
    %c0_14 = arith.constant 0 : index
    %13 = vector.load %arg8[%c0_13, %c0_14] : memref<1x512xf32, #tpu.memory_space<vmem>>, vector<1x512xf32>
    %14 = vector.broadcast %13 : vector<1x512xf32> to vector<64x512xf32>
    %15 = arith.addf %12, %14 : vector<64x512xf32>
    %c0_15 = arith.constant 0 : index
    %c0_16 = arith.constant 0 : index
    %16 = vector.load %arg14[%c0_15, %c0_16] : memref<64x512xf32, #tpu.memory_space<vmem>>, vector<64x512xf32>
    tpu.vector_store %arg14[%c0_15, %c0_16], %15 {strides = array<i32>} : memref<64x512xf32, #tpu.memory_space<vmem>>, vector<64x512xf32>,
    %c0_17 = arith.constant 0 : index
    %c0_18 = arith.constant 0 : index
    %17 = vector.load %arg9[%c0_17, %c0_18] : memref<1x128xf32, #tpu.memory_space<vmem>>, vector<1x128xf32>
    %c0_19 = arith.constant 0 : index
    %c0_20 = arith.constant 0 : index
    %18 = vector.load %arg10[%c0_19, %c0_20] : memref<1x128xf32, #tpu.memory_space<vmem>>, vector<1x128xf32>
    %19 = tpu.iota {dimensions = array<i32: 1>} : vector<8x8xi32>
    %c0_i32_21 = arith.constant 0 : i32
    %c4_i32 = arith.constant 4 : i32
    %20 = arith.addi %c0_i32_21, %c4_i32 : i32
    %c1_i32 = arith.constant 1 : i32
    scf.for %arg19 = %c0_i32_21 to %20 step %c1_i32  : i32 {
      %c1_i32_23 = arith.constant 1 : i32
      %21 = arith.muli %arg19, %c1_i32_23 : i32
      %c0_i32_24 = arith.constant 0 : i32
      %22 = arith.addi %c0_i32_24, %21 : i32
      %c2_i32 = arith.constant 2 : i32
      %23 = arith.muli %22, %c2_i32 : i32
      %c8_i32 = arith.constant 8 : i32
      %24 = arith.muli %23, %c8_i32 : i32
      %25 = tpu.assume_multiple %24, 8 : i32
      %26 = arith.index_cast %25 : i32 to index
      %c0_25 = arith.constant 0 : index
      %27 = vector.load %arg13[%26, %c0_25] : memref<64x512xf32, #tpu.memory_space<vmem>>, vector<8x512xf32>
      %c0_26 = arith.constant 0 : index
      %c0_27 = arith.constant 0 : index
      %28 = vector.load %arg15[%c0_26, %c0_27] : memref<8x128xf32, #tpu.memory_space<vmem>>, vector<8x128xf32>
      %c0_28 = arith.constant 0 : index
      %c0_29 = arith.constant 0 : index
      %29 = vector.load %arg16[%c0_28, %c0_29] : memref<8x128xf32, #tpu.memory_space<vmem>>, vector<8x128xf32>
      %c0_30 = arith.constant 0 : index
      %c0_31 = arith.constant 0 : index
      %30 = vector.load %arg4[%c0_30, %c0_31] : memref<128x512xf32, #tpu.memory_space<vmem>>, vector<128x512xf32>
      %cst_32 = arith.constant dense<0.000000e+00> : vector<8x512xf32>
      %31 = tpu.matmul %28, %30, %cst_32 {dimension_numbers = #tpu.dot_dimension_numbers<[1], [0], [0], [1], [0, 0, 1, 1], [], []>} : vector<8x128xf32>, vector<128x512xf32>, vector<8x512xf32> -> vector<8x512xf32>
      %32 = arith.addf %27, %31 : vector<8x512xf32>
      %33 = vector.extract_strided_slice %32 {offsets = [0, 0], sizes = [8, 128], strides = [1, 1]} : vector<8x512xf32> to vector<8x128xf32>
      %34 = arith.negf %33 : vector<8x128xf32>
      %35 = math.exp %34 : vector<8x128xf32>
      %cst_33 = arith.constant 1.000000e+00 : f32
      %36 = vector.broadcast %cst_33 : f32 to vector<8x128xf32>
      %37 = arith.addf %36, %35 : vector<8x128xf32>
      %38 = arith.divf %36, %37 : vector<8x128xf32>
      %39 = vector.extract_strided_slice %32 {offsets = [0, 128], sizes = [8, 128], strides = [1, 1]} : vector<8x512xf32> to vector<8x128xf32>
      %40 = arith.negf %39 : vector<8x128xf32>
      %41 = math.exp %40 : vector<8x128xf32>
      %cst_34 = arith.constant 1.000000e+00 : f32
      %42 = vector.broadcast %cst_34 : f32 to vector<8x128xf32>
      %43 = arith.addf %42, %41 : vector<8x128xf32>
      %44 = arith.divf %42, %43 : vector<8x128xf32>
      %45 = vector.extract_strided_slice %32 {offsets = [0, 256], sizes = [8, 128], strides = [1, 1]} : vector<8x512xf32> to vector<8x128xf32>
      %46 = math.tanh %45 : vector<8x128xf32>
      %47 = vector.extract_strided_slice %32 {offsets = [0, 384], sizes = [8, 128], strides = [1, 1]} : vector<8x512xf32> to vector<8x128xf32>
      %48 = arith.negf %47 : vector<8x128xf32>
      %49 = math.exp %48 : vector<8x128xf32>
      %cst_35 = arith.constant 1.000000e+00 : f32
      %50 = vector.broadcast %cst_35 : f32 to vector<8x128xf32>
      %51 = arith.addf %50, %49 : vector<8x128xf32>
      %52 = arith.divf %50, %51 : vector<8x128xf32>
      %53 = arith.mulf %44, %29 : vector<8x128xf32>
      %54 = arith.mulf %38, %46 : vector<8x128xf32>
      %55 = arith.addf %53, %54 : vector<8x128xf32>
      %56 = math.tanh %55 : vector<8x128xf32>
      %57 = arith.mulf %52, %56 : vector<8x128xf32>
      %58 = arith.index_cast %25 : i32 to index
      %c0_36 = arith.constant 0 : index
      %59 = vector.load %arg14[%58, %c0_36] : memref<64x512xf32, #tpu.memory_space<vmem>>, vector<8x512xf32>
      %c0_37 = arith.constant 0 : index
      %c0_38 = arith.constant 0 : index
      %60 = vector.load %arg17[%c0_37, %c0_38] : memref<8x128xf32, #tpu.memory_space<vmem>>, vector<8x128xf32>
      %c0_39 = arith.constant 0 : index
      %c0_40 = arith.constant 0 : index
      %61 = vector.load %arg18[%c0_39, %c0_40] : memref<8x128xf32, #tpu.memory_space<vmem>>, vector<8x128xf32>
      %c0_41 = arith.constant 0 : index
      %c0_42 = arith.constant 0 : index
      %62 = vector.load %arg7[%c0_41, %c0_42] : memref<128x512xf32, #tpu.memory_space<vmem>>, vector<128x512xf32>
      %cst_43 = arith.constant dense<0.000000e+00> : vector<8x512xf32>
      %63 = tpu.matmul %60, %62, %cst_43 {dimension_numbers = #tpu.dot_dimension_numbers<[1], [0], [0], [1], [0, 0, 1, 1], [], []>} : vector<8x128xf32>, vector<128x512xf32>, vector<8x512xf32> -> vector<8x512xf32>
      %64 = arith.addf %59, %63 : vector<8x512xf32>
      %65 = vector.extract_strided_slice %64 {offsets = [0, 0], sizes = [8, 128], strides = [1, 1]} : vector<8x512xf32> to vector<8x128xf32>
      %66 = arith.negf %65 : vector<8x128xf32>
      %67 = math.exp %66 : vector<8x128xf32>
      %cst_44 = arith.constant 1.000000e+00 : f32
      %68 = vector.broadcast %cst_44 : f32 to vector<8x128xf32>
      %69 = arith.addf %68, %67 : vector<8x128xf32>
      %70 = arith.divf %68, %69 : vector<8x128xf32>
      %71 = vector.extract_strided_slice %64 {offsets = [0, 128], sizes = [8, 128], strides = [1, 1]} : vector<8x512xf32> to vector<8x128xf32>
      %72 = arith.negf %71 : vector<8x128xf32>
      %73 = math.exp %72 : vector<8x128xf32>
      %cst_45 = arith.constant 1.000000e+00 : f32
      %74 = vector.broadcast %cst_45 : f32 to vector<8x128xf32>
      %75 = arith.addf %74, %73 : vector<8x128xf32>
      %76 = arith.divf %74, %75 : vector<8x128xf32>
      %77 = vector.extract_strided_slice %64 {offsets = [0, 256], sizes = [8, 128], strides = [1, 1]} : vector<8x512xf32> to vector<8x128xf32>
      %78 = math.tanh %77 : vector<8x128xf32>
      %79 = vector.extract_strided_slice %64 {offsets = [0, 384], sizes = [8, 128], strides = [1, 1]} : vector<8x512xf32> to vector<8x128xf32>
      %80 = arith.negf %79 : vector<8x128xf32>
      %81 = math.exp %80 : vector<8x128xf32>
      %cst_46 = arith.constant 1.000000e+00 : f32
      %82 = vector.broadcast %cst_46 : f32 to vector<8x128xf32>
      %83 = arith.addf %82, %81 : vector<8x128xf32>
      %84 = arith.divf %82, %83 : vector<8x128xf32>
      %85 = arith.mulf %76, %61 : vector<8x128xf32>
      %86 = arith.mulf %70, %78 : vector<8x128xf32>
      %87 = arith.addf %85, %86 : vector<8x128xf32>
      %88 = math.tanh %87 : vector<8x128xf32>
      %89 = arith.mulf %84, %88 : vector<8x128xf32>
      %c0_47 = arith.constant 0 : index
      %c0_48 = arith.constant 0 : index
      %90 = vector.load %arg15[%c0_47, %c0_48] : memref<8x128xf32, #tpu.memory_space<vmem>>, vector<8x128xf32>
      tpu.vector_store %arg15[%c0_47, %c0_48], %57 {strides = array<i32>} : memref<8x128xf32, #tpu.memory_space<vmem>>, vector<8x128xf32>,
      %c0_49 = arith.constant 0 : index
      %c0_50 = arith.constant 0 : index
      %91 = vector.load %arg16[%c0_49, %c0_50] : memref<8x128xf32, #tpu.memory_space<vmem>>, vector<8x128xf32>
      tpu.vector_store %arg16[%c0_49, %c0_50], %55 {strides = array<i32>} : memref<8x128xf32, #tpu.memory_space<vmem>>, vector<8x128xf32>,
      %c0_51 = arith.constant 0 : index
      %c0_52 = arith.constant 0 : index
      %92 = vector.load %arg17[%c0_51, %c0_52] : memref<8x128xf32, #tpu.memory_space<vmem>>, vector<8x128xf32>
      tpu.vector_store %arg17[%c0_51, %c0_52], %89 {strides = array<i32>} : memref<8x128xf32, #tpu.memory_space<vmem>>, vector<8x128xf32>,
      %c0_53 = arith.constant 0 : index
      %c0_54 = arith.constant 0 : index
      %93 = vector.load %arg18[%c0_53, %c0_54] : memref<8x128xf32, #tpu.memory_space<vmem>>, vector<8x128xf32>
      tpu.vector_store %arg18[%c0_53, %c0_54], %87 {strides = array<i32>} : memref<8x128xf32, #tpu.memory_space<vmem>>, vector<8x128xf32>,
      %94 = vector.broadcast %23 : i32 to vector<8x8xi32>
      %95 = arith.cmpi eq, %19, %94 : vector<8x8xi32>
      %96 = vector.broadcast %17 : vector<1x128xf32> to vector<8x128xf32>
      %97 = arith.mulf %57, %96 : vector<8x128xf32>
      %cst_55 = arith.constant dense<0.000000e+00> : vector<8xf32>
      %98 = vector.multi_reduction <add>, %97, %cst_55 [1] : vector<8x128xf32> to vector<8xf32>
      %99 = vector.shape_cast %98 : vector<8xf32> to vector<8x1xf32>
      %100 = vector.broadcast %18 : vector<1x128xf32> to vector<8x128xf32>
      %101 = arith.mulf %89, %100 : vector<8x128xf32>
      %cst_56 = arith.constant dense<0.000000e+00> : vector<8xf32>
      %102 = vector.multi_reduction <add>, %101, %cst_56 [1] : vector<8x128xf32> to vector<8xf32>
      %103 = vector.shape_cast %102 : vector<8xf32> to vector<8x1xf32>
      %c0_57 = arith.constant 0 : index
      %c0_58 = arith.constant 0 : index
      %104 = vector.load %arg11[%c0_57, %c0_58] : memref<8x8xf32, #tpu.memory_space<vmem>>, vector<8x8xf32>
      %105 = vector.shape_cast %99 : vector<8x1xf32> to vector<8x1xf32>
      %106 = vector.broadcast %105 : vector<8x1xf32> to vector<8x8xf32>
      %107 = arith.select %95, %106, %104 : vector<8x8xi1>, vector<8x8xf32>
      %c0_59 = arith.constant 0 : index
      %c0_60 = arith.constant 0 : index
      %108 = vector.load %arg11[%c0_59, %c0_60] : memref<8x8xf32, #tpu.memory_space<vmem>>, vector<8x8xf32>
      tpu.vector_store %arg11[%c0_59, %c0_60], %107 {strides = array<i32>} : memref<8x8xf32, #tpu.memory_space<vmem>>, vector<8x8xf32>,
      %c0_61 = arith.constant 0 : index
      %c0_62 = arith.constant 0 : index
      %109 = vector.load %arg12[%c0_61, %c0_62] : memref<8x8xf32, #tpu.memory_space<vmem>>, vector<8x8xf32>
      %110 = vector.shape_cast %103 : vector<8x1xf32> to vector<8x1xf32>
      %111 = vector.broadcast %110 : vector<8x1xf32> to vector<8x8xf32>
      %112 = arith.select %95, %111, %109 : vector<8x8xi1>, vector<8x8xf32>
      %c0_63 = arith.constant 0 : index
      %c0_64 = arith.constant 0 : index
      %113 = vector.load %arg12[%c0_63, %c0_64] : memref<8x8xf32, #tpu.memory_space<vmem>>, vector<8x8xf32>
      tpu.vector_store %arg12[%c0_63, %c0_64], %112 {strides = array<i32>} : memref<8x8xf32, #tpu.memory_space<vmem>>, vector<8x8xf32>,
      %c1_i32_65 = arith.constant 1 : i32
      %114 = arith.addi %23, %c1_i32_65 : i32
      %c8_i32_66 = arith.constant 8 : i32
      %115 = arith.muli %114, %c8_i32_66 : i32
      %116 = tpu.assume_multiple %115, 8 : i32
      %117 = arith.index_cast %116 : i32 to index
      %c0_67 = arith.constant 0 : index
      %118 = vector.load %arg13[%117, %c0_67] : memref<64x512xf32, #tpu.memory_space<vmem>>, vector<8x512xf32>
      %c0_68 = arith.constant 0 : index
      %c0_69 = arith.constant 0 : index
      %119 = vector.load %arg15[%c0_68, %c0_69] : memref<8x128xf32, #tpu.memory_space<vmem>>, vector<8x128xf32>
      %c0_70 = arith.constant 0 : index
      %c0_71 = arith.constant 0 : index
      %120 = vector.load %arg16[%c0_70, %c0_71] : memref<8x128xf32, #tpu.memory_space<vmem>>, vector<8x128xf32>
      %c0_72 = arith.constant 0 : index
      %c0_73 = arith.constant 0 : index
      %121 = vector.load %arg4[%c0_72, %c0_73] : memref<128x512xf32, #tpu.memory_space<vmem>>, vector<128x512xf32>
      %cst_74 = arith.constant dense<0.000000e+00> : vector<8x512xf32>
      %122 = tpu.matmul %119, %121, %cst_74 {dimension_numbers = #tpu.dot_dimension_numbers<[1], [0], [0], [1], [0, 0, 1, 1], [], []>} : vector<8x128xf32>, vector<128x512xf32>, vector<8x512xf32> -> vector<8x512xf32>
      %123 = arith.addf %118, %122 : vector<8x512xf32>
      %124 = vector.extract_strided_slice %123 {offsets = [0, 0], sizes = [8, 128], strides = [1, 1]} : vector<8x512xf32> to vector<8x128xf32>
      %125 = arith.negf %124 : vector<8x128xf32>
      %126 = math.exp %125 : vector<8x128xf32>
      %cst_75 = arith.constant 1.000000e+00 : f32
      %127 = vector.broadcast %cst_75 : f32 to vector<8x128xf32>
      %128 = arith.addf %127, %126 : vector<8x128xf32>
      %129 = arith.divf %127, %128 : vector<8x128xf32>
      %130 = vector.extract_strided_slice %123 {offsets = [0, 128], sizes = [8, 128], strides = [1, 1]} : vector<8x512xf32> to vector<8x128xf32>
      %131 = arith.negf %130 : vector<8x128xf32>
      %132 = math.exp %131 : vector<8x128xf32>
      %cst_76 = arith.constant 1.000000e+00 : f32
      %133 = vector.broadcast %cst_76 : f32 to vector<8x128xf32>
      %134 = arith.addf %133, %132 : vector<8x128xf32>
      %135 = arith.divf %133, %134 : vector<8x128xf32>
      %136 = vector.extract_strided_slice %123 {offsets = [0, 256], sizes = [8, 128], strides = [1, 1]} : vector<8x512xf32> to vector<8x128xf32>
      %137 = math.tanh %136 : vector<8x128xf32>
      %138 = vector.extract_strided_slice %123 {offsets = [0, 384], sizes = [8, 128], strides = [1, 1]} : vector<8x512xf32> to vector<8x128xf32>
      %139 = arith.negf %138 : vector<8x128xf32>
      %140 = math.exp %139 : vector<8x128xf32>
      %cst_77 = arith.constant 1.000000e+00 : f32
      %141 = vector.broadcast %cst_77 : f32 to vector<8x128xf32>
      %142 = arith.addf %141, %140 : vector<8x128xf32>
      %143 = arith.divf %141, %142 : vector<8x128xf32>
      %144 = arith.mulf %135, %120 : vector<8x128xf32>
      %145 = arith.mulf %129, %137 : vector<8x128xf32>
      %146 = arith.addf %144, %145 : vector<8x128xf32>
      %147 = math.tanh %146 : vector<8x128xf32>
      %148 = arith.mulf %143, %147 : vector<8x128xf32>
      %149 = arith.index_cast %116 : i32 to index
      %c0_78 = arith.constant 0 : index
      %150 = vector.load %arg14[%149, %c0_78] : memref<64x512xf32, #tpu.memory_space<vmem>>, vector<8x512xf32>
      %c0_79 = arith.constant 0 : index
      %c0_80 = arith.constant 0 : index
      %151 = vector.load %arg17[%c0_79, %c0_80] : memref<8x128xf32, #tpu.memory_space<vmem>>, vector<8x128xf32>
      %c0_81 = arith.constant 0 : index
      %c0_82 = arith.constant 0 : index
      %152 = vector.load %arg18[%c0_81, %c0_82] : memref<8x128xf32, #tpu.memory_space<vmem>>, vector<8x128xf32>
      %c0_83 = arith.constant 0 : index
      %c0_84 = arith.constant 0 : index
      %153 = vector.load %arg7[%c0_83, %c0_84] : memref<128x512xf32, #tpu.memory_space<vmem>>, vector<128x512xf32>
      %cst_85 = arith.constant dense<0.000000e+00> : vector<8x512xf32>
      %154 = tpu.matmul %151, %153, %cst_85 {dimension_numbers = #tpu.dot_dimension_numbers<[1], [0], [0], [1], [0, 0, 1, 1], [], []>} : vector<8x128xf32>, vector<128x512xf32>, vector<8x512xf32> -> vector<8x512xf32>
      %155 = arith.addf %150, %154 : vector<8x512xf32>
      %156 = vector.extract_strided_slice %155 {offsets = [0, 0], sizes = [8, 128], strides = [1, 1]} : vector<8x512xf32> to vector<8x128xf32>
      %157 = arith.negf %156 : vector<8x128xf32>
      %158 = math.exp %157 : vector<8x128xf32>
      %cst_86 = arith.constant 1.000000e+00 : f32
      %159 = vector.broadcast %cst_86 : f32 to vector<8x128xf32>
      %160 = arith.addf %159, %158 : vector<8x128xf32>
      %161 = arith.divf %159, %160 : vector<8x128xf32>
      %162 = vector.extract_strided_slice %155 {offsets = [0, 128], sizes = [8, 128], strides = [1, 1]} : vector<8x512xf32> to vector<8x128xf32>
      %163 = arith.negf %162 : vector<8x128xf32>
      %164 = math.exp %163 : vector<8x128xf32>
      %cst_87 = arith.constant 1.000000e+00 : f32
      %165 = vector.broadcast %cst_87 : f32 to vector<8x128xf32>
      %166 = arith.addf %165, %164 : vector<8x128xf32>
      %167 = arith.divf %165, %166 : vector<8x128xf32>
      %168 = vector.extract_strided_slice %155 {offsets = [0, 256], sizes = [8, 128], strides = [1, 1]} : vector<8x512xf32> to vector<8x128xf32>
      %169 = math.tanh %168 : vector<8x128xf32>
      %170 = vector.extract_strided_slice %155 {offsets = [0, 384], sizes = [8, 128], strides = [1, 1]} : vector<8x512xf32> to vector<8x128xf32>
      %171 = arith.negf %170 : vector<8x128xf32>
      %172 = math.exp %171 : vector<8x128xf32>
      %cst_88 = arith.constant 1.000000e+00 : f32
      %173 = vector.broadcast %cst_88 : f32 to vector<8x128xf32>
      %174 = arith.addf %173, %172 : vector<8x128xf32>
      %175 = arith.divf %173, %174 : vector<8x128xf32>
      %176 = arith.mulf %167, %152 : vector<8x128xf32>
      %177 = arith.mulf %161, %169 : vector<8x128xf32>
      %178 = arith.addf %176, %177 : vector<8x128xf32>
      %179 = math.tanh %178 : vector<8x128xf32>
      %180 = arith.mulf %175, %179 : vector<8x128xf32>
      %c0_89 = arith.constant 0 : index
      %c0_90 = arith.constant 0 : index
      %181 = vector.load %arg15[%c0_89, %c0_90] : memref<8x128xf32, #tpu.memory_space<vmem>>, vector<8x128xf32>
      tpu.vector_store %arg15[%c0_89, %c0_90], %148 {strides = array<i32>} : memref<8x128xf32, #tpu.memory_space<vmem>>, vector<8x128xf32>,
      %c0_91 = arith.constant 0 : index
      %c0_92 = arith.constant 0 : index
      %182 = vector.load %arg16[%c0_91, %c0_92] : memref<8x128xf32, #tpu.memory_space<vmem>>, vector<8x128xf32>
      tpu.vector_store %arg16[%c0_91, %c0_92], %146 {strides = array<i32>} : memref<8x128xf32, #tpu.memory_space<vmem>>, vector<8x128xf32>,
      %c0_93 = arith.constant 0 : index
      %c0_94 = arith.constant 0 : index
      %183 = vector.load %arg17[%c0_93, %c0_94] : memref<8x128xf32, #tpu.memory_space<vmem>>, vector<8x128xf32>
      tpu.vector_store %arg17[%c0_93, %c0_94], %180 {strides = array<i32>} : memref<8x128xf32, #tpu.memory_space<vmem>>, vector<8x128xf32>,
      %c0_95 = arith.constant 0 : index
      %c0_96 = arith.constant 0 : index
      %184 = vector.load %arg18[%c0_95, %c0_96] : memref<8x128xf32, #tpu.memory_space<vmem>>, vector<8x128xf32>
      tpu.vector_store %arg18[%c0_95, %c0_96], %178 {strides = array<i32>} : memref<8x128xf32, #tpu.memory_space<vmem>>, vector<8x128xf32>,
      %185 = vector.broadcast %114 : i32 to vector<8x8xi32>
      %186 = arith.cmpi eq, %19, %185 : vector<8x8xi32>
      %187 = vector.broadcast %17 : vector<1x128xf32> to vector<8x128xf32>
      %188 = arith.mulf %148, %187 : vector<8x128xf32>
      %cst_97 = arith.constant dense<0.000000e+00> : vector<8xf32>
      %189 = vector.multi_reduction <add>, %188, %cst_97 [1] : vector<8x128xf32> to vector<8xf32>
      %190 = vector.shape_cast %189 : vector<8xf32> to vector<8x1xf32>
      %191 = vector.broadcast %18 : vector<1x128xf32> to vector<8x128xf32>
      %192 = arith.mulf %180, %191 : vector<8x128xf32>
      %cst_98 = arith.constant dense<0.000000e+00> : vector<8xf32>
      %193 = vector.multi_reduction <add>, %192, %cst_98 [1] : vector<8x128xf32> to vector<8xf32>
      %194 = vector.shape_cast %193 : vector<8xf32> to vector<8x1xf32>
      %c0_99 = arith.constant 0 : index
      %c0_100 = arith.constant 0 : index
      %195 = vector.load %arg11[%c0_99, %c0_100] : memref<8x8xf32, #tpu.memory_space<vmem>>, vector<8x8xf32>
      %196 = vector.shape_cast %190 : vector<8x1xf32> to vector<8x1xf32>
      %197 = vector.broadcast %196 : vector<8x1xf32> to vector<8x8xf32>
      %198 = arith.select %186, %197, %195 : vector<8x8xi1>, vector<8x8xf32>
      %c0_101 = arith.constant 0 : index
      %c0_102 = arith.constant 0 : index
      %199 = vector.load %arg11[%c0_101, %c0_102] : memref<8x8xf32, #tpu.memory_space<vmem>>, vector<8x8xf32>
      tpu.vector_store %arg11[%c0_101, %c0_102], %198 {strides = array<i32>} : memref<8x8xf32, #tpu.memory_space<vmem>>, vector<8x8xf32>,
      %c0_103 = arith.constant 0 : index
      %c0_104 = arith.constant 0 : index
      %200 = vector.load %arg12[%c0_103, %c0_104] : memref<8x8xf32, #tpu.memory_space<vmem>>, vector<8x8xf32>
      %201 = vector.shape_cast %194 : vector<8x1xf32> to vector<8x1xf32>
      %202 = vector.broadcast %201 : vector<8x1xf32> to vector<8x8xf32>
      %203 = arith.select %186, %202, %200 : vector<8x8xi1>, vector<8x8xf32>
      %c0_105 = arith.constant 0 : index
      %c0_106 = arith.constant 0 : index
      %204 = vector.load %arg12[%c0_105, %c0_106] : memref<8x8xf32, #tpu.memory_space<vmem>>, vector<8x8xf32>
      tpu.vector_store %arg12[%c0_105, %c0_106], %203 {strides = array<i32>} : memref<8x8xf32, #tpu.memory_space<vmem>>, vector<8x8xf32>,
    }
    %c4_i32_22 = arith.constant 4 : i32
    return
  }
  func.func @transform_0(%arg0: i32) -> (i32, i32) {
    %c0_i32 = arith.constant 0 : i32
    %c0_i32_0 = arith.constant 0 : i32
    return %arg0, %c0_i32 : i32, i32
  }
  func.func @transform_1(%arg0: i32) -> (i32, i32) {
    %c0_i32 = arith.constant 0 : i32
    %c0_i32_0 = arith.constant 0 : i32
    return %arg0, %c0_i32 : i32, i32
  }
  func.func @transform_2(%arg0: i32) -> (i32, i32) {
    %c0_i32 = arith.constant 0 : i32
    %c0_i32_0 = arith.constant 0 : i32
    %c0_i32_1 = arith.constant 0 : i32
    return %c0_i32, %c0_i32_0 : i32, i32
  }
  func.func @transform_3(%arg0: i32) -> (i32, i32) {
    %c0_i32 = arith.constant 0 : i32
    %c0_i32_0 = arith.constant 0 : i32
    %c0_i32_1 = arith.constant 0 : i32
    return %c0_i32, %c0_i32_0 : i32, i32
  }
  func.func @transform_4(%arg0: i32) -> (i32, i32) {
    %c0_i32 = arith.constant 0 : i32
    %c0_i32_0 = arith.constant 0 : i32
    %c0_i32_1 = arith.constant 0 : i32
    return %c0_i32, %c0_i32_0 : i32, i32
  }
  func.func @transform_5(%arg0: i32) -> (i32, i32) {
    %c0_i32 = arith.constant 0 : i32
    %c0_i32_0 = arith.constant 0 : i32
    %c0_i32_1 = arith.constant 0 : i32
    return %c0_i32, %c0_i32_0 : i32, i32
  }
  func.func @transform_6(%arg0: i32) -> (i32, i32) {
    %c0_i32 = arith.constant 0 : i32
    %c0_i32_0 = arith.constant 0 : i32
    %c0_i32_1 = arith.constant 0 : i32
    return %c0_i32, %c0_i32_0 : i32, i32
  }
  func.func @transform_7(%arg0: i32) -> (i32, i32) {
    %c0_i32 = arith.constant 0 : i32
    %c0_i32_0 = arith.constant 0 : i32
    %c0_i32_1 = arith.constant 0 : i32
    return %c0_i32, %c0_i32_0 : i32, i32
  }
  func.func @transform_8(%arg0: i32) -> (i32, i32) {
    %c0_i32 = arith.constant 0 : i32
    %c0_i32_0 = arith.constant 0 : i32
    %c0_i32_1 = arith.constant 0 : i32
    return %c0_i32, %c0_i32_0 : i32, i32
  }
  func.func @transform_9(%arg0: i32) -> (i32, i32) {
    %c0_i32 = arith.constant 0 : i32
    %c0_i32_0 = arith.constant 0 : i32
    %c0_i32_1 = arith.constant 0 : i32
    return %c0_i32, %c0_i32_0 : i32, i32
  }
  func.func @transform_10(%arg0: i32) -> (i32, i32) {
    %c0_i32 = arith.constant 0 : i32
    %c0_i32_0 = arith.constant 0 : i32
    return %c0_i32, %arg0 : i32, i32
  }
  func.func @transform_11(%arg0: i32) -> (i32, i32) {
    %c0_i32 = arith.constant 0 : i32
    %c0_i32_0 = arith.constant 0 : i32
    return %c0_i32, %arg0 : i32, i32
  }
}

</mosaic_0001>

<bundles_post_ra>
// kernel: tpu_custom_call.1
= control target key start
LH: loop header
LB: loop body
LE: loop exit
PB: predicated region body
PF: predicated region fallthrough
CT: control target
= control target key end

     0   :  { %17 = vsyncpa [#allocation9], 0  ;;  %s5581_s0 = inlined_call_operand.hbm [shape: bf16[64,512], index: 0, kind: input, shape index: {}]   ;;  %s5582_s1 = inlined_call_operand.hbm [shape: bf16[64,512], index: 1, kind: input, shape index: {}]   ;;  %s5583_s2 = inlined_call_operand.hbm [shape: bf16[512,512], index: 2, kind: input, shape index: {}]   ;;  %s5584_s3 = inlined_call_operand.hbm [shape: f32[128,512], index: 3, kind: input, shape index: {}]   ;;  %s5585_s4 = inlined_call_operand.vmem [shape: f32[1,512], index: 4, kind: input, shape index: {}]   ;;  %s5586_s5 = inlined_call_operand.hbm [shape: bf16[512,512], index: 5, kind: input, shape index: {}]   ;;  %s5587_s6 = inlined_call_operand.hbm [shape: f32[128,512], index: 6, kind: input, shape index: {}]   ;;  %s5588_s7 = inlined_call_operand.vmem [shape: f32[1,512], index: 7, kind: input, shape index: {}]   ;;  %s5589_s8 = inlined_call_operand.vmem [shape: f32[1,128], index: 8, kind: input, shape index: {}]   ;;  %s5590_s9 = inlined_call_operand.vmem [shape: f32[1,128], index: 9, kind: input, shape index: {}]   ;;  %s5591_s10 = inlined_call_operand.hbm [shape: f32[8,8], index: 10, kind: output, shape index: {0}]   ;;  %s5592_s11 = inlined_call_operand.hbm [shape: f32[8,8], index: 11, kind: output, shape index: {1}]  }
   0x1   :  { %18 = vsyncpa [#allocation12], 0 }
   0x2   :  { %19 = vsyncpa [#allocation15], 0 }
   0x3   :  { %20 = vsyncpa [#allocation18], 0 }
   0x4   :  { %21 = vsyncpa [#allocation10], 0 }
   0x5   :  { %22 = vsyncpa [#allocation21], 0  ;;  %s4647_s17 = smov [#allocation11]   ;;  %s4648_s19 = smov [#allocation14]  }
   0x6   :  { %s40_s18 = sshll.u32 %s4647_s17, 4  ;;  %s64_s20 = sshll.u32 %s4648_s19, 4  ;;  %s41_s18 = int_to_ptr.vmem [resolvable:$true] %s40_s18  ;;  %s65_s20 = int_to_ptr.vmem [resolvable:$true] %s64_s20 }
   0x7   :  { %s4475_s21 = scalar_lea.vmem %s41_s18, 2048  ;;  %p4480_p1 = scmp.lt.s32.totalorder %s41_s18, %s41_s18 }
   0x8   :  { %p4476_p0 = scmp.ne.s32.totalorder %s41_s18, %s4475_s21  ;;  %p4481_p2 = scmp.lt.s32.totalorder %s4475_s21, %s4475_s21 }
   0xa   :  { %p4482_p3 = por %p4481_p2, %p4480_p1 }
   0xc   :  { %p4483_p4 = pnand %p4482_p3, %p4476_p0 }
   0xe   :  { %4486 = shalt.err (!%p4483_p4)
}
   0xf   :  { %s4649_s22 = smov 256   ;;  %s4650_s23 = smov 16  }
  0x10   :  { %46 = dma.hbm_to_vmem [thread:$0]  %s5582_s1, 2048, %s41_s18, [#allocation12], %s4649_s22, %s4649_s22, %s4650_s23  }
  0x11   :  { %s4495_s26 = scalar_lea.vmem %s65_s20, 8192  ;;  %p4500_p6 = scmp.lt.s32.totalorder %s65_s20, %s65_s20 }
  0x12   :  { %p4496_p5 = scmp.ne.s32.totalorder %s65_s20, %s4495_s26  ;;  %p4501_p7 = scmp.lt.s32.totalorder %s4495_s26, %s4495_s26 }
  0x14   :  { %p4502_p8 = por %p4501_p7, %p4500_p6 }
  0x16   :  { %p4503_p9 = pnand %p4502_p8, %p4496_p5 }
  0x18   :  { %4506 = shalt.err (!%p4503_p9)
}
  0x19   :  { %s4651_s27 = smov 512   ;;  %s4652_s28 = smov 32  }
  0x1a   :  { %70 = dma.hbm_to_vmem [thread:$0]  %s5584_s3, 8192, %s65_s20, [#allocation15], %s4651_s27, %s4651_s27, %s4652_s28  }
  0x1b   :  { %s4653_s12 = smov [#allocation8]   ;;  %s4654_s14 = smov [#allocation13]  }
  0x1c   :  { %s28_s13 = sshll.u32 %s4653_s12, 4  ;;  %s52_s1 = sshll.u32 %s4654_s14, 4  ;;  %s29_s13 = int_to_ptr.vmem [resolvable:$true] %s28_s13  ;;  %s53_s1 = int_to_ptr.vmem [resolvable:$true] %s52_s1 }
  0x1d   :  { %s4515_s15 = scalar_lea.vmem %s29_s13, 2048  ;;  %p4520_p11 = scmp.lt.s32.totalorder %s29_s13, %s29_s13 }
  0x1e   :  { %p4516_p10 = scmp.ne.s32.totalorder %s29_s13, %s4515_s15  ;;  %p4521_p12 = scmp.lt.s32.totalorder %s4515_s15, %s4515_s15 }
  0x20   :  { %p4522_p13 = por %p4521_p12, %p4520_p11 }
  0x22   :  { %p4523_p0 = pnand %p4522_p13, %p4516_p10 }
  0x24   :  { %4526 = shalt.err (!%p4523_p0)
}
  0x25   :  { %34 = dma.hbm_to_vmem [thread:$0]  %s5581_s0, 2048, %s29_s13, [#allocation9], %s4649_s22, %s4649_s22, %s4650_s23  }
  0x26   :  { %s4535_s3 = scalar_lea.vmem %s53_s1, 16384  ;;  %p4540_p2 = scmp.lt.s32.totalorder %s53_s1, %s53_s1 }
  0x27   :  { %p4536_p1 = scmp.ne.s32.totalorder %s53_s1, %s4535_s3  ;;  %p4541_p3 = scmp.lt.s32.totalorder %s4535_s3, %s4535_s3 }
  0x29   :  { %p4542_p4 = por %p4541_p3, %p4540_p2 }
  0x2b   :  { %p4543_p5 = pnand %p4542_p4, %p4536_p1 }
  0x2d   :  { %4546 = shalt.err (!%p4543_p5)
}
  0x2e   :  { %58 = dma.hbm_to_vmem [thread:$0]  %s5583_s2, 16384, %s53_s1, [#allocation12], %s4649_s22, %s4649_s22, %s4650_s23  }
  0x2f   :  { %s4655_s20 = smov [#allocation16]   ;;  %s4656_s24 = smov [#allocation17]  }
  0x30   :  { %s78_s21 = sshll.u32 %s4655_s20, 4  ;;  %s90_s25 = sshll.u32 %s4656_s24, 4  ;;  %s79_s21 = int_to_ptr.vmem [resolvable:$true] %s78_s21  ;;  %s91_s25 = int_to_ptr.vmem [resolvable:$true] %s90_s25 }
  0x31   :  { %s4555_s0 = scalar_lea.vmem %s79_s21, 16384  ;;  %p4560_p7 = scmp.lt.s32.totalorder %s79_s21, %s79_s21 }
  0x32   :  { %p4556_p6 = scmp.ne.s32.totalorder %s79_s21, %s4555_s0  ;;  %p4561_p8 = scmp.lt.s32.totalorder %s4555_s0, %s4555_s0 }
  0x34   :  { %p4562_p9 = por %p4561_p8, %p4560_p7 }
  0x36   :  { %p4563_p10 = pnand %p4562_p9, %p4556_p6 }
  0x38   :  { %4566 = shalt.err (!%p4563_p10)
}
  0x39   :  { %84 = dma.hbm_to_vmem [thread:$0]  %s5586_s5, 16384, %s79_s21, [#allocation15], %s4649_s22, %s4649_s22, %s4650_s23  }
  0x3a   :  { %s4575_s2 = scalar_lea.vmem %s91_s25, 8192  ;;  %p4580_p12 = scmp.lt.s32.totalorder %s91_s25, %s91_s25 }
  0x3b   :  { %p4576_p11 = scmp.ne.s32.totalorder %s91_s25, %s4575_s2  ;;  %p4581_p13 = scmp.lt.s32.totalorder %s4575_s2, %s4575_s2 }
  0x3d   :  { %p4582_p0 = por %p4581_p13, %p4580_p12 }
  0x3f   :  { %p4583_p1 = pnand %p4582_p0, %p4576_p11 }
  0x41   :  { %4586 = shalt.err (!%p4583_p1)
}
  0x42   :  { %96 = dma.hbm_to_vmem [thread:$0]  %s5587_s6, 8192, %s91_s25, [#allocation18], %s4651_s27, %s4651_s27, %s4652_s28  }
  0x43   :  { %4631 = dma.done.wait [#allocation9], 2048  }
  0x44   :  { %4632 = vsyncadd [#allocation9], 4294965248 }
  0x45   :  { %4633 = dma.done.wait [#allocation12], 18432  }
  0x46   :  { %4634 = vsyncadd [#allocation12], 4294948864 }
  0x47   :  { %4635 = dma.done.wait [#allocation15], 24576  }
  0x48   :  { %4636 = vsyncadd [#allocation15], 4294942720 }
  0x49   :  { %4637 = dma.done.wait [#allocation18], 8192  }
  0x4a   :  { %4638 = vsyncadd [#allocation18], 4294959104  ;;  %v4657_v0 = vmov 0.0   ;;  %v4760_v1 = vld [vmem:[%s5589_s8] ss:$0 sm:$0xff] }
  0x4b   :  { %125 = vst [vmem:[#allocation4] sm:$0xff] %v4657_v0  ;;  %126 = vst [vmem:[#allocation5] sm:$0xff] %v4657_v0  ;;  %v4765_v2 = vld [vmem:[%s5590_s9] ss:$0 sm:$0xff]  ;;  %v3971_v3 = vld [vmem:[#allocation13 + $0xe4] ss:$16 sps:$4 sm:$0xff]  }
  0x4c   :  { %127 = vst [vmem:[#allocation6] sm:$0xff] %v4657_v0  ;;  %128 = vst [vmem:[#allocation7] sm:$0xff] %v4657_v0  ;;  %v3973_v4 = vld [vmem:[#allocation13 + $0x2e4] ss:$16 sps:$4 sm:$0xff]   ;;  %v3975_v5 = vld [vmem:[#allocation13 + $0xe0] ss:$16 sps:$4 sm:$0xff]   ;;  %1015 = vmatprep.subr.bf16.mxu0 %v3971_v3 }
  0x4d   :  { %5664 = vst [vmem:[#allocation28_spill] sm:$0xff] %v4760_v1  ;;  %5665 = vst [vmem:[#allocation29_spill] sm:$0xff] %v4765_v2  ;;  %v3976_v6 = vld [vmem:[#allocation13 + $0x2e0] ss:$16 sps:$4 sm:$0xff]   ;;  %1088 = vmatprep.subr.bf16.mxu1 %v3973_v4  ;;  %1016 = vmatpush1.bf16.msra.mxu0 %v3975_v5  ;;  %v3977_v7 = vld [vmem:[#allocation13 + $0xc4] ss:$16 sps:$4 sm:$0xff]  }
  0x4e   :  { %1089 = vmatpush1.bf16.msra.mxu1 %v3976_v6  ;;  %v3979_v8 = vld [vmem:[#allocation13 + $0x2c4] ss:$16 sps:$4 sm:$0xff]   ;;  %v3981_v9 = vld [vmem:[#allocation13 + $0xc0] ss:$16 sps:$4 sm:$0xff]   ;;  %1017 = vmatprep.subr.bf16.mxu0 %v3977_v7  ;;  %v4769_v53 = vld [vmem:[#allocation8 + $0xc] ss:$16 sps:$4 sm:$0xff]  }
  0x4f   :  { %v3982_v10 = vld [vmem:[#allocation13 + $0x2c0] ss:$16 sps:$4 sm:$0xff]   ;;  %v3983_v11 = vld [vmem:[#allocation13 + $0xa4] ss:$16 sps:$4 sm:$0xff]   ;;  %1090 = vmatprep.subr.bf16.mxu1 %v3979_v8  ;;  %1120 = vmatprep.mubr.bf16.mxu1 %v4769_v53  ;;  %v4075_v7 = vld [vmem:[#allocation13 + $0xec] ss:$16 sps:$4 sm:$0xff]  }
  0x50   :  { %v3985_v12 = vld [vmem:[#allocation13 + $0x2a4] ss:$16 sps:$4 sm:$0xff]   ;;  %v3987_v13 = vld [vmem:[#allocation13 + $0xa0] ss:$16 sps:$4 sm:$0xff]   ;;  %v4078_v8 = vld [vmem:[#allocation13 + $0x2ec] ss:$16 sps:$4 sm:$0xff]  }
  0x51   :  { %1018 = vmatpush1.bf16.msra.mxu0 %v3981_v9  ;;  %v3988_v14 = vld [vmem:[#allocation13 + $0x2a0] ss:$16 sps:$4 sm:$0xff]   ;;  %v3989_v15 = vld [vmem:[#allocation13 + $0x84] ss:$16 sps:$4 sm:$0xff]  }
  0x52   :  { %1091 = vmatpush1.bf16.msra.mxu1 %v3982_v10  ;;  %1019 = vmatprep.subr.bf16.mxu0 %v3983_v11  ;;  %v3991_v16 = vld [vmem:[#allocation13 + $0x284] ss:$16 sps:$4 sm:$0xff]   ;;  %v3993_v17 = vld [vmem:[#allocation13 + $0x80] ss:$16 sps:$4 sm:$0xff]   ;;  %v4775_v10 = vld [vmem:[#allocation8 + $0x8] ss:$16 sps:$4 sm:$0xff]  }
  0x53   :  { %1092 = vmatprep.subr.bf16.mxu1 %v3985_v12  ;;  %v3994_v18 = vld [vmem:[#allocation13 + $0x280] ss:$16 sps:$4 sm:$0xff]   ;;  %v3995_v19 = vld [vmem:[#allocation13 + $0x64] ss:$16 sps:$4 sm:$0xff]   ;;  %v4073_v11 = vld [vmem:[#allocation13 + $0xe8] ss:$16 sps:$4 sm:$0xff]  }
  0x54   :  { %v3997_v20 = vld [vmem:[#allocation13 + $0x264] ss:$16 sps:$4 sm:$0xff]   ;;  %v3999_v21 = vld [vmem:[#allocation13 + $0x60] ss:$16 sps:$4 sm:$0xff]   ;;  %v4076_v12 = vld [vmem:[#allocation13 + $0x2e8] ss:$16 sps:$4 sm:$0xff]  }
  0x55   :  { %1020 = vmatpush1.bf16.msra.mxu0 %v3987_v13  ;;  %v4000_v22 = vld [vmem:[#allocation13 + $0x260] ss:$16 sps:$4 sm:$0xff]   ;;  %v4001_v23 = vld [vmem:[#allocation13 + $0x44] ss:$16 sps:$4 sm:$0xff]   ;;  %v4081_v13 = vld [vmem:[#allocation13 + $0xcc] ss:$16 sps:$4 sm:$0xff]  }
  0x56   :  { %1093 = vmatpush1.bf16.msra.mxu1 %v3988_v14  ;;  %1021 = vmatprep.subr.bf16.mxu0 %v3989_v15  ;;  %v4003_v24 = vld [vmem:[#allocation13 + $0x244] ss:$16 sps:$4 sm:$0xff]   ;;  %v4005_v25 = vld [vmem:[#allocation13 + $0x40] ss:$16 sps:$4 sm:$0xff]   ;;  %v4084_v14 = vld [vmem:[#allocation13 + $0x2cc] ss:$16 sps:$4 sm:$0xff]  }
  0x57   :  { %1094 = vmatprep.subr.bf16.mxu1 %v3991_v16  ;;  %v4006_v26 = vld [vmem:[#allocation13 + $0x240] ss:$16 sps:$4 sm:$0xff]   ;;  %v4007_v27 = vld [vmem:[#allocation13 + $0x24] ss:$16 sps:$4 sm:$0xff]   ;;  %v4079_v15 = vld [vmem:[#allocation13 + $0xc8] ss:$16 sps:$4 sm:$0xff]  }
  0x58   :  { %v4009_v28 = vld [vmem:[#allocation13 + $0x224] ss:$16 sps:$4 sm:$0xff]   ;;  %v4011_v29 = vld [vmem:[#allocation13 + $0x20] ss:$16 sps:$4 sm:$0xff]   ;;  %v4082_v16 = vld [vmem:[#allocation13 + $0x2c8] ss:$16 sps:$4 sm:$0xff]  }
  0x59   :  { %1022 = vmatpush1.bf16.msra.mxu0 %v3993_v17  ;;  %v4012_v30 = vld [vmem:[#allocation13 + $0x220] ss:$16 sps:$4 sm:$0xff]   ;;  %v4013_v31 = vld [vmem:[#allocation13 + $0x4] ss:$16 sps:$4 sm:$0xff]   ;;  %v4087_v17 = vld [vmem:[#allocation13 + $0xac] ss:$16 sps:$4 sm:$0xff]  }
  0x5a   :  { %1095 = vmatpush1.bf16.msra.mxu1 %v3994_v18  ;;  %1023 = vmatprep.subr.bf16.mxu0 %v3995_v19  ;;  %v4015_v32 = vld [vmem:[#allocation13 + $0x204] ss:$16 sps:$4 sm:$0xff]   ;;  %v4017_v33 = vld [vmem:[#allocation13] ss:$16 sps:$4 sm:$0xff]   ;;  %v4090_v18 = vld [vmem:[#allocation13 + $0x2ac] ss:$16 sps:$4 sm:$0xff]  }
  0x5b   :  { %1096 = vmatprep.subr.bf16.mxu1 %v3997_v20  ;;  %v4018_v34 = vld [vmem:[#allocation13 + $0x200] ss:$16 sps:$4 sm:$0xff]   ;;  %v4019_v35 = vld [vmem:[#allocation13 + $0x1e4] ss:$16 sps:$4 sm:$0xff]   ;;  %v4085_v19 = vld [vmem:[#allocation13 + $0xa8] ss:$16 sps:$4 sm:$0xff]  }
  0x5c   :  { %v4021_v36 = vld [vmem:[#allocation13 + $0x3e4] ss:$16 sps:$4 sm:$0xff]   ;;  %v4023_v37 = vld [vmem:[#allocation13 + $0x1e0] ss:$16 sps:$4 sm:$0xff]  }
  0x5d   :  { %1024 = vmatpush1.bf16.msra.mxu0 %v3999_v21  ;;  %v4024_v38 = vld [vmem:[#allocation13 + $0x3e0] ss:$16 sps:$4 sm:$0xff]   ;;  %v4025_v39 = vld [vmem:[#allocation13 + $0x1c4] ss:$16 sps:$4 sm:$0xff]  }
  0x5e   :  { %1097 = vmatpush1.bf16.msra.mxu1 %v4000_v22  ;;  %1025 = vmatprep.subr.bf16.mxu0 %v4001_v23  ;;  %v4027_v40 = vld [vmem:[#allocation13 + $0x3c4] ss:$16 sps:$4 sm:$0xff]   ;;  %v4029_v41 = vld [vmem:[#allocation13 + $0x1c0] ss:$16 sps:$4 sm:$0xff]   ;;  %v4784_v22 = vld [vmem:[#allocation8 + $0x2c] ss:$16 sps:$4 sm:$0xff]  }
  0x5f   :  { %1098 = vmatprep.subr.bf16.mxu1 %v4003_v24  ;;  %v4030_v42 = vld [vmem:[#allocation13 + $0x3c0] ss:$16 sps:$4 sm:$0xff]   ;;  %v4031_v43 = vld [vmem:[#allocation13 + $0x1a4] ss:$16 sps:$4 sm:$0xff]   ;;  %v4088_v23 = vld [vmem:[#allocation13 + $0x2a8] ss:$16 sps:$4 sm:$0xff]  }
  0x60   :  { %v4033_v44 = vld [vmem:[#allocation13 + $0x3a4] ss:$16 sps:$4 sm:$0xff]   ;;  %v4035_v45 = vld [vmem:[#allocation13 + $0x1a0] ss:$16 sps:$4 sm:$0xff]   ;;  %v4093_v24 = vld [vmem:[#allocation13 + $0x8c] ss:$16 sps:$4 sm:$0xff]  }
  0x61   :  { %1026 = vmatpush1.bf16.msra.mxu0 %v4005_v25  ;;  %v4036_v46 = vld [vmem:[#allocation13 + $0x3a0] ss:$16 sps:$4 sm:$0xff]   ;;  %v4037_v47 = vld [vmem:[#allocation13 + $0x184] ss:$16 sps:$4 sm:$0xff]   ;;  %v4096_v25 = vld [vmem:[#allocation13 + $0x28c] ss:$16 sps:$4 sm:$0xff]  }
  0x62   :  { %1099 = vmatpush1.bf16.msra.mxu1 %v4006_v26  ;;  %1027 = vmatprep.subr.bf16.mxu0 %v4007_v27  ;;  %v4039_v48 = vld [vmem:[#allocation13 + $0x384] ss:$16 sps:$4 sm:$0xff]   ;;  %v4041_v49 = vld [vmem:[#allocation13 + $0x180] ss:$16 sps:$4 sm:$0xff]   ;;  %v4788_v26 = vld [vmem:[#allocation8 + $0x28] ss:$16 sps:$4 sm:$0xff]  }
  0x63   :  { %1100 = vmatprep.subr.bf16.mxu1 %v4009_v28  ;;  %v4042_v50 = vld [vmem:[#allocation13 + $0x380] ss:$16 sps:$4 sm:$0xff]   ;;  %v4767_v51 = vld [vmem:[#allocation8 + $0x4] ss:$16 sps:$4 sm:$0xff]   ;;  %v4091_v27 = vld [vmem:[#allocation13 + $0x88] ss:$16 sps:$4 sm:$0xff]  }
  0x64   :  { %v4043_v52 = vld [vmem:[#allocation13 + $0x164] ss:$16 sps:$4 sm:$0xff]   ;;  %1047 = vmatprep.mubr.bf16.mxu0 %v4767_v51  ;;  %v4047_v55 = vld [vmem:[#allocation13 + $0x160] ss:$16 sps:$4 sm:$0xff]   ;;  %v4094_v28 = vld [vmem:[#allocation13 + $0x288] ss:$16 sps:$4 sm:$0xff]  }
  0x65   :  { %1028 = vmatpush1.bf16.msra.mxu0 %v4011_v29  ;;  %v4045_v54 = vld [vmem:[#allocation13 + $0x364] ss:$16 sps:$4 sm:$0xff]   ;;  %v4048_v56 = vld [vmem:[#allocation13 + $0x360] ss:$16 sps:$4 sm:$0xff]   ;;  %v4099_v29 = vld [vmem:[#allocation13 + $0x6c] ss:$16 sps:$4 sm:$0xff]  }
  0x66   :  { %1101 = vmatpush1.bf16.msra.mxu1 %v4012_v30  ;;  %1029 = vmatprep.subr.bf16.mxu0 %v4013_v31  ;;  %v4049_v57 = vld [vmem:[#allocation13 + $0x144] ss:$16 sps:$4 sm:$0xff]   ;;  %v4053_v59 = vld [vmem:[#allocation13 + $0x140] ss:$16 sps:$4 sm:$0xff]   ;;  %v4102_v30 = vld [vmem:[#allocation13 + $0x26c] ss:$16 sps:$4 sm:$0xff]  }
  0x67   :  { %1102 = vmatprep.subr.bf16.mxu1 %v4015_v32  ;;  %v4051_v58 = vld [vmem:[#allocation13 + $0x344] ss:$16 sps:$4 sm:$0xff]   ;;  %v4054_v60 = vld [vmem:[#allocation13 + $0x340] ss:$16 sps:$4 sm:$0xff]   ;;  %v4097_v31 = vld [vmem:[#allocation13 + $0x68] ss:$16 sps:$4 sm:$0xff]  }
  0x68   :  { %v4055_v61 = vld [vmem:[#allocation13 + $0x124] ss:$16 sps:$4 sm:$0xff]   ;;  %v4059_v63 = vld [vmem:[#allocation13 + $0x120] ss:$16 sps:$4 sm:$0xff]  }
  0x69   :  { %1030 = vmatpush1.bf16.msra.mxu0 %v4017_v33  ;;  %v4057_v62 = vld [vmem:[#allocation13 + $0x324] ss:$16 sps:$4 sm:$0xff]   ;;  %v4060_v0 = vld [vmem:[#allocation13 + $0x320] ss:$16 sps:$4 sm:$0xff]  }
  0x6a   :  { %1103 = vmatpush1.bf16.msra.mxu1 %v4018_v34  ;;  %1031 = vmatprep.subr.bf16.mxu0 %v4019_v35  ;;  %v4061_v3 = vld [vmem:[#allocation13 + $0x104] ss:$16 sps:$4 sm:$0xff]   ;;  %v4065_v5 = vld [vmem:[#allocation13 + $0x100] ss:$16 sps:$4 sm:$0xff]   ;;  %v4796_v34 = vld [vmem:[#allocation8 + $0x4c] ss:$16 sps:$4 sm:$0xff]  }
  0x6b   :  { %1104 = vmatprep.subr.bf16.mxu1 %v4021_v36  ;;  %v4063_v4 = vld [vmem:[#allocation13 + $0x304] ss:$16 sps:$4 sm:$0xff]   ;;  %v4066_v6 = vld [vmem:[#allocation13 + $0x300] ss:$16 sps:$4 sm:$0xff]   ;;  %v4100_v35 = vld [vmem:[#allocation13 + $0x268] ss:$16 sps:$4 sm:$0xff]  }
  0x6c   :  { %v4773_v9 = vld [vmem:[#allocation8] ss:$16 sps:$4 sm:$0xff]   ;;  %v4779_v20 = vld [vmem:[#allocation8 + $0x24] ss:$16 sps:$4 sm:$0xff]   ;;  %v4105_v36 = vld [vmem:[#allocation13 + $0x4c] ss:$16 sps:$4 sm:$0xff]  }
  0x6d   :  { %1032 = vmatpush2.bf16.msra.mxu0 %v4023_v37  ;;  %v4781_v21 = vld [vmem:[#allocation8 + $0x20] ss:$16 sps:$4 sm:$0xff]   ;;  %v4791_v32 = vld [vmem:[#allocation8 + $0x44] ss:$16 sps:$4 sm:$0xff]   ;;  %v4108_v37 = vld [vmem:[#allocation13 + $0x24c] ss:$16 sps:$4 sm:$0xff]  }
  0x6e   :  { %1105 = vmatpush2.bf16.msra.mxu1 %v4024_v38  ;;  %1033 = vmatprep.subr.bf16.mxu0 %v4025_v39  ;;  %v4793_v33 = vld [vmem:[#allocation8 + $0x40] ss:$16 sps:$4 sm:$0xff]   ;;  %v4800_v38 = vld [vmem:[#allocation8 + $0x48] ss:$16 sps:$4 sm:$0xff]  }
  0x6f   :  { %1106 = vmatprep.subr.bf16.mxu1 %v4027_v40  ;;  %v4103_v39 = vld [vmem:[#allocation13 + $0x48] ss:$16 sps:$4 sm:$0xff]  }
  0x70   :  { %v4106_v40 = vld [vmem:[#allocation13 + $0x248] ss:$16 sps:$4 sm:$0xff]  }
  0x71   :  { %1034 = vmatpush2.bf16.msra.mxu0 %v4029_v41  ;;  %v4111_v41 = vld [vmem:[#allocation13 + $0x2c] ss:$16 sps:$4 sm:$0xff]  }
  0x72   :  { %1107 = vmatpush2.bf16.msra.mxu1 %v4030_v42  ;;  %1035 = vmatprep.subr.bf16.mxu0 %v4031_v43  ;;  %v4114_v42 = vld [vmem:[#allocation13 + $0x22c] ss:$16 sps:$4 sm:$0xff]   ;;  %v4109_v43 = vld [vmem:[#allocation13 + $0x28] ss:$16 sps:$4 sm:$0xff]  }
  0x73   :  { %1108 = vmatprep.subr.bf16.mxu1 %v4033_v44  ;;  %v4803_v44 = vld [vmem:[#allocation8 + $0x64] ss:$16 sps:$4 sm:$0xff]  }
  0x75   :  { %1036 = vmatpush2.bf16.msra.mxu0 %v4035_v45  ;;  %v4805_v45 = vld [vmem:[#allocation8 + $0x60] ss:$16 sps:$4 sm:$0xff]  }
  0x76   :  { %1109 = vmatpush2.bf16.msra.mxu1 %v4036_v46  ;;  %1037 = vmatprep.subr.bf16.mxu0 %v4037_v47  ;;  %v4808_v46 = vld [vmem:[#allocation8 + $0x6c] ss:$16 sps:$4 sm:$0xff]   ;;  %v4112_v47 = vld [vmem:[#allocation13 + $0x228] ss:$16 sps:$4 sm:$0xff]  }
  0x77   :  { %1110 = vmatprep.subr.bf16.mxu1 %v4039_v48  ;;  %v4117_v48 = vld [vmem:[#allocation13 + $0xc] ss:$16 sps:$4 sm:$0xff]  }
  0x79   :  { %1038 = vmatpush2.bf16.msra.mxu0 %v4041_v49  ;;  %v4120_v49 = vld [vmem:[#allocation13 + $0x20c] ss:$16 sps:$4 sm:$0xff]  }
  0x7a   :  { %1111 = vmatpush2.bf16.msra.mxu1 %v4042_v50  ;;  %1039 = vmatprep.subr.bf16.mxu0 %v4043_v52  ;;  %v4812_v50 = vld [vmem:[#allocation8 + $0x68] ss:$16 sps:$4 sm:$0xff]  }
  0x7b   :  { %1112 = vmatprep.subr.bf16.mxu1 %v4045_v54  ;;  %v4115_v52 = vld [vmem:[#allocation13 + $0x8] ss:$16 sps:$4 sm:$0xff]  }
  0x7c   :  { %v4118_v54 = vld [vmem:[#allocation13 + $0x208] ss:$16 sps:$4 sm:$0xff]  }
  0x7d   :  { %1040 = vmatpush2.bf16.msra.mxu0 %v4047_v55  ;;  %v4123_v55 = vld [vmem:[#allocation13 + $0x1ec] ss:$16 sps:$4 sm:$0xff]  }
  0x7e   :  { %1113 = vmatpush2.bf16.msra.mxu1 %v4048_v56  ;;  %1041 = vmatprep.subr.bf16.mxu0 %v4049_v57  ;;  %v4126_v56 = vld [vmem:[#allocation13 + $0x3ec] ss:$16 sps:$4 sm:$0xff]   ;;  %v4121_v57 = vld [vmem:[#allocation13 + $0x1e8] ss:$16 sps:$4 sm:$0xff]  }
  0x7f   :  { %1114 = vmatprep.subr.bf16.mxu1 %v4051_v58  ;;  %v4124_v58 = vld [vmem:[#allocation13 + $0x3e8] ss:$16 sps:$4 sm:$0xff]  }
  0x81   :  { %1042 = vmatpush2.bf16.msra.mxu0 %v4053_v59  ;;  %v4134_v59 = vld [vmem:[#allocation13 + $0x1cc] ss:$16 sps:$4 sm:$0xff]  }
  0x82   :  { %1115 = vmatpush2.bf16.msra.mxu1 %v4054_v60  ;;  %1043 = vmatprep.subr.bf16.mxu0 %v4055_v61  ;;  %v4137_v60 = vld [vmem:[#allocation13 + $0x3cc] ss:$16 sps:$4 sm:$0xff]   ;;  %v4135_v61 = vld [vmem:[#allocation13 + $0x3c8] ss:$16 sps:$4 sm:$0xff]  }
  0x83   :  { %1116 = vmatprep.subr.bf16.mxu1 %v4057_v62  ;;  %v4141_v62 = vld [vmem:[#allocation13 + $0x1ac] ss:$16 sps:$4 sm:$0xff]  }
  0x85   :  { %1044 = vmatpush2.bf16.msra.mxu0 %v4059_v63  ;;  %v4144_v63 = vld [vmem:[#allocation13 + $0x3ac] ss:$16 sps:$4 sm:$0xff]  }
  0x86   :  { %1117 = vmatpush2.bf16.msra.mxu1 %v4060_v0  ;;  %1045 = vmatprep.subr.bf16.mxu0 %v4061_v3  ;;  %v4139_v0 = vld [vmem:[#allocation13 + $0x1a8] ss:$16 sps:$4 sm:$0xff]   ;;  %v4152_v3 = vld [vmem:[#allocation13 + $0x18c] ss:$16 sps:$4 sm:$0xff]  }
  0x87   :  { %1118 = vmatprep.subr.bf16.mxu1 %v4063_v4  ;;  %v4155_v4 = vld [vmem:[#allocation13 + $0x38c] ss:$16 sps:$4 sm:$0xff]  }
  0x89   :  { %1046 = vmatpush2.bf16.msra.mxu0 %v4065_v5  ;;  %v4150_v5 = vld [vmem:[#allocation13 + $0x188] ss:$16 sps:$4 sm:$0xff]  }
  0x8a   :  { %1119 = vmatpush2.bf16.msra.mxu1 %v4066_v6  ;;  %1161 = vmatprep.subr.bf16.mxu0 %v4075_v7  ;;  %v4153_v6 = vld [vmem:[#allocation13 + $0x388] ss:$16 sps:$4 sm:$0xff]   ;;  %v4159_v7 = vld [vmem:[#allocation13 + $0x16c] ss:$16 sps:$4 sm:$0xff]  }
  0x8b   :  { %1234 = vmatprep.subr.bf16.mxu1 %v4078_v8  ;;  %v4162_v8 = vld [vmem:[#allocation13 + $0x36c] ss:$16 sps:$4 sm:$0xff]  }
  0x8c   :  { %1048 = vmatmul.mubr.bf16.vlgmr.msra.gmra.mxu0 %v4773_v9 }
  0x8d   :  { %1121 = vmatmul.mubr.bf16.vlgmr.msra.gmra.mxu1 %v4775_v10  ;;  %1162 = vmatpush1.bf16.msra.mxu0 %v4073_v11  ;;  %v4157_v11 = vld [vmem:[#allocation13 + $0x168] ss:$16 sps:$4 sm:$0xff]  }
  0x8e   :  { %1235 = vmatpush1.bf16.msra.mxu1 %v4076_v12  ;;  %1163 = vmatprep.subr.bf16.mxu0 %v4081_v13  ;;  %v4160_v12 = vld [vmem:[#allocation13 + $0x368] ss:$16 sps:$4 sm:$0xff]   ;;  %v4170_v13 = vld [vmem:[#allocation13 + $0x14c] ss:$16 sps:$4 sm:$0xff]  }
  0x8f   :  { %1236 = vmatprep.subr.bf16.mxu1 %v4084_v14  ;;  %1057 = vmatprep.mubr.bf16.mxu0 %v4779_v20  ;;  %v4173_v14 = vld [vmem:[#allocation13 + $0x34c] ss:$16 sps:$4 sm:$0xff]  }
  0x90   :  { %1130 = vmatprep.mubr.bf16.mxu1 %v4784_v22 }
  0x91   :  { %1164 = vmatpush1.bf16.msra.mxu0 %v4079_v15  ;;  %v4168_v15 = vld [vmem:[#allocation13 + $0x148] ss:$16 sps:$4 sm:$0xff]  }
  0x92   :  { %1237 = vmatpush1.bf16.msra.mxu1 %v4082_v16  ;;  %1165 = vmatprep.subr.bf16.mxu0 %v4087_v17  ;;  %v4171_v16 = vld [vmem:[#allocation13 + $0x348] ss:$16 sps:$4 sm:$0xff]   ;;  %v4177_v17 = vld [vmem:[#allocation13 + $0x12c] ss:$16 sps:$4 sm:$0xff]  }
  0x93   :  { %1238 = vmatprep.subr.bf16.mxu1 %v4090_v18  ;;  %v4180_v18 = vld [vmem:[#allocation13 + $0x32c] ss:$16 sps:$4 sm:$0xff]  }
  0x94   :  { %1058 = vmatmul.mubr.bf16.gmra.mxu0 %v4781_v21 }
  0x95   :  { %1166 = vmatpush1.bf16.msra.mxu0 %v4085_v19  ;;  %1131 = vmatmul.mubr.bf16.gmra.mxu1 %v4788_v26  ;;  %v4175_v19 = vld [vmem:[#allocation13 + $0x128] ss:$16 sps:$4 sm:$0xff]  }
  0x96   :  { %1239 = vmatpush1.bf16.msra.mxu1 %v4088_v23  ;;  %1167 = vmatprep.subr.bf16.mxu0 %v4093_v24  ;;  %v4178_v23 = vld [vmem:[#allocation13 + $0x328] ss:$16 sps:$4 sm:$0xff]   ;;  %v4183_v24 = vld [vmem:[#allocation13 + $0x10c] ss:$16 sps:$4 sm:$0xff]  }
  0x97   :  { %1240 = vmatprep.subr.bf16.mxu1 %v4096_v25  ;;  %1067 = vmatprep.mubr.bf16.mxu0 %v4791_v32  ;;  %v4186_v25 = vld [vmem:[#allocation13 + $0x30c] ss:$16 sps:$4 sm:$0xff]  }
  0x98   :  { %1140 = vmatprep.mubr.bf16.mxu1 %v4796_v34 }
  0x99   :  { %1168 = vmatpush1.bf16.msra.mxu0 %v4091_v27  ;;  %v4181_v27 = vld [vmem:[#allocation13 + $0x108] ss:$16 sps:$4 sm:$0xff]  }
  0x9a   :  { %1241 = vmatpush1.bf16.msra.mxu1 %v4094_v28  ;;  %1169 = vmatprep.subr.bf16.mxu0 %v4099_v29  ;;  %v4184_v28 = vld [vmem:[#allocation13 + $0x308] ss:$16 sps:$4 sm:$0xff]   ;;  %v4189_v29 = vld [vmem:[#allocation16 + $0xe4] ss:$16 sps:$4 sm:$0xff]  }
  0x9b   :  { %1242 = vmatprep.subr.bf16.mxu1 %v4102_v30  ;;  %v4192_v30 = vld [vmem:[#allocation16 + $0x2e4] ss:$16 sps:$4 sm:$0xff]  }
  0x9c   :  { %1068 = vmatmul.mubr.bf16.gmra.mxu0 %v4793_v33 }
  0x9d   :  { %1170 = vmatpush1.bf16.msra.mxu0 %v4097_v31  ;;  %1141 = vmatmul.mubr.bf16.gmra.mxu1 %v4800_v38  ;;  %v4187_v31 = vld [vmem:[#allocation16 + $0xe0] ss:$16 sps:$4 sm:$0xff]  }
  0x9e   :  { %1243 = vmatpush1.bf16.msra.mxu1 %v4100_v35  ;;  %1171 = vmatprep.subr.bf16.mxu0 %v4105_v36  ;;  %v4190_v35 = vld [vmem:[#allocation16 + $0x2e0] ss:$16 sps:$4 sm:$0xff]   ;;  %v4195_v36 = vld [vmem:[#allocation16 + $0xc4] ss:$16 sps:$4 sm:$0xff]  }
  0x9f   :  { %1244 = vmatprep.subr.bf16.mxu1 %v4108_v37  ;;  %1077 = vmatprep.mubr.bf16.mxu0 %v4803_v44  ;;  %v4198_v37 = vld [vmem:[#allocation16 + $0x2c4] ss:$16 sps:$4 sm:$0xff]  }
  0xa0   :  { %1150 = vmatprep.mubr.bf16.mxu1 %v4808_v46 }
  0xa1   :  { %1172 = vmatpush1.bf16.msra.mxu0 %v4103_v39  ;;  %v4193_v39 = vld [vmem:[#allocation16 + $0xc0] ss:$16 sps:$4 sm:$0xff]  }
  0xa2   :  { %1245 = vmatpush1.bf16.msra.mxu1 %v4106_v40  ;;  %1173 = vmatprep.subr.bf16.mxu0 %v4111_v41  ;;  %v4196_v40 = vld [vmem:[#allocation16 + $0x2c0] ss:$16 sps:$4 sm:$0xff]   ;;  %v4201_v41 = vld [vmem:[#allocation16 + $0xa4] ss:$16 sps:$4 sm:$0xff]  }
  0xa3   :  { %1246 = vmatprep.subr.bf16.mxu1 %v4114_v42  ;;  %v4204_v42 = vld [vmem:[#allocation16 + $0x2a4] ss:$16 sps:$4 sm:$0xff]  }
  0xa4   :  { %1078 = vmatmul.mubr.bf16.gmra.mxu0 %v4805_v45 }
  0xa5   :  { %1174 = vmatpush1.bf16.msra.mxu0 %v4109_v43  ;;  %1193 = vmatprep.mubr.bf16.mxu0 %v4767_v51  ;;  %v4132_v51 = vld [vmem:[#allocation13 + $0x1c8] ss:$16 sps:$4 sm:$0xff]   ;;  %v4199_v43 = vld [vmem:[#allocation16 + $0xa0] ss:$16 sps:$4 sm:$0xff]  }
  0xa6   :  { %1247 = vmatpush1.bf16.msra.mxu1 %v4112_v47  ;;  %1175 = vmatprep.subr.bf16.mxu0 %v4117_v48  ;;  %v4202_v47 = vld [vmem:[#allocation16 + $0x2a0] ss:$16 sps:$4 sm:$0xff]  }
  0xa7   :  { %1248 = vmatprep.subr.bf16.mxu1 %v4120_v49  ;;  %1151 = vmatmul.mubr.bf16.gmra.mxu1 %v4812_v50  ;;  %v4205_v48 = vld [vmem:[#allocation16 + $0x80] ss:$16 sps:$4 sm:$0xff]  }
  0xa8   :  { %1266 = vmatprep.mubr.bf16.mxu1 %v4769_v53  ;;  %v4142_v53 = vld [vmem:[#allocation13 + $0x3a8] ss:$16 sps:$4 sm:$0xff]   ;;  %v4208_v49 = vld [vmem:[#allocation16 + $0x280] ss:$16 sps:$4 sm:$0xff]  }
  0xa9   :  { %1176 = vmatpush1.bf16.msra.mxu0 %v4115_v52  ;;  %v4211_v52 = vld [vmem:[#allocation16 + $0x60] ss:$16 sps:$4 sm:$0xff]  }
  0xaa   :  { %1249 = vmatpush1.bf16.msra.mxu1 %v4118_v54  ;;  %1177 = vmatprep.subr.bf16.mxu0 %v4123_v55  ;;  %v4214_v54 = vld [vmem:[#allocation16 + $0x260] ss:$16 sps:$4 sm:$0xff]   ;;  %v4222_v55 = vld [vmem:[#allocation16 + $0x244] ss:$16 sps:$4 sm:$0xff]  }
  0xab   :  { %1250 = vmatprep.subr.bf16.mxu1 %v4126_v56  ;;  %v4220_v56 = vld [vmem:[#allocation16 + $0x240] ss:$16 sps:$4 sm:$0xff]  }
  0xad   :  { %1178 = vmatpush2.bf16.msra.mxu0 %v4121_v57  ;;  %v4223_v57 = vld [vmem:[#allocation16 + $0x20] ss:$16 sps:$4 sm:$0xff]  }
  0xae   :  { %1251 = vmatpush2.bf16.msra.mxu1 %v4124_v58  ;;  %1179 = vmatprep.subr.bf16.mxu0 %v4134_v59  ;;  %v4226_v58 = vld [vmem:[#allocation16 + $0x220] ss:$16 sps:$4 sm:$0xff]   ;;  %v4234_v59 = vld [vmem:[#allocation16 + $0x204] ss:$16 sps:$4 sm:$0xff]  }
  0xaf   :  { %1252 = vmatprep.subr.bf16.mxu1 %v4137_v60  ;;  %v4829_v60 = vld [vmem:[#allocation11 + $0x4] ss:$16 sps:$4 sm:$0xff]  }
  0xb1   :  { %1180 = vmatpush2.bf16.msra.mxu0 %v4132_v51  ;;  %v4229_v51 = vld [vmem:[#allocation16] ss:$16 sps:$4 sm:$0xff]  }
  0xb2   :  { %1253 = vmatpush2.bf16.msra.mxu1 %v4135_v61  ;;  %1181 = vmatprep.subr.bf16.mxu0 %v4141_v62  ;;  %v4240_v61 = vld [vmem:[#allocation16 + $0x3e4] ss:$16 sps:$4 sm:$0xff]   ;;  %v4235_v62 = vld [vmem:[#allocation16 + $0x1e0] ss:$16 sps:$4 sm:$0xff]  }
  0xb3   :  { %1254 = vmatprep.subr.bf16.mxu1 %v4144_v63  ;;  %v4243_v63 = vld [vmem:[#allocation16 + $0x1c4] ss:$16 sps:$4 sm:$0xff]  }
  0xb5   :  { %1182 = vmatpush2.bf16.msra.mxu0 %v4139_v0  ;;  %v4246_v0 = vld [vmem:[#allocation16 + $0x3c4] ss:$16 sps:$4 sm:$0xff]  }
  0xb6   :  { %1255 = vmatpush2.bf16.msra.mxu1 %v4142_v53  ;;  %1183 = vmatprep.subr.bf16.mxu0 %v4152_v3  ;;  %v4244_v53 = vld [vmem:[#allocation16 + $0x3c0] ss:$16 sps:$4 sm:$0xff]   ;;  %v4249_v3 = vld [vmem:[#allocation16 + $0x1a4] ss:$16 sps:$4 sm:$0xff]  }
  0xb7   :  { %1256 = vmatprep.subr.bf16.mxu1 %v4155_v4  ;;  %v4252_v4 = vld [vmem:[#allocation16 + $0x3a4] ss:$16 sps:$4 sm:$0xff]  }
  0xb9   :  { %1184 = vmatpush2.bf16.msra.mxu0 %v4150_v5  ;;  %v4247_v5 = vld [vmem:[#allocation16 + $0x1a0] ss:$16 sps:$4 sm:$0xff]  }
  0xba   :  { %1257 = vmatpush2.bf16.msra.mxu1 %v4153_v6  ;;  %1185 = vmatprep.subr.bf16.mxu0 %v4159_v7  ;;  %v4250_v6 = vld [vmem:[#allocation16 + $0x3a0] ss:$16 sps:$4 sm:$0xff]   ;;  %v4255_v7 = vld [vmem:[#allocation16 + $0x184] ss:$16 sps:$4 sm:$0xff]  }
  0xbb   :  { %1258 = vmatprep.subr.bf16.mxu1 %v4162_v8  ;;  %v4258_v8 = vld [vmem:[#allocation16 + $0x384] ss:$16 sps:$4 sm:$0xff]  }
  0xbd   :  { %1186 = vmatpush2.bf16.msra.mxu0 %v4157_v11  ;;  %v4253_v11 = vld [vmem:[#allocation16 + $0x180] ss:$16 sps:$4 sm:$0xff]  }
  0xbe   :  { %1259 = vmatpush2.bf16.msra.mxu1 %v4160_v12  ;;  %1187 = vmatprep.subr.bf16.mxu0 %v4170_v13  ;;  %v4256_v12 = vld [vmem:[#allocation16 + $0x380] ss:$16 sps:$4 sm:$0xff]   ;;  %v4261_v13 = vld [vmem:[#allocation16 + $0x164] ss:$16 sps:$4 sm:$0xff]  }
  0xbf   :  { %1260 = vmatprep.subr.bf16.mxu1 %v4173_v14  ;;  %v4264_v14 = vld [vmem:[#allocation16 + $0x364] ss:$16 sps:$4 sm:$0xff]  }
  0xc1   :  { %1188 = vmatpush2.bf16.msra.mxu0 %v4168_v15  ;;  %v4259_v15 = vld [vmem:[#allocation16 + $0x160] ss:$16 sps:$4 sm:$0xff]  }
  0xc2   :  { %1261 = vmatpush2.bf16.msra.mxu1 %v4171_v16  ;;  %1189 = vmatprep.subr.bf16.mxu0 %v4177_v17  ;;  %v4262_v16 = vld [vmem:[#allocation16 + $0x360] ss:$16 sps:$4 sm:$0xff]   ;;  %v4267_v17 = vld [vmem:[#allocation16 + $0x144] ss:$16 sps:$4 sm:$0xff]  }
  0xc3   :  { %1262 = vmatprep.subr.bf16.mxu1 %v4180_v18  ;;  %v4270_v18 = vld [vmem:[#allocation16 + $0x344] ss:$16 sps:$4 sm:$0xff]  }
  0xc5   :  { %1190 = vmatpush2.bf16.msra.mxu0 %v4175_v19  ;;  %v4265_v19 = vld [vmem:[#allocation16 + $0x140] ss:$16 sps:$4 sm:$0xff]  }
  0xc6   :  { %1263 = vmatpush2.bf16.msra.mxu1 %v4178_v23  ;;  %1191 = vmatprep.subr.bf16.mxu0 %v4183_v24  ;;  %v4268_v23 = vld [vmem:[#allocation16 + $0x340] ss:$16 sps:$4 sm:$0xff]   ;;  %v4273_v24 = vld [vmem:[#allocation16 + $0x124] ss:$16 sps:$4 sm:$0xff]  }
  0xc7   :  { %1264 = vmatprep.subr.bf16.mxu1 %v4186_v25  ;;  %v4276_v25 = vld [vmem:[#allocation16 + $0x324] ss:$16 sps:$4 sm:$0xff]  }
  0xc9   :  { %1192 = vmatpush2.bf16.msra.mxu0 %v4181_v27  ;;  %v4271_v27 = vld [vmem:[#allocation16 + $0x120] ss:$16 sps:$4 sm:$0xff]  }
  0xca   :  { %1265 = vmatpush2.bf16.msra.mxu1 %v4184_v28  ;;  %2225 = vmatprep.subr.bf16.mxu0 %v4189_v29  ;;  %v4274_v28 = vld [vmem:[#allocation16 + $0x320] ss:$16 sps:$4 sm:$0xff]   ;;  %v4279_v29 = vld [vmem:[#allocation16 + $0x104] ss:$16 sps:$4 sm:$0xff]  }
  0xcb   :  { %2298 = vmatprep.subr.bf16.mxu1 %v4192_v30  ;;  %v4282_v30 = vld [vmem:[#allocation16 + $0x304] ss:$16 sps:$4 sm:$0xff]  }
  0xcc   :  { %1194 = vmatmul.mubr.bf16.vlgmr.msra.gmra.mxu0 %v4773_v9  ;;  %v4207_v9 = vld [vmem:[#allocation16 + $0x84] ss:$16 sps:$4 sm:$0xff]  }
  0xcd   :  { %1267 = vmatmul.mubr.bf16.vlgmr.msra.gmra.mxu1 %v4775_v10  ;;  %2226 = vmatpush1.bf16.msra.mxu0 %v4187_v31  ;;  %v4210_v10 = vld [vmem:[#allocation16 + $0x284] ss:$16 sps:$4 sm:$0xff]   ;;  %v4277_v31 = vld [vmem:[#allocation16 + $0x100] ss:$16 sps:$4 sm:$0xff]  }
  0xce   :  { %2299 = vmatpush1.bf16.msra.mxu1 %v4190_v35  ;;  %2227 = vmatprep.subr.bf16.mxu0 %v4195_v36  ;;  %v4280_v35 = vld [vmem:[#allocation16 + $0x300] ss:$16 sps:$4 sm:$0xff]   ;;  %v4291_v36 = vld [vmem:[#allocation16 + $0xec] ss:$16 sps:$4 sm:$0xff]  }
  0xcf   :  { %2300 = vmatprep.subr.bf16.mxu1 %v4198_v37  ;;  %1203 = vmatprep.mubr.bf16.mxu0 %v4779_v20  ;;  %v4213_v20 = vld [vmem:[#allocation16 + $0x64] ss:$16 sps:$4 sm:$0xff]   ;;  %v4294_v37 = vld [vmem:[#allocation16 + $0x2ec] ss:$16 sps:$4 sm:$0xff]  }
  0xd0   :  { %1276 = vmatprep.mubr.bf16.mxu1 %v4784_v22  ;;  %v4216_v22 = vld [vmem:[#allocation16 + $0x264] ss:$16 sps:$4 sm:$0xff]  }
  0xd1   :  { %2228 = vmatpush1.bf16.msra.mxu0 %v4193_v39  ;;  %v4837_v39 = vld [vmem:[#allocation11] ss:$16 sps:$4 sm:$0xff]  }
  0xd2   :  { %2301 = vmatpush1.bf16.msra.mxu1 %v4196_v40  ;;  %2229 = vmatprep.subr.bf16.mxu0 %v4201_v41  ;;  %v4839_v40 = vld [vmem:[#allocation11 + $0x8] ss:$16 sps:$4 sm:$0xff]  }
  0xd3   :  { %2302 = vmatprep.subr.bf16.mxu1 %v4204_v42  ;;  %v4289_v41 = vld [vmem:[#allocation16 + $0xe8] ss:$16 sps:$4 sm:$0xff]  }
  0xd4   :  { %1204 = vmatmul.mubr.bf16.gmra.mxu0 %v4781_v21  ;;  %v4219_v21 = vld [vmem:[#allocation16 + $0x44] ss:$16 sps:$4 sm:$0xff]   ;;  %v4292_v42 = vld [vmem:[#allocation16 + $0x2e8] ss:$16 sps:$4 sm:$0xff]  }
  0xd5   :  { %2230 = vmatpush1.bf16.msra.mxu0 %v4199_v43  ;;  %1277 = vmatmul.mubr.bf16.gmra.mxu1 %v4788_v26  ;;  %v4217_v26 = vld [vmem:[#allocation16 + $0x40] ss:$16 sps:$4 sm:$0xff]   ;;  %v4297_v43 = vld [vmem:[#allocation16 + $0xcc] ss:$16 sps:$4 sm:$0xff]  }
  0xd6   :  { %2303 = vmatpush1.bf16.msra.mxu1 %v4202_v47  ;;  %2231 = vmatprep.subr.bf16.mxu0 %v4207_v9  ;;  %v4300_v47 = vld [vmem:[#allocation16 + $0x2cc] ss:$16 sps:$4 sm:$0xff]   ;;  %v4841_v9 = vld [vmem:[#allocation11 + $0x24] ss:$16 sps:$4 sm:$0xff]  }
  0xd7   :  { %2304 = vmatprep.subr.bf16.mxu1 %v4210_v10  ;;  %1213 = vmatprep.mubr.bf16.mxu0 %v4791_v32  ;;  %v4225_v32 = vld [vmem:[#allocation16 + $0x24] ss:$16 sps:$4 sm:$0xff]   ;;  %v4844_v10 = vld [vmem:[#allocation11 + $0x2c] ss:$16 sps:$4 sm:$0xff]  }
  0xd8   :  { %1286 = vmatprep.mubr.bf16.mxu1 %v4796_v34  ;;  %v4228_v34 = vld [vmem:[#allocation16 + $0x224] ss:$16 sps:$4 sm:$0xff]  }
  0xd9   :  { %2232 = vmatpush1.bf16.msra.mxu0 %v4205_v48  ;;  %v4295_v48 = vld [vmem:[#allocation16 + $0xc8] ss:$16 sps:$4 sm:$0xff]  }
  0xda   :  { %2305 = vmatpush1.bf16.msra.mxu1 %v4208_v49  ;;  %2233 = vmatprep.subr.bf16.mxu0 %v4213_v20  ;;  %v4298_v49 = vld [vmem:[#allocation16 + $0x2c8] ss:$16 sps:$4 sm:$0xff]   ;;  %v4303_v20 = vld [vmem:[#allocation16 + $0xac] ss:$16 sps:$4 sm:$0xff]  }
  0xdb   :  { %2306 = vmatprep.subr.bf16.mxu1 %v4216_v22  ;;  %v4306_v22 = vld [vmem:[#allocation16 + $0x2ac] ss:$16 sps:$4 sm:$0xff]  }
  0xdc   :  { %1214 = vmatmul.mubr.bf16.gmra.mxu0 %v4793_v33  ;;  %v4231_v33 = vld [vmem:[#allocation16 + $0x4] ss:$16 sps:$4 sm:$0xff]  }
  0xdd   :  { %2234 = vmatpush1.bf16.msra.mxu0 %v4211_v52  ;;  %1287 = vmatmul.mubr.bf16.gmra.mxu1 %v4800_v38  ;;  %v4832_v38 = vld [vmem:[#allocation11 + $0xc] ss:$16 sps:$4 sm:$0xff]   ;;  %v4848_v52 = vld [vmem:[#allocation11 + $0x20] ss:$16 sps:$4 sm:$0xff]  }
  0xde   :  { %2307 = vmatpush1.bf16.msra.mxu1 %v4214_v54  ;;  %2235 = vmatprep.subr.bf16.mxu0 %v4219_v21  ;;  %v4301_v54 = vld [vmem:[#allocation16 + $0xa8] ss:$16 sps:$4 sm:$0xff]  }
  0xdf   :  { %2308 = vmatprep.subr.bf16.mxu1 %v4222_v55  ;;  %1223 = vmatprep.mubr.bf16.mxu0 %v4803_v44  ;;  %v4232_v44 = vld [vmem:[#allocation16 + $0x200] ss:$16 sps:$4 sm:$0xff]   ;;  %v4851_v21 = vld [vmem:[#allocation11 + $0x28] ss:$16 sps:$4 sm:$0xff]  }
  0xe0   :  { %1296 = vmatprep.mubr.bf16.mxu1 %v4808_v46  ;;  %v4237_v46 = vld [vmem:[#allocation16 + $0x1e4] ss:$16 sps:$4 sm:$0xff]   ;;  %v4304_v55 = vld [vmem:[#allocation16 + $0x2a8] ss:$16 sps:$4 sm:$0xff]  }
  0xe1   :  { %2236 = vmatpush1.bf16.msra.mxu0 %v4217_v26  ;;  %v4309_v26 = vld [vmem:[#allocation16 + $0x8c] ss:$16 sps:$4 sm:$0xff]  }
  0xe2   :  { %2309 = vmatpush1.bf16.msra.mxu1 %v4220_v56  ;;  %2237 = vmatprep.subr.bf16.mxu0 %v4225_v32  ;;  %v4312_v56 = vld [vmem:[#allocation16 + $0x28c] ss:$16 sps:$4 sm:$0xff]   ;;  %v4853_v32 = vld [vmem:[#allocation11 + $0x44] ss:$16 sps:$4 sm:$0xff]  }
  0xe3   :  { %2310 = vmatprep.subr.bf16.mxu1 %v4228_v34  ;;  %v4856_v34 = vld [vmem:[#allocation11 + $0x4c] ss:$16 sps:$4 sm:$0xff]  }
  0xe4   :  { %1224 = vmatmul.mubr.bf16.gmra.mxu0 %v4805_v45  ;;  %v4238_v45 = vld [vmem:[#allocation16 + $0x3e0] ss:$16 sps:$4 sm:$0xff]  }
  0xe5   :  { %2238 = vmatpush1.bf16.msra.mxu0 %v4223_v57  ;;  %1297 = vmatmul.mubr.bf16.gmra.mxu1 %v4812_v50  ;;  %v4241_v50 = vld [vmem:[#allocation16 + $0x1c0] ss:$16 sps:$4 sm:$0xff]   ;;  %v4307_v57 = vld [vmem:[#allocation16 + $0x88] ss:$16 sps:$4 sm:$0xff]  }
  0xe6   :  { %2311 = vmatpush1.bf16.msra.mxu1 %v4226_v58  ;;  %2239 = vmatprep.subr.bf16.mxu0 %v4231_v33  ;;  %v4310_v58 = vld [vmem:[#allocation16 + $0x288] ss:$16 sps:$4 sm:$0xff]   ;;  %v4315_v33 = vld [vmem:[#allocation16 + $0x6c] ss:$16 sps:$4 sm:$0xff]  }
  0xe7   :  { %2312 = vmatprep.subr.bf16.mxu1 %v4234_v59  ;;  %2257 = vmatprep.mubr.bf16.mxu0 %v4829_v60  ;;  %v4318_v59 = vld [vmem:[#allocation16 + $0x26c] ss:$16 sps:$4 sm:$0xff]  }
  0xe8   :  { %2330 = vmatprep.mubr.bf16.mxu1 %v4832_v38 }
  0xe9   :  { %2240 = vmatpush1.bf16.msra.mxu0 %v4229_v51  ;;  %v4860_v51 = vld [vmem:[#allocation11 + $0x40] ss:$16 sps:$4 sm:$0xff]  }
  0xea   :  { %2313 = vmatpush1.bf16.msra.mxu1 %v4232_v44  ;;  %2241 = vmatprep.subr.bf16.mxu0 %v4237_v46  ;;  %v4313_v44 = vld [vmem:[#allocation16 + $0x68] ss:$16 sps:$4 sm:$0xff]  }
  0xeb   :  { %2314 = vmatprep.subr.bf16.mxu1 %v4240_v61  ;;  %v4863_v46 = vld [vmem:[#allocation11 + $0x48] ss:$16 sps:$4 sm:$0xff]  }
  0xec   :  { %v4316_v61 = vld [vmem:[#allocation16 + $0x268] ss:$16 sps:$4 sm:$0xff]  }
  0xed   :  { %2242 = vmatpush2.bf16.msra.mxu0 %v4235_v62  ;;  %v4321_v62 = vld [vmem:[#allocation16 + $0x4c] ss:$16 sps:$4 sm:$0xff]  }
  0xee   :  { %2315 = vmatpush2.bf16.msra.mxu1 %v4238_v45  ;;  %2243 = vmatprep.subr.bf16.mxu0 %v4243_v63  ;;  %v4324_v45 = vld [vmem:[#allocation16 + $0x24c] ss:$16 sps:$4 sm:$0xff]   ;;  %v4865_v63 = vld [vmem:[#allocation11 + $0x64] ss:$16 sps:$4 sm:$0xff]  }
  0xef   :  { %2316 = vmatprep.subr.bf16.mxu1 %v4246_v0  ;;  %v4868_v0 = vld [vmem:[#allocation11 + $0x6c] ss:$16 sps:$4 sm:$0xff]  }
  0xf1   :  { %2244 = vmatpush2.bf16.msra.mxu0 %v4241_v50  ;;  %v4319_v50 = vld [vmem:[#allocation16 + $0x48] ss:$16 sps:$4 sm:$0xff]  }
  0xf2   :  { %2317 = vmatpush2.bf16.msra.mxu1 %v4244_v53  ;;  %2245 = vmatprep.subr.bf16.mxu0 %v4249_v3  ;;  %v4322_v53 = vld [vmem:[#allocation16 + $0x248] ss:$16 sps:$4 sm:$0xff]   ;;  %v4327_v3 = vld [vmem:[#allocation16 + $0x2c] ss:$16 sps:$4 sm:$0xff]  }
  0xf3   :  { %2318 = vmatprep.subr.bf16.mxu1 %v4252_v4  ;;  %v4330_v4 = vld [vmem:[#allocation16 + $0x22c] ss:$16 sps:$4 sm:$0xff]  }
  0xf5   :  { %2246 = vmatpush2.bf16.msra.mxu0 %v4247_v5  ;;  %v4872_v5 = vld [vmem:[#allocation11 + $0x60] ss:$16 sps:$4 sm:$0xff]  }
  0xf6   :  { %2319 = vmatpush2.bf16.msra.mxu1 %v4250_v6  ;;  %2247 = vmatprep.subr.bf16.mxu0 %v4255_v7  ;;  %v4325_v6 = vld [vmem:[#allocation16 + $0x28] ss:$16 sps:$4 sm:$0xff]  }
  0xf7   :  { %2320 = vmatprep.subr.bf16.mxu1 %v4258_v8  ;;  %v4875_v7 = vld [vmem:[#allocation11 + $0x68] ss:$16 sps:$4 sm:$0xff]  }
  0xf8   :  { %v4328_v8 = vld [vmem:[#allocation16 + $0x228] ss:$16 sps:$4 sm:$0xff]  }
  0xf9   :  { %2248 = vmatpush2.bf16.msra.mxu0 %v4253_v11  ;;  %v4333_v11 = vld [vmem:[#allocation16 + $0xc] ss:$16 sps:$4 sm:$0xff]  }
  0xfa   :  { %2321 = vmatpush2.bf16.msra.mxu1 %v4256_v12  ;;  %2249 = vmatprep.subr.bf16.mxu0 %v4261_v13  ;;  %v4336_v12 = vld [vmem:[#allocation16 + $0x20c] ss:$16 sps:$4 sm:$0xff]   ;;  %v4331_v13 = vld [vmem:[#allocation16 + $0x8] ss:$16 sps:$4 sm:$0xff]  }
  0xfb   :  { %2322 = vmatprep.subr.bf16.mxu1 %v4264_v14  ;;  %v4334_v14 = vld [vmem:[#allocation16 + $0x208] ss:$16 sps:$4 sm:$0xff]  }
  0xfd   :  { %2250 = vmatpush2.bf16.msra.mxu0 %v4259_v15  ;;  %v4339_v15 = vld [vmem:[#allocation16 + $0x1ec] ss:$16 sps:$4 sm:$0xff]  }
  0xfe   :  { %2323 = vmatpush2.bf16.msra.mxu1 %v4262_v16  ;;  %2251 = vmatprep.subr.bf16.mxu0 %v4267_v17  ;;  %v4342_v16 = vld [vmem:[#allocation16 + $0x3ec] ss:$16 sps:$4 sm:$0xff]   ;;  %v4337_v17 = vld [vmem:[#allocation16 + $0x1e8] ss:$16 sps:$4 sm:$0xff]  }
  0xff   :  { %2324 = vmatprep.subr.bf16.mxu1 %v4270_v18  ;;  %v4340_v18 = vld [vmem:[#allocation16 + $0x3e8] ss:$16 sps:$4 sm:$0xff]  }
 0x101   :  { %2252 = vmatpush2.bf16.msra.mxu0 %v4265_v19  ;;  %v4351_v19 = vld [vmem:[#allocation16 + $0x1cc] ss:$16 sps:$4 sm:$0xff]  }
 0x102   :  { %2325 = vmatpush2.bf16.msra.mxu1 %v4268_v23  ;;  %2253 = vmatprep.subr.bf16.mxu0 %v4273_v24  ;;  %v4354_v23 = vld [vmem:[#allocation16 + $0x3cc] ss:$16 sps:$4 sm:$0xff]   ;;  %v4349_v24 = vld [vmem:[#allocation16 + $0x1c8] ss:$16 sps:$4 sm:$0xff]  }
 0x103   :  { %2326 = vmatprep.subr.bf16.mxu1 %v4276_v25  ;;  %v4352_v25 = vld [vmem:[#allocation16 + $0x3c8] ss:$16 sps:$4 sm:$0xff]  }
 0x105   :  { %2254 = vmatpush2.bf16.msra.mxu0 %v4271_v27  ;;  %v4357_v27 = vld [vmem:[#allocation16 + $0x1ac] ss:$16 sps:$4 sm:$0xff]  }
 0x106   :  { %2327 = vmatpush2.bf16.msra.mxu1 %v4274_v28  ;;  %2255 = vmatprep.subr.bf16.mxu0 %v4279_v29  ;;  %v4360_v28 = vld [vmem:[#allocation16 + $0x3ac] ss:$16 sps:$4 sm:$0xff]  }
 0x107   :  { %2328 = vmatprep.subr.bf16.mxu1 %v4282_v30  ;;  %v4369_v29 = vld [vmem:[#allocation16 + $0x18c] ss:$16 sps:$4 sm:$0xff]  }
 0x108   :  { %v4372_v30 = vld [vmem:[#allocation16 + $0x38c] ss:$16 sps:$4 sm:$0xff]  }
 0x109   :  { %2256 = vmatpush2.bf16.msra.mxu0 %v4277_v31  ;;  %v4367_v31 = vld [vmem:[#allocation16 + $0x188] ss:$16 sps:$4 sm:$0xff]  }
 0x10a   :  { %2329 = vmatpush2.bf16.msra.mxu1 %v4280_v35  ;;  %2371 = vmatprep.subr.bf16.mxu0 %v4291_v36  ;;  %v4370_v35 = vld [vmem:[#allocation16 + $0x388] ss:$16 sps:$4 sm:$0xff]   ;;  %v4375_v36 = vld [vmem:[#allocation16 + $0x16c] ss:$16 sps:$4 sm:$0xff]  }
 0x10b   :  { %2444 = vmatprep.subr.bf16.mxu1 %v4294_v37  ;;  %v4378_v37 = vld [vmem:[#allocation16 + $0x36c] ss:$16 sps:$4 sm:$0xff]  }
 0x10c   :  { %2258 = vmatmul.mubr.bf16.vlgmr.msra.gmra.mxu0 %v4837_v39 }
 0x10d   :  { %2331 = vmatmul.mubr.bf16.vlgmr.msra.gmra.mxu1 %v4839_v40  ;;  %2372 = vmatpush1.bf16.msra.mxu0 %v4289_v41  ;;  %v4373_v41 = vld [vmem:[#allocation16 + $0x168] ss:$16 sps:$4 sm:$0xff]  }
 0x10e   :  { %2445 = vmatpush1.bf16.msra.mxu1 %v4292_v42  ;;  %2373 = vmatprep.subr.bf16.mxu0 %v4297_v43  ;;  %v4376_v42 = vld [vmem:[#allocation16 + $0x368] ss:$16 sps:$4 sm:$0xff]   ;;  %v4387_v43 = vld [vmem:[#allocation16 + $0x14c] ss:$16 sps:$4 sm:$0xff]  }
 0x10f   :  { %2446 = vmatprep.subr.bf16.mxu1 %v4300_v47  ;;  %2267 = vmatprep.mubr.bf16.mxu0 %v4841_v9  ;;  %v4390_v47 = vld [vmem:[#allocation16 + $0x34c] ss:$16 sps:$4 sm:$0xff]  }
 0x110   :  { %2340 = vmatprep.mubr.bf16.mxu1 %v4844_v10 }
 0x111   :  { %2374 = vmatpush1.bf16.msra.mxu0 %v4295_v48  ;;  %v4385_v48 = vld [vmem:[#allocation16 + $0x148] ss:$16 sps:$4 sm:$0xff]  }
 0x112   :  { %2447 = vmatpush1.bf16.msra.mxu1 %v4298_v49  ;;  %2375 = vmatprep.subr.bf16.mxu0 %v4303_v20  ;;  %v275_v49 = vlaneseq  ;;  %v4388_v20 = vld [vmem:[#allocation16 + $0x348] ss:$16 sps:$4 sm:$0xff]  }
 0x113   :  { %2448 = vmatprep.subr.bf16.mxu1 %v4306_v22  ;;  %v4393_v22 = vld [vmem:[#allocation16 + $0x12c] ss:$16 sps:$4 sm:$0xff]  }
 0x114   :  { %2268 = vmatmul.mubr.bf16.gmra.mxu0 %v4848_v52 }
 0x115   :  { %2376 = vmatpush1.bf16.msra.mxu0 %v4301_v54  ;;  %2341 = vmatmul.mubr.bf16.gmra.mxu1 %v4851_v21  ;;  %v4396_v54 = vld [vmem:[#allocation16 + $0x32c] ss:$16 sps:$4 sm:$0xff]  }
 0x116   :  { %2449 = vmatpush1.bf16.msra.mxu1 %v4304_v55  ;;  %2377 = vmatprep.subr.bf16.mxu0 %v4309_v26  ;;  %v4391_v55 = vld [vmem:[#allocation16 + $0x128] ss:$16 sps:$4 sm:$0xff]   ;;  %v4882_v26 = vshrl.u32 %v275_v49, 7 }
 0x117   :  { %2450 = vmatprep.subr.bf16.mxu1 %v4312_v56  ;;  %2277 = vmatprep.mubr.bf16.mxu0 %v4853_v32  ;;  %v4394_v56 = vld [vmem:[#allocation16 + $0x328] ss:$16 sps:$4 sm:$0xff]  }
 0x118   :  { %2350 = vmatprep.mubr.bf16.mxu1 %v4856_v34 }
 0x119   :  { %2378 = vmatpush1.bf16.msra.mxu0 %v4307_v57  ;;  %v4399_v57 = vld [vmem:[#allocation16 + $0x10c] ss:$16 sps:$4 sm:$0xff]  }
 0x11a   :  { %2451 = vmatpush1.bf16.msra.mxu1 %v4310_v58  ;;  %2379 = vmatprep.subr.bf16.mxu0 %v4315_v33  ;;  %v4402_v58 = vld [vmem:[#allocation16 + $0x30c] ss:$16 sps:$4 sm:$0xff]   ;;  %v4397_v33 = vld [vmem:[#allocation16 + $0x108] ss:$16 sps:$4 sm:$0xff]  }
 0x11b   :  { %2452 = vmatprep.subr.bf16.mxu1 %v4318_v59  ;;  %v277_v59 = vsub.s32 0, %v4882_v26 }
 0x11c   :  { %2278 = vmatmul.mubr.bf16.gmra.mxu0 %v4860_v51 }
 0x11d   :  { %2380 = vmatpush1.bf16.msra.mxu0 %v4313_v44  ;;  %2351 = vmatmul.mubr.bf16.gmra.mxu1 %v4863_v46  ;;  %v4400_v44 = vld [vmem:[#allocation16 + $0x308] ss:$16 sps:$4 sm:$0xff]  }
 0x11e   :  { %2453 = vmatpush1.bf16.msra.mxu1 %v4316_v61  ;;  %2381 = vmatprep.subr.bf16.mxu0 %v4321_v62  ;;  %v4888_v61 = vld [vmem:[%s5585_s4] sm:$0xf]  ;;  %v281_v62 = vsub.s32 1, %v4882_v26 }
 0x11f   :  { %2454 = vmatprep.subr.bf16.mxu1 %v4324_v45  ;;  %2287 = vmatprep.mubr.bf16.mxu0 %v4865_v63  ;;  %v4894_v45 = vrot.slane %v4888_v61, %v277_v59 }
 0x120   :  { %2360 = vmatprep.mubr.bf16.mxu1 %v4868_v0 }
 0x121   :  { %2382 = vmatpush1.bf16.msra.mxu0 %v4319_v50  ;;  %v4899_v50 = vrot.slane %v4888_v61, %v281_v62 }
 0x122   :  { %2455 = vmatpush1.bf16.msra.mxu1 %v4322_v53  ;;  %2383 = vmatprep.subr.bf16.mxu0 %v4327_v3 }
 0x123   :  { %2456 = vmatprep.subr.bf16.mxu1 %v4330_v4 }
 0x124   :  { %2288 = vmatmul.mubr.bf16.gmra.mxu0 %v4872_v5 }
 0x125   :  { %2384 = vmatpush1.bf16.msra.mxu0 %v4325_v6  ;;  %2361 = vmatmul.mubr.bf16.gmra.mxu1 %v4875_v7 }
 0x126   :  { %2457 = vmatpush1.bf16.msra.mxu1 %v4328_v8  ;;  %2385 = vmatprep.subr.bf16.mxu0 %v4333_v11 }
 0x127   :  { %2458 = vmatprep.subr.bf16.mxu1 %v4336_v12  ;;  %2403 = vmatprep.mubr.bf16.mxu0 %v4829_v60  ;;  %v4355_v60 = vld [vmem:[#allocation16 + $0x1a8] ss:$16 sps:$4 sm:$0xff]  }
 0x128   :  { %2476 = vmatprep.mubr.bf16.mxu1 %v4832_v38  ;;  %v4358_v38 = vld [vmem:[#allocation16 + $0x3a8] ss:$16 sps:$4 sm:$0xff]  }
 0x129   :  { %2386 = vmatpush1.bf16.msra.mxu0 %v4331_v13 }
 0x12a   :  { %2459 = vmatpush1.bf16.msra.mxu1 %v4334_v14  ;;  %2387 = vmatprep.subr.bf16.mxu0 %v4339_v15 }
 0x12b   :  { %2460 = vmatprep.subr.bf16.mxu1 %v4342_v16 }
 0x12d   :  { %2388 = vmatpush2.bf16.msra.mxu0 %v4337_v17 }
 0x12e   :  { %2461 = vmatpush2.bf16.msra.mxu1 %v4340_v18  ;;  %2389 = vmatprep.subr.bf16.mxu0 %v4351_v19 }
 0x12f   :  { %2462 = vmatprep.subr.bf16.mxu1 %v4354_v23 }
 0x131   :  { %2390 = vmatpush2.bf16.msra.mxu0 %v4349_v24 }
 0x132   :  { %2463 = vmatpush2.bf16.msra.mxu1 %v4352_v25  ;;  %2391 = vmatprep.subr.bf16.mxu0 %v4357_v27 }
 0x133   :  { %2464 = vmatprep.subr.bf16.mxu1 %v4360_v28 }
 0x135   :  { %2392 = vmatpush2.bf16.msra.mxu0 %v4355_v60 }
 0x136   :  { %2465 = vmatpush2.bf16.msra.mxu1 %v4358_v38  ;;  %2393 = vmatprep.subr.bf16.mxu0 %v4369_v29 }
 0x137   :  { %2466 = vmatprep.subr.bf16.mxu1 %v4372_v30 }
 0x139   :  { %2394 = vmatpush2.bf16.msra.mxu0 %v4367_v31 }
 0x13a   :  { %2467 = vmatpush2.bf16.msra.mxu1 %v4370_v35  ;;  %2395 = vmatprep.subr.bf16.mxu0 %v4375_v36 }
 0x13b   :  { %2468 = vmatprep.subr.bf16.mxu1 %v4378_v37 }
 0x13d   :  { %2396 = vmatpush2.bf16.msra.mxu0 %v4373_v41 }
 0x13e   :  { %2469 = vmatpush2.bf16.msra.mxu1 %v4376_v42  ;;  %2397 = vmatprep.subr.bf16.mxu0 %v4387_v43 }
 0x13f   :  { %2470 = vmatprep.subr.bf16.mxu1 %v4390_v47 }
 0x141   :  { %2398 = vmatpush2.bf16.msra.mxu0 %v4385_v48 }
 0x142   :  { %2471 = vmatpush2.bf16.msra.mxu1 %v4388_v20  ;;  %2399 = vmatprep.subr.bf16.mxu0 %v4393_v22 }
 0x143   :  { %2472 = vmatprep.subr.bf16.mxu1 %v4396_v54 }
 0x145   :  { %2400 = vmatpush2.bf16.msra.mxu0 %v4391_v55 }
 0x146   :  { %2473 = vmatpush2.bf16.msra.mxu1 %v4394_v56  ;;  %2401 = vmatprep.subr.bf16.mxu0 %v4399_v57 }
 0x147   :  { %2474 = vmatprep.subr.bf16.mxu1 %v4402_v58 }
 0x149   :  { %2402 = vmatpush2.bf16.msra.mxu0 %v4397_v33 }
 0x14a   :  { %2475 = vmatpush2.bf16.msra.mxu1 %v4400_v44 }
 0x14c   :  { %v1049_v53 = vpop.f32.mrf.mxu0  ;;  %2404 = vmatmul.mubr.bf16.vlgmr.msra.gmra.mxu0 %v4837_v39 }
 0x14d   :  { %v1050_v3 = vadd.f32 %v1049_v53, %v4894_v45  ;;  %v1122_v4 = vpop.f32.mrf.mxu1  ;;  %2477 = vmatmul.mubr.bf16.vlgmr.msra.gmra.mxu1 %v4839_v40  ;;  %2413 = vmatprep.mubr.bf16.mxu0 %v4841_v9 }
 0x14e   :  { %v1051_v6 = vpop.f32.mrf.mxu0  ;;  %2486 = vmatprep.mubr.bf16.mxu1 %v4844_v10 }
 0x14f   :  { %v1123_v8 = vadd.f32 %v1122_v4, %v1050_v3  ;;  %v1052_v11 = vadd.f32 %v1051_v6, %v4899_v50  ;;  %v1124_v12 = vpop.f32.mrf.mxu1 }
 0x150   :  { %v1053_v13 = vpop.f32.mrf.mxu0 }
 0x151   :  { %1307 = vst [vmem:[#allocation2] sm:$0xff] %v1123_v8  ;;  %v1125_v14 = vadd.f32 %v1124_v12, %v1052_v11  ;;  %v1054_v15 = vadd.f32 %v1053_v13, %v4894_v45  ;;  %v1126_v39 = vpop.f32.mrf.mxu1 }
 0x152   :  { %v1055_v16 = vpop.f32.mrf.mxu0 }
 0x153   :  { %1308 = vst [vmem:[#allocation2 + $0x8] sm:$0xff] %v1125_v14  ;;  %v1127_v17 = vadd.f32 %v1126_v39, %v1054_v15  ;;  %v1056_v40 = vadd.f32 %v1055_v16, %v4899_v50  ;;  %v1128_v18 = vpop.f32.mrf.mxu1  ;;  %v285_v15 = vsub.s32 2, %v4882_v26  ;;  %v289_v39 = vsub.s32 3, %v4882_v26 }
 0x154   :  { %2414 = vmatmul.mubr.bf16.gmra.mxu0 %v4848_v52  ;;  %v1059_v9 = vpop.f32.mrf.mxu0 }
 0x155   :  { %1311 = vst [vmem:[#allocation2 + $0x20] sm:$0xff] %v1127_v17  ;;  %v1129_v10 = vadd.f32 %v1128_v18, %v1056_v40  ;;  %2487 = vmatmul.mubr.bf16.gmra.mxu1 %v4851_v21  ;;  %2423 = vmatprep.mubr.bf16.mxu0 %v4853_v32  ;;  %v1060_v19 = vadd.f32 %v1059_v9, %v4894_v45  ;;  %v1132_v25 = vpop.f32.mrf.mxu1 }
 0x156   :  { %2496 = vmatprep.mubr.bf16.mxu1 %v4856_v34  ;;  %v1061_v23 = vpop.f32.mrf.mxu0 }
 0x157   :  { %1312 = vst [vmem:[#allocation2 + $0x28] sm:$0xff] %v1129_v10  ;;  %v1062_v24 = vadd.f32 %v1061_v23, %v4899_v50  ;;  %v1133_v27 = vadd.f32 %v1132_v25, %v1060_v19  ;;  %v1134_v60 = vpop.f32.mrf.mxu1 }
 0x158   :  { %v1063_v28 = vpop.f32.mrf.mxu0 }
 0x159   :  { %v1064_v52 = vadd.f32 %v1063_v28, %v4894_v45  ;;  %1315 = vst [vmem:[#allocation2 + $0x40] sm:$0xff] %v1133_v27  ;;  %v1135_v38 = vadd.f32 %v1134_v60, %v1062_v24  ;;  %v1136_v32 = vpop.f32.mrf.mxu1 }
 0x15a   :  { %v1065_v29 = vpop.f32.mrf.mxu0 }
 0x15b   :  { %v1066_v21 = vadd.f32 %v1065_v29, %v4899_v50  ;;  %1316 = vst [vmem:[#allocation2 + $0x48] sm:$0xff] %v1135_v38  ;;  %v1137_v34 = vadd.f32 %v1136_v32, %v1064_v52  ;;  %v1138_v35 = vpop.f32.mrf.mxu1 }
 0x15c   :  { %2424 = vmatmul.mubr.bf16.gmra.mxu0 %v4860_v51  ;;  %v1069_v30 = vpop.f32.mrf.mxu0 }
 0x15d   :  { %2497 = vmatmul.mubr.bf16.gmra.mxu1 %v4863_v46  ;;  %2433 = vmatprep.mubr.bf16.mxu0 %v4865_v63  ;;  %v1070_v31 = vadd.f32 %v1069_v30, %v4894_v45  ;;  %1319 = vst [vmem:[#allocation2 + $0x60] sm:$0xff] %v1137_v34  ;;  %v1139_v36 = vadd.f32 %v1138_v35, %v1066_v21  ;;  %v1142_v42 = vpop.f32.mrf.mxu1 }
 0x15e   :  { %2506 = vmatprep.mubr.bf16.mxu1 %v4868_v0  ;;  %v1071_v37 = vpop.f32.mrf.mxu0 }
 0x15f   :  { %v1072_v41 = vadd.f32 %v1071_v37, %v4899_v50  ;;  %1320 = vst [vmem:[#allocation2 + $0x68] sm:$0xff] %v1139_v36  ;;  %v1143_v51 = vadd.f32 %v1142_v42, %v1070_v31  ;;  %v1144_v48 = vpop.f32.mrf.mxu1 }
 0x160   :  { %v1073_v43 = vpop.f32.mrf.mxu0 }
 0x161   :  { %v1074_v47 = vadd.f32 %v1073_v43, %v4894_v45  ;;  %1323 = vst [vmem:[#allocation2 + $0x80] sm:$0xff] %v1143_v51  ;;  %v1145_v46 = vadd.f32 %v1144_v48, %v1072_v41  ;;  %v1146_v22 = vpop.f32.mrf.mxu1 }
 0x162   :  { %v1075_v63 = vpop.f32.mrf.mxu0 }
 0x163   :  { %v1076_v20 = vadd.f32 %v1075_v63, %v4899_v50  ;;  %1324 = vst [vmem:[#allocation2 + $0x88] sm:$0xff] %v1145_v46  ;;  %v1147_v0 = vadd.f32 %v1146_v22, %v1074_v47  ;;  %v1148_v56 = vpop.f32.mrf.mxu1 }
 0x164   :  { %2434 = vmatmul.mubr.bf16.gmra.mxu0 %v4872_v5  ;;  %v1079_v54 = vpop.f32.mrf.mxu0 }
 0x165   :  { %2507 = vmatmul.mubr.bf16.gmra.mxu1 %v4875_v7  ;;  %v1080_v55 = vadd.f32 %v1079_v54, %v4894_v45  ;;  %1327 = vst [vmem:[#allocation2 + $0xa0] sm:$0xff] %v1147_v0  ;;  %v1149_v57 = vadd.f32 %v1148_v56, %v1076_v20 }
 0x166   :  { %v1081_v58 = vpop.f32.mrf.mxu0 }
 0x167   :  { %v1082_v33 = vadd.f32 %v1081_v58, %v4899_v50  ;;  %v1152_v44 = vpop.f32.mrf.mxu1  ;;  %1328 = vst [vmem:[#allocation2 + $0xa8] sm:$0xff] %v1149_v57 }
 0x168   :  { %v1153_v53 = vadd.f32 %v1152_v44, %v1080_v55  ;;  %v1083_v3 = vpop.f32.mrf.mxu0 }
 0x169   :  { %v1084_v4 = vadd.f32 %v1083_v3, %v4894_v45  ;;  %v1154_v5 = vpop.f32.mrf.mxu1  ;;  %v4936_v45 = vrot.slane %v4888_v61, %v285_v15 }
 0x16a   :  { %1331 = vst [vmem:[#allocation2 + $0xc0] sm:$0xff] %v1153_v53  ;;  %v1155_v6 = vadd.f32 %v1154_v5, %v1082_v33  ;;  %v1085_v8 = vpop.f32.mrf.mxu0 }
 0x16b   :  { %v1086_v7 = vadd.f32 %v1085_v8, %v4899_v50  ;;  %v1156_v11 = vpop.f32.mrf.mxu1  ;;  %v4941_v50 = vrot.slane %v4888_v61, %v289_v39 }
 0x16c   :  { %1332 = vst [vmem:[#allocation2 + $0xc8] sm:$0xff] %v1155_v6  ;;  %v1157_v12 = vadd.f32 %v1156_v11, %v1084_v4 }
 0x16d   :  { %v1158_v13 = vpop.f32.mrf.mxu1 }
 0x16e   :  { %1335 = vst [vmem:[#allocation2 + $0xe0] sm:$0xff] %v1157_v12  ;;  %v1159_v14 = vadd.f32 %v1158_v13, %v1086_v7 }
 0x170   :  { %1336 = vst [vmem:[#allocation2 + $0xe8] sm:$0xff] %v1159_v14 }
 0x18c   :  { %v1195_v16 = vpop.f32.mrf.mxu0 }
 0x18d   :  { %v1196_v17 = vadd.f32 %v1195_v16, %v4936_v45  ;;  %v1268_v40 = vpop.f32.mrf.mxu1 }
 0x18e   :  { %v1197_v18 = vpop.f32.mrf.mxu0 }
 0x18f   :  { %v1269_v9 = vadd.f32 %v1268_v40, %v1196_v17  ;;  %v1198_v10 = vadd.f32 %v1197_v18, %v4941_v50  ;;  %v1270_v19 = vpop.f32.mrf.mxu1  ;;  %v4958_v17 = vand.u32 127, %v275_v49  ;;  %v4965_v49 = vld [vmem:[%s5588_s7] sm:$0xf]  ;;  %s5019_s7 = smov 0  }
 0x190   :  { %v1199_v23 = vpop.f32.mrf.mxu0 }
 0x191   :  { %1309 = vst [vmem:[#allocation2 + $0x10] sm:$0xff] %v1269_v9  ;;  %v1271_v24 = vadd.f32 %v1270_v19, %v1198_v10  ;;  %v1200_v25 = vadd.f32 %v1199_v23, %v4936_v45  ;;  %v1272_v27 = vpop.f32.mrf.mxu1  ;;  %5666 = vst [vmem:[#allocation30_spill] sm:$0xff] %v4958_v17 }
 0x192   :  { %v1201_v28 = vpop.f32.mrf.mxu0 }
 0x193   :  { %1310 = vst [vmem:[#allocation2 + $0x18] sm:$0xff] %v1271_v24  ;;  %v1273_v52 = vadd.f32 %v1272_v27, %v1200_v25  ;;  %v1202_v61 = vadd.f32 %v1201_v28, %v4941_v50  ;;  %v1274_v60 = vpop.f32.mrf.mxu1  ;;  %v4975_v28 = vrot.slane %v4965_v49, %v281_v62 }
 0x194   :  { %v1205_v38 = vpop.f32.mrf.mxu0 }
 0x195   :  { %1313 = vst [vmem:[#allocation2 + $0x30] sm:$0xff] %v1273_v52  ;;  %v1275_v29 = vadd.f32 %v1274_v60, %v1202_v61  ;;  %v1206_v21 = vadd.f32 %v1205_v38, %v4936_v45  ;;  %v1278_v32 = vpop.f32.mrf.mxu1 }
 0x196   :  { %v1207_v34 = vpop.f32.mrf.mxu0 }
 0x197   :  { %1314 = vst [vmem:[#allocation2 + $0x38] sm:$0xff] %v1275_v29  ;;  %v1208_v30 = vadd.f32 %v1207_v34, %v4941_v50  ;;  %v1279_v31 = vadd.f32 %v1278_v32, %v1206_v21  ;;  %v1280_v35 = vpop.f32.mrf.mxu1 }
 0x198   :  { %v1209_v36 = vpop.f32.mrf.mxu0 }
 0x199   :  { %1317 = vst [vmem:[#allocation2 + $0x50] sm:$0xff] %v1279_v31  ;;  %v1210_v37 = vadd.f32 %v1209_v36, %v4936_v45  ;;  %v1281_v41 = vadd.f32 %v1280_v35, %v1208_v30  ;;  %v1282_v42 = vpop.f32.mrf.mxu1 }
 0x19a   :  { %v1211_v51 = vpop.f32.mrf.mxu0 }
 0x19b   :  { %1318 = vst [vmem:[#allocation2 + $0x58] sm:$0xff] %v1281_v41  ;;  %v1212_v43 = vadd.f32 %v1211_v51, %v4941_v50  ;;  %v1283_v47 = vadd.f32 %v1282_v42, %v1210_v37  ;;  %v1284_v48 = vpop.f32.mrf.mxu1 }
 0x19c   :  { %v1215_v46 = vpop.f32.mrf.mxu0 }
 0x19d   :  { %1321 = vst [vmem:[#allocation2 + $0x70] sm:$0xff] %v1283_v47  ;;  %v1216_v63 = vadd.f32 %v1215_v46, %v4936_v45  ;;  %v1285_v20 = vadd.f32 %v1284_v48, %v1212_v43  ;;  %v1288_v22 = vpop.f32.mrf.mxu1 }
 0x19e   :  { %v1217_v0 = vpop.f32.mrf.mxu0 }
 0x19f   :  { %1322 = vst [vmem:[#allocation2 + $0x78] sm:$0xff] %v1285_v20  ;;  %v1218_v54 = vadd.f32 %v1217_v0, %v4941_v50  ;;  %v1289_v55 = vadd.f32 %v1288_v22, %v1216_v63  ;;  %v1290_v56 = vpop.f32.mrf.mxu1 }
 0x1a0   :  { %v1219_v57 = vpop.f32.mrf.mxu0 }
 0x1a1   :  { %1325 = vst [vmem:[#allocation2 + $0x90] sm:$0xff] %v1289_v55  ;;  %v1220_v58 = vadd.f32 %v1219_v57, %v4936_v45  ;;  %v1291_v33 = vadd.f32 %v1290_v56, %v1218_v54  ;;  %v1292_v44 = vpop.f32.mrf.mxu1 }
 0x1a2   :  { %v1221_v53 = vpop.f32.mrf.mxu0 }
 0x1a3   :  { %1326 = vst [vmem:[#allocation2 + $0x98] sm:$0xff] %v1291_v33  ;;  %v1222_v3 = vadd.f32 %v1221_v53, %v4941_v50  ;;  %v1293_v4 = vadd.f32 %v1292_v44, %v1220_v58  ;;  %v1294_v5 = vpop.f32.mrf.mxu1 }
 0x1a4   :  { %v1225_v6 = vpop.f32.mrf.mxu0 }
 0x1a5   :  { %1329 = vst [vmem:[#allocation2 + $0xb0] sm:$0xff] %v1293_v4  ;;  %v1226_v8 = vadd.f32 %v1225_v6, %v4936_v45  ;;  %v1295_v7 = vadd.f32 %v1294_v5, %v1222_v3  ;;  %v1298_v11 = vpop.f32.mrf.mxu1 }
 0x1a6   :  { %v1227_v12 = vpop.f32.mrf.mxu0 }
 0x1a7   :  { %1330 = vst [vmem:[#allocation2 + $0xb8] sm:$0xff] %v1295_v7  ;;  %v1228_v13 = vadd.f32 %v1227_v12, %v4941_v50  ;;  %v1299_v14 = vadd.f32 %v1298_v11, %v1226_v8  ;;  %v1300_v16 = vpop.f32.mrf.mxu1 }
 0x1a8   :  { %v1229_v40 = vpop.f32.mrf.mxu0 }
 0x1a9   :  { %1333 = vst [vmem:[#allocation2 + $0xd0] sm:$0xff] %v1299_v14  ;;  %v1230_v18 = vadd.f32 %v1229_v40, %v4936_v45  ;;  %v1301_v9 = vadd.f32 %v1300_v16, %v1228_v13  ;;  %v1302_v10 = vpop.f32.mrf.mxu1  ;;  %v4970_v45 = vrot.slane %v4965_v49, %v277_v59 }
 0x1aa   :  { %v1231_v19 = vpop.f32.mrf.mxu0 }
 0x1ab   :  { %1334 = vst [vmem:[#allocation2 + $0xd8] sm:$0xff] %v1301_v9  ;;  %v1232_v23 = vadd.f32 %v1231_v19, %v4941_v50  ;;  %v1303_v24 = vadd.f32 %v1302_v10, %v1230_v18  ;;  %v1304_v25 = vpop.f32.mrf.mxu1 }
 0x1ad   :  { %1337 = vst [vmem:[#allocation2 + $0xf0] sm:$0xff] %v1303_v24  ;;  %v1305_v27 = vadd.f32 %v1304_v25, %v1232_v23 }
 0x1af   :  { %1338 = vst [vmem:[#allocation2 + $0xf8] sm:$0xff] %v1305_v27 }
 0x1cc   :  { %v2259_v50 = vpop.f32.mrf.mxu0 }
 0x1cd   :  { %v2260_v52 = vadd.f32 %v2259_v50, %v4970_v45  ;;  %v2332_v61 = vpop.f32.mrf.mxu1 }
 0x1ce   :  { %v2261_v60 = vpop.f32.mrf.mxu0 }
 0x1cf   :  { %v2333_v38 = vadd.f32 %v2332_v61, %v2260_v52  ;;  %v2262_v29 = vadd.f32 %v2261_v60, %v4975_v28  ;;  %v2334_v21 = vpop.f32.mrf.mxu1 }
 0x1d0   :  { %v2263_v32 = vpop.f32.mrf.mxu0 }
 0x1d1   :  { %2517 = vst [vmem:[#allocation3] sm:$0xff] %v2333_v38  ;;  %v2335_v34 = vadd.f32 %v2334_v21, %v2262_v29  ;;  %v2264_v59 = vadd.f32 %v2263_v32, %v4970_v45  ;;  %v2336_v30 = vpop.f32.mrf.mxu1 }
 0x1d2   :  { %v2265_v31 = vpop.f32.mrf.mxu0 }
 0x1d3   :  { %2518 = vst [vmem:[#allocation3 + $0x8] sm:$0xff] %v2335_v34  ;;  %v2337_v35 = vadd.f32 %v2336_v30, %v2264_v59  ;;  %v2266_v62 = vadd.f32 %v2265_v31, %v4975_v28  ;;  %v2338_v36 = vpop.f32.mrf.mxu1  ;;  %v4996_v59 = vrot.slane %v4965_v49, %v285_v15 }
 0x1d4   :  { %v2269_v37 = vpop.f32.mrf.mxu0 }
 0x1d5   :  { %2521 = vst [vmem:[#allocation3 + $0x20] sm:$0xff] %v2337_v35  ;;  %v2339_v41 = vadd.f32 %v2338_v36, %v2266_v62  ;;  %v2270_v42 = vadd.f32 %v2269_v37, %v4970_v45  ;;  %v2342_v51 = vpop.f32.mrf.mxu1 }
 0x1d6   :  { %v2271_v43 = vpop.f32.mrf.mxu0 }
 0x1d7   :  { %2522 = vst [vmem:[#allocation3 + $0x28] sm:$0xff] %v2339_v41  ;;  %v2272_v47 = vadd.f32 %v2271_v43, %v4975_v28  ;;  %v2343_v48 = vadd.f32 %v2342_v51, %v2270_v42  ;;  %v2344_v46 = vpop.f32.mrf.mxu1 }
 0x1d8   :  { %v2273_v63 = vpop.f32.mrf.mxu0 }
 0x1d9   :  { %2525 = vst [vmem:[#allocation3 + $0x40] sm:$0xff] %v2343_v48  ;;  %v2274_v20 = vadd.f32 %v2273_v63, %v4970_v45  ;;  %v2345_v22 = vadd.f32 %v2344_v46, %v2272_v47  ;;  %v2346_v0 = vpop.f32.mrf.mxu1 }
 0x1da   :  { %v2275_v54 = vpop.f32.mrf.mxu0 }
 0x1db   :  { %2526 = vst [vmem:[#allocation3 + $0x48] sm:$0xff] %v2345_v22  ;;  %v2276_v55 = vadd.f32 %v2275_v54, %v4975_v28  ;;  %v2347_v56 = vadd.f32 %v2346_v0, %v2274_v20  ;;  %v2348_v57 = vpop.f32.mrf.mxu1 }
 0x1dc   :  { %v2279_v58 = vpop.f32.mrf.mxu0 }
 0x1dd   :  { %2529 = vst [vmem:[#allocation3 + $0x60] sm:$0xff] %v2347_v56  ;;  %v2280_v33 = vadd.f32 %v2279_v58, %v4970_v45  ;;  %v2349_v44 = vadd.f32 %v2348_v57, %v2276_v55  ;;  %v2352_v53 = vpop.f32.mrf.mxu1 }
 0x1de   :  { %v2281_v3 = vpop.f32.mrf.mxu0 }
 0x1df   :  { %2530 = vst [vmem:[#allocation3 + $0x68] sm:$0xff] %v2349_v44  ;;  %v2282_v4 = vadd.f32 %v2281_v3, %v4975_v28  ;;  %v2353_v5 = vadd.f32 %v2352_v53, %v2280_v33  ;;  %v2354_v6 = vpop.f32.mrf.mxu1 }
 0x1e0   :  { %v2283_v8 = vpop.f32.mrf.mxu0 }
 0x1e1   :  { %2533 = vst [vmem:[#allocation3 + $0x80] sm:$0xff] %v2353_v5  ;;  %v2284_v7 = vadd.f32 %v2283_v8, %v4970_v45  ;;  %v2355_v11 = vadd.f32 %v2354_v6, %v2282_v4  ;;  %v2356_v12 = vpop.f32.mrf.mxu1 }
 0x1e2   :  { %v2285_v13 = vpop.f32.mrf.mxu0 }
 0x1e3   :  { %2534 = vst [vmem:[#allocation3 + $0x88] sm:$0xff] %v2355_v11  ;;  %v2286_v14 = vadd.f32 %v2285_v13, %v4975_v28  ;;  %v2357_v16 = vadd.f32 %v2356_v12, %v2284_v7  ;;  %v2358_v40 = vpop.f32.mrf.mxu1 }
 0x1e4   :  { %v2289_v18 = vpop.f32.mrf.mxu0 }
 0x1e5   :  { %2537 = vst [vmem:[#allocation3 + $0xa0] sm:$0xff] %v2357_v16  ;;  %v2290_v9 = vadd.f32 %v2289_v18, %v4970_v45  ;;  %v2359_v10 = vadd.f32 %v2358_v40, %v2286_v14  ;;  %v2362_v19 = vpop.f32.mrf.mxu1 }
 0x1e6   :  { %v2291_v23 = vpop.f32.mrf.mxu0 }
 0x1e7   :  { %2538 = vst [vmem:[#allocation3 + $0xa8] sm:$0xff] %v2359_v10  ;;  %v2292_v24 = vadd.f32 %v2291_v23, %v4975_v28  ;;  %v2363_v25 = vadd.f32 %v2362_v19, %v2290_v9  ;;  %v2364_v27 = vpop.f32.mrf.mxu1 }
 0x1e8   :  { %v2293_v50 = vpop.f32.mrf.mxu0 }
 0x1e9   :  { %2541 = vst [vmem:[#allocation3 + $0xc0] sm:$0xff] %v2363_v25  ;;  %v2294_v52 = vadd.f32 %v2293_v50, %v4970_v45  ;;  %v2365_v61 = vadd.f32 %v2364_v27, %v2292_v24  ;;  %v2366_v60 = vpop.f32.mrf.mxu1  ;;  %v5001_v45 = vrot.slane %v4965_v49, %v289_v39 }
 0x1ea   :  { %v2295_v38 = vpop.f32.mrf.mxu0 }
 0x1eb   :  { %2542 = vst [vmem:[#allocation3 + $0xc8] sm:$0xff] %v2365_v61  ;;  %v2296_v29 = vadd.f32 %v2295_v38, %v4975_v28  ;;  %v2367_v21 = vadd.f32 %v2366_v60, %v2294_v52  ;;  %v2368_v32 = vpop.f32.mrf.mxu1 }
 0x1ed   :  { %2545 = vst [vmem:[#allocation3 + $0xe0] sm:$0xff] %v2367_v21  ;;  %v2369_v34 = vadd.f32 %v2368_v32, %v2296_v29 }
 0x1ef   :  { %2546 = vst [vmem:[#allocation3 + $0xe8] sm:$0xff] %v2369_v34 }
 0x20c   :  { %v2405_v30 = vpop.f32.mrf.mxu0 }
 0x20d   :  { %v2406_v31 = vadd.f32 %v2405_v30, %v4996_v59  ;;  %v2478_v35 = vpop.f32.mrf.mxu1 }
 0x20e   :  { %v2407_v28 = vpop.f32.mrf.mxu0 }
 0x20f   :  { %v2479_v62 = vadd.f32 %v2478_v35, %v2406_v31  ;;  %v2408_v36 = vadd.f32 %v2407_v28, %v5001_v45  ;;  %v2480_v37 = vpop.f32.mrf.mxu1 }
 0x210   :  { %v2409_v41 = vpop.f32.mrf.mxu0 }
 0x211   :  { %2519 = vst [vmem:[#allocation3 + $0x10] sm:$0xff] %v2479_v62  ;;  %v2481_v42 = vadd.f32 %v2480_v37, %v2408_v36  ;;  %v2410_v15 = vadd.f32 %v2409_v41, %v4996_v59  ;;  %v2482_v51 = vpop.f32.mrf.mxu1 }
 0x212   :  { %v2411_v43 = vpop.f32.mrf.mxu0 }
 0x213   :  { %2520 = vst [vmem:[#allocation3 + $0x18] sm:$0xff] %v2481_v42  ;;  %v2483_v26 = vadd.f32 %v2482_v51, %v2410_v15  ;;  %v2412_v39 = vadd.f32 %v2411_v43, %v5001_v45  ;;  %v2484_v49 = vpop.f32.mrf.mxu1 }
 0x214   :  { %v2415_v47 = vpop.f32.mrf.mxu0 }
 0x215   :  { %2523 = vst [vmem:[#allocation3 + $0x30] sm:$0xff] %v2483_v26  ;;  %v2485_v48 = vadd.f32 %v2484_v49, %v2412_v39  ;;  %v2416_v46 = vadd.f32 %v2415_v47, %v4996_v59  ;;  %v2488_v63 = vpop.f32.mrf.mxu1 }
 0x216   :  { %v2417_v20 = vpop.f32.mrf.mxu0 }
 0x217   :  { %2524 = vst [vmem:[#allocation3 + $0x38] sm:$0xff] %v2485_v48  ;;  %v2489_v22 = vadd.f32 %v2488_v63, %v2416_v46  ;;  %v2418_v0 = vadd.f32 %v2417_v20, %v5001_v45  ;;  %v2490_v54 = vpop.f32.mrf.mxu1 }
 0x218   :  { %v2419_v55 = vpop.f32.mrf.mxu0 }
 0x219   :  { %2527 = vst [vmem:[#allocation3 + $0x50] sm:$0xff] %v2489_v22  ;;  %v2491_v56 = vadd.f32 %v2490_v54, %v2418_v0  ;;  %v2420_v57 = vadd.f32 %v2419_v55, %v4996_v59  ;;  %v2492_v58 = vpop.f32.mrf.mxu1 }
 0x21a   :  { %v2421_v33 = vpop.f32.mrf.mxu0 }
 0x21b   :  { %2528 = vst [vmem:[#allocation3 + $0x58] sm:$0xff] %v2491_v56  ;;  %v2493_v44 = vadd.f32 %v2492_v58, %v2420_v57  ;;  %v2422_v53 = vadd.f32 %v2421_v33, %v5001_v45  ;;  %v2494_v3 = vpop.f32.mrf.mxu1 }
 0x21c   :  { %v2425_v4 = vpop.f32.mrf.mxu0 }
 0x21d   :  { %2531 = vst [vmem:[#allocation3 + $0x70] sm:$0xff] %v2493_v44  ;;  %v2495_v5 = vadd.f32 %v2494_v3, %v2422_v53  ;;  %v2426_v6 = vadd.f32 %v2425_v4, %v4996_v59  ;;  %v2498_v8 = vpop.f32.mrf.mxu1 }
 0x21e   :  { %v2427_v7 = vpop.f32.mrf.mxu0 }
 0x21f   :  { %2532 = vst [vmem:[#allocation3 + $0x78] sm:$0xff] %v2495_v5  ;;  %v2499_v11 = vadd.f32 %v2498_v8, %v2426_v6  ;;  %v2428_v12 = vadd.f32 %v2427_v7, %v5001_v45  ;;  %v2500_v13 = vpop.f32.mrf.mxu1 }
 0x220   :  { %v2429_v14 = vpop.f32.mrf.mxu0 }
 0x221   :  { %2535 = vst [vmem:[#allocation3 + $0x90] sm:$0xff] %v2499_v11  ;;  %v2501_v16 = vadd.f32 %v2500_v13, %v2428_v12  ;;  %v2430_v40 = vadd.f32 %v2429_v14, %v4996_v59  ;;  %v2502_v18 = vpop.f32.mrf.mxu1 }
 0x222   :  { %v2431_v9 = vpop.f32.mrf.mxu0 }
 0x223   :  { %2536 = vst [vmem:[#allocation3 + $0x98] sm:$0xff] %v2501_v16  ;;  %v2503_v10 = vadd.f32 %v2502_v18, %v2430_v40  ;;  %v2432_v19 = vadd.f32 %v2431_v9, %v5001_v45  ;;  %v2504_v23 = vpop.f32.mrf.mxu1 }
 0x224   :  { %v2435_v24 = vpop.f32.mrf.mxu0 }
 0x225   :  { %2539 = vst [vmem:[#allocation3 + $0xb0] sm:$0xff] %v2503_v10  ;;  %v2505_v25 = vadd.f32 %v2504_v23, %v2432_v19  ;;  %v2436_v27 = vadd.f32 %v2435_v24, %v4996_v59  ;;  %v2508_v50 = vpop.f32.mrf.mxu1 }
 0x226   :  { %v2437_v52 = vpop.f32.mrf.mxu0 }
 0x227   :  { %2540 = vst [vmem:[#allocation3 + $0xb8] sm:$0xff] %v2505_v25  ;;  %v2509_v61 = vadd.f32 %v2508_v50, %v2436_v27  ;;  %v2438_v60 = vadd.f32 %v2437_v52, %v5001_v45  ;;  %v2510_v38 = vpop.f32.mrf.mxu1 }
 0x228   :  { %v2439_v29 = vpop.f32.mrf.mxu0 }
 0x229   :  { %2543 = vst [vmem:[#allocation3 + $0xd0] sm:$0xff] %v2509_v61  ;;  %v2511_v21 = vadd.f32 %v2510_v38, %v2438_v60  ;;  %v2440_v32 = vadd.f32 %v2439_v29, %v4996_v59  ;;  %v2512_v34 = vpop.f32.mrf.mxu1 }
 0x22a   :  { %v2441_v30 = vpop.f32.mrf.mxu0 }
 0x22b   :  { %2544 = vst [vmem:[#allocation3 + $0xd8] sm:$0xff] %v2511_v21  ;;  %v2513_v31 = vadd.f32 %v2512_v34, %v2440_v32  ;;  %v2442_v35 = vadd.f32 %v2441_v30, %v5001_v45  ;;  %v2514_v28 = vpop.f32.mrf.mxu1 }
 0x22d   :  { %2547 = vst [vmem:[#allocation3 + $0xf0] sm:$0xff] %v2513_v31  ;;  %v2515_v62 = vadd.f32 %v2514_v28, %v2442_v35 }
 0x22f   :  { %2548 = vst [vmem:[#allocation3 + $0xf8] sm:$0xff] %v2515_v62 }
 0x230 LB: > { %v5024_v36 = vld [vmem:[#allocation14 + $0x1e8] sm:$0xff]  ;;  %v5026_v59 = vld [vmem:[#allocation14 + $0x1e0] sm:$0xff]  ;;  %v5593_v41 = vmov 0.0   ;;  %v5047_v26 = vld [vmem:[#allocation14 + $0x1f8] sm:$0xff]  ;;  %s3920_s28 = sshll.u32 %s4645_s7, 4  ;;  %s3919_s16 = sshll.u32 %s4645_s7, 1  ;;  %s4645_s7 = sphi %s5019_s7, %s2558_s7  }
 0x231   : > { %v5028_v37 = vld [vmem:[#allocation14 + $0x1c8] sm:$0xff]  ;;  %2636 = vmatprep.subr.mxu0 %v5024_v36  ;;  %v5031_v45 = vld [vmem:[#allocation14 + $0x1c0] sm:$0xff]  ;;  %2700 = vmatprep.mubr.f32.mxu0 %v5593_v41  ;;  %v5053_v49 = vld [vmem:[#allocation14 + $0x1f0] sm:$0xff]  ;;  %s2561_s13 = sshra.s32 %s3920_s28, 3  ;;  %vm3074_vm1 = vcmask 64512   ;;  %s3945_s17 = sadd.s32 8, %s3920_s28 }
 0x232   : > { %2637 = vmatpush1.msra.mxu0 %v5026_v59  ;;  %v5035_v42 = vld [vmem:[#allocation14 + $0x1a8] sm:$0xff]  ;;  %2771 = vmatprep.mubr.f32.mxu1 %v5593_v41  ;;  %v5039_v15 = vld [vmem:[#allocation14 + $0x1a0] sm:$0xff]  ;;  %v5059_v48 = vld [vmem:[#allocation14 + $0x1d8] sm:$0xff]  ;;  %s3942_s14 = sshll.u32 %s2561_s13, 5  ;;  %s3081_s3 = sshra.s32 %s3945_s17, 3 }
 0x233   : > { %2638 = vmatprep.subr.mxu0 %v5028_v37  ;;  %v5042_v51 = vld [vmem:[#allocation14 + $0x188] sm:$0xff]  ;;  %v5045_v43 = vld [vmem:[#allocation14 + $0x180] sm:$0xff]  ;;  %2707 = vmatprep.subr.mxu1 %v5047_v26  ;;  %v5061_v46 = vld [vmem:[#allocation14 + $0x1d0] sm:$0xff]  ;;  %s2565_s1 = scalar_lea.vmem [#allocation2], %s3942_s14  ;;  %s2807_s15 = scalar_lea.vmem [#allocation3], %s3942_s14 }
 0x234   : > { %2639 = vmatpush1.msra.mxu0 %v5031_v45  ;;  %v5050_v39 = vld [vmem:[#allocation14 + $0x168] sm:$0xff]  ;;  %v5056_v47 = vld [vmem:[#allocation14 + $0x160] sm:$0xff]  ;;  %2708 = vmatpush1.msra.mxu1 %v5053_v49  ;;  %v5067_v20 = vld [vmem:[#allocation14 + $0x1b8] sm:$0xff]  ;;  %s3946_s18 = sshll.u32 %s3081_s3, 5  ;;  %s3079_s21 = sadd.s32 1, %s3919_s16 }
 0x235   : > { %2640 = vmatprep.subr.mxu0 %v5035_v42  ;;  %v5064_v63 = vld [vmem:[#allocation14 + $0x148] sm:$0xff]  ;;  %2709 = vmatprep.subr.mxu1 %v5059_v48  ;;  %v5070_v22 = vld [vmem:[#allocation14 + $0x140] sm:$0xff]  ;;  %v5073_v0 = vld [vmem:[#allocation14 + $0x1b0] sm:$0xff]  ;;  %s3085_s19 = scalar_lea.vmem [#allocation2], %s3946_s18  ;;  %s3327_s20 = scalar_lea.vmem [#allocation3], %s3946_s18 }
 0x236   : > { %2641 = vmatpush1.msra.mxu0 %v5039_v15  ;;  %2710 = vmatpush1.msra.mxu1 %v5061_v46  ;;  %v5075_v54 = vld [vmem:[#allocation14 + $0x198] sm:$0xff]  ;;  %v5078_v55 = vld [vmem:[#allocation14 + $0x128] sm:$0xff]  ;;  %v5081_v56 = vld [vmem:[#allocation14 + $0x190] sm:$0xff]  ;;  %s2558_s7 = sadd.s32 1, %s4645_s7  }
 0x237   : > { %2642 = vmatprep.subr.mxu0 %v5042_v51  ;;  %2711 = vmatprep.subr.mxu1 %v5067_v20  ;;  %v5084_v57 = vld [vmem:[#allocation14 + $0x120] sm:$0xff]  ;;  %v5087_v58 = vld [vmem:[#allocation14 + $0x178] sm:$0xff]  ;;  %v5090_v33 = vld [vmem:[#allocation14 + $0x108] sm:$0xff]  ;;  %p2555_p2 = scmp.ge.s32.totalorder %s2558_s7, 4  }
 0x238   : > { %2643 = vmatpush1.msra.mxu0 %v5045_v43  ;;  %2712 = vmatpush1.msra.mxu1 %v5073_v0  ;;  %v5093_v44 = vld [vmem:[#allocation14 + $0x170] sm:$0xff]  ;;  %v5096_v53 = vld [vmem:[#allocation14 + $0x100] sm:$0xff]  ;;  %v5099_v3 = vld [vmem:[#allocation14 + $0x158] sm:$0xff]  ;;  %s4659_s24 = smov (%p2555_p2), [#allocation19]   ;;  %s4660_s0 = smov (%p2555_p2), [#allocation20]  }
 0x239   : > { %2644 = vmatprep.subr.mxu0 %v5050_v39  ;;  %2713 = vmatprep.subr.mxu1 %v5075_v54  ;;  %v5102_v4 = vld [vmem:[#allocation14 + $0xe8] sm:$0xff]  ;;  %v5105_v5 = vld [vmem:[#allocation14 + $0x150] sm:$0xff]  ;;  %v5108_v6 = vld [vmem:[#allocation14 + $0xe0] sm:$0xff]  ;;  %s3592_s25 = sshll.u32 (%p2555_p2), %s4659_s24, 4  ;;  %s3602_s26 = sshll.u32 (%p2555_p2), %s4660_s0, 4  ;;  %s3593_s25 = int_to_ptr.vmem [resolvable:$true] %s3592_s25  ;;  %s3603_s26 = int_to_ptr.vmem [resolvable:$true] %s3602_s26 }
 0x23a   : > { %2645 = vmatpush1.msra.mxu0 %v5056_v47  ;;  %2714 = vmatpush1.msra.mxu1 %v5081_v56  ;;  %v5111_v8 = vld [vmem:[#allocation14 + $0x138] sm:$0xff]  ;;  %v5114_v7 = vld [vmem:[#allocation14 + $0xc8] sm:$0xff]  ;;  %v5117_v11 = vld [vmem:[#allocation14 + $0x130] sm:$0xff]  ;;  %s4587_s29 = scalar_lea.vmem (%p2555_p2), %s3593_s25, 128  ;;  %p4592_p4 = scmp.lt.s32.totalorder (%p2555_p2), %s3593_s25, %s3593_s25 }
 0x23b   : > { %2646 = vmatprep.subr.mxu0 %v5064_v63  ;;  %2715 = vmatprep.subr.mxu1 %v5087_v58  ;;  %v5120_v12 = vld [vmem:[#allocation14 + $0xc0] sm:$0xff]  ;;  %v5123_v13 = vld [vmem:[#allocation14 + $0x118] sm:$0xff]  ;;  %v5126_v14 = vld [vmem:[#allocation14 + $0xa8] sm:$0xff]  ;;  %p4588_p3 = scmp.ne.s32.totalorder (%p2555_p2), %s3593_s25, %s4587_s29  ;;  %p4593_p5 = scmp.lt.s32.totalorder (%p2555_p2), %s4587_s29, %s4587_s29 }
 0x23c   : > { %2647 = vmatpush1.msra.mxu0 %v5070_v22  ;;  %2716 = vmatpush1.msra.mxu1 %v5093_v44  ;;  %v5129_v16 = vld [vmem:[#allocation14 + $0x110] sm:$0xff]  ;;  %v5132_v40 = vld [vmem:[#allocation14 + $0xa0] sm:$0xff]  ;;  %v5135_v18 = vld [vmem:[#allocation14 + $0xf8] sm:$0xff] }
 0x23d   : > { %2648 = vmatprep.subr.mxu0 %v5078_v55  ;;  %2717 = vmatprep.subr.mxu1 %v5099_v3  ;;  %v5138_v9 = vld [vmem:[#allocation14 + $0x88] sm:$0xff]  ;;  %v5141_v10 = vld [vmem:[#allocation14 + $0xf0] sm:$0xff]  ;;  %v5144_v19 = vld [vmem:[#allocation14 + $0x80] sm:$0xff]  ;;  %p4594_p6 = por (%p2555_p2), %p4593_p5, %p4592_p4 }
 0x23e   : > { %2649 = vmatpush1.msra.mxu0 %v5084_v57  ;;  %2718 = vmatpush1.msra.mxu1 %v5105_v5  ;;  %v5147_v23 = vld [vmem:[#allocation14 + $0xd8] sm:$0xff]  ;;  %v5150_v24 = vld [vmem:[#allocation14 + $0x68] sm:$0xff]  ;;  %v5153_v25 = vld [vmem:[#allocation14 + $0xd0] sm:$0xff] }
 0x23f   : > { %2650 = vmatprep.subr.mxu0 %v5090_v33  ;;  %2719 = vmatprep.subr.mxu1 %v5111_v8  ;;  %v5156_v27 = vld [vmem:[#allocation14 + $0x60] sm:$0xff]  ;;  %v5159_v50 = vld [vmem:[#allocation14 + $0xb8] sm:$0xff]  ;;  %v5162_v52 = vld [vmem:[#allocation14 + $0x48] sm:$0xff]  ;;  %p4595_p7 = pnand (%p2555_p2), %p4594_p6, %p4588_p3 }
 0x240   : > { %2651 = vmatpush1.msra.mxu0 %v5096_v53  ;;  %2720 = vmatpush1.msra.mxu1 %v5117_v11  ;;  %v5165_v61 = vld [vmem:[#allocation14 + $0xb0] sm:$0xff]  ;;  %v5168_v60 = vld [vmem:[#allocation14 + $0x40] sm:$0xff]  ;;  %v5171_v38 = vld [vmem:[#allocation14 + $0x98] sm:$0xff] }
 0x241   : > { %2652 = vmatprep.subr.mxu0 %v5102_v4  ;;  %2721 = vmatprep.subr.mxu1 %v5123_v13  ;;  %v5174_v29 = vld [vmem:[#allocation14 + $0x28] sm:$0xff]  ;;  %v5177_v21 = vld [vmem:[#allocation14 + $0x90] sm:$0xff]  ;;  %v5180_v32 = vld [vmem:[#allocation14 + $0x20] sm:$0xff] }
 0x242   : > { %2653 = vmatpush1.msra.mxu0 %v5108_v6  ;;  %2722 = vmatpush1.msra.mxu1 %v5129_v16  ;;  %5667 = vst [vmem:[#allocation31_spill] sm:$0xff] %v5174_v29  ;;  %5668 = vst [vmem:[#allocation32_spill] sm:$0xff] %v5180_v32  ;;  %v5183_v34 = vld [vmem:[#allocation14 + $0x78] sm:$0xff]  ;;  %v5186_v30 = vld [vmem:[#allocation14 + $0x8] sm:$0xff] }
 0x243   : > { %2654 = vmatprep.subr.mxu0 %v5114_v7  ;;  %2723 = vmatprep.subr.mxu1 %v5135_v18  ;;  %5669 = vst [vmem:[#allocation33_spill] sm:$0xff] %v5183_v34  ;;  %5670 = vst [vmem:[#allocation34_spill] sm:$0xff] %v5186_v30  ;;  %v5189_v31 = vld [vmem:[#allocation14 + $0x70] sm:$0xff]  ;;  %v5192_v35 = vld [vmem:[#allocation14] sm:$0xff] }
 0x244   : > { %2655 = vmatpush1.msra.mxu0 %v5120_v12  ;;  %2724 = vmatpush1.msra.mxu1 %v5141_v10  ;;  %5671 = vst [vmem:[#allocation35_spill] sm:$0xff] %v5189_v31  ;;  %5672 = vst [vmem:[#allocation36_spill] sm:$0xff] %v5192_v35  ;;  %v5195_v28 = vld [vmem:[#allocation14 + $0x58] sm:$0xff]  ;;  %v2570_v62 = vld [vmem:[#allocation4] sm:$0xff] }
 0x245   : > { %2656 = vmatprep.subr.mxu0 %v5126_v14  ;;  %2725 = vmatprep.subr.mxu1 %v5147_v23  ;;  %5673 = vst [vmem:[#allocation37_spill] sm:$0xff] %v5195_v28  ;;  %v5198_v41 = vld [vmem:[#allocation17 + $0x1e8] sm:$0xff]  ;;  %v5202_v17 = vld [vmem:[#allocation17 + $0x1e0] sm:$0xff]  ;;  %v5205_v2 = vld [vmem:[#allocation14 + $0x50] sm:$0xff] }
 0x246   : > { %2657 = vmatpush1.msra.mxu0 %v5132_v40  ;;  %2726 = vmatpush1.msra.mxu1 %v5153_v25  ;;  %5674 = vst [vmem:[#allocation38_spill] sm:$0xff] %v5198_v41  ;;  %5675 = vst [vmem:[#allocation39_spill] sm:$0xff] %v5202_v17  ;;  %v5208_v1 = vld [vmem:[#allocation17 + $0x1c8] sm:$0xff] }
 0x247   : > { %2658 = vmatprep.subr.mxu0 %v5138_v9  ;;  %2727 = vmatprep.subr.mxu1 %v5159_v50  ;;  %5676 = vst [vmem:[#allocation40_spill] sm:$0xff] %v5205_v2  ;;  %5677 = vst [vmem:[#allocation41_spill] sm:$0xff] %v5208_v1 }
 0x248   : > { %2659 = vmatpush1.msra.mxu0 %v5144_v19  ;;  %2728 = vmatpush1.msra.mxu1 %v5165_v61 }
 0x249   : > { %2660 = vmatprep.subr.mxu0 %v5150_v24  ;;  %2729 = vmatprep.subr.mxu1 %v5171_v38 }
 0x24a   : > { %2661 = vmatpush1.msra.mxu0 %v5156_v27  ;;  %2730 = vmatpush1.msra.mxu1 %v5177_v21 }
 0x24b   : > { %2662 = vmatprep.subr.mxu0 %v5162_v52  ;;  %2731 = vmatprep.subr.mxu1 %v5183_v34  ;;  %v5214_v34 = vld [vmem:[#allocation17 + $0x1c0] sm:$0xff] }
 0x24c   : > { %2663 = vmatpush1.msra.mxu0 %v5168_v60  ;;  %2732 = vmatpush1.msra.mxu1 %v5189_v31  ;;  %5679 = vst [vmem:[#allocation43_spill] sm:$0xff] %v5214_v34  ;;  %v5219_v31 = vld [vmem:[#allocation17 + $0x1a8] sm:$0xff] }
 0x24d   : > { %2664 = vmatprep.subr.mxu0 %v5174_v29  ;;  %2733 = vmatprep.subr.mxu1 %v5195_v28  ;;  %5681 = vst [vmem:[#allocation45_spill] sm:$0xff] %v5219_v31  ;;  %v5225_v28 = vld [vmem:[#allocation17 + $0x1a0] sm:$0xff]  ;;  %v5228_v29 = vld [vmem:[#allocation14 + $0x10] sm:$0xff] }
 0x24e   : > { %2665 = vmatpush1.msra.mxu0 %v5180_v32  ;;  %v5211_v32 = vld [vmem:[#allocation14 + $0x38] sm:$0xff]  ;;  %2734 = vmatpush1.msra.mxu1 %v5205_v2  ;;  %5683 = vst [vmem:[#allocation47_spill] sm:$0xff] %v5225_v28  ;;  %5684 = vst [vmem:[#allocation48_spill] sm:$0xff] %v5228_v29  ;;  %v5237_v2 = vld [vmem:[#allocation17 + $0x180] sm:$0xff] }
 0x24f   : > { %2666 = vmatprep.subr.mxu0 %v5186_v30  ;;  %5678 = vst [vmem:[#allocation42_spill] sm:$0xff] %v5211_v32  ;;  %v5216_v30 = vld [vmem:[#allocation14 + $0x30] sm:$0xff]  ;;  %2735 = vmatprep.subr.mxu1 %v5211_v32  ;;  %5687 = vst [vmem:[#allocation51_spill] sm:$0xff] %v5237_v2 }
 0x250   : > { %2667 = vmatpush1.msra.mxu0 %v5192_v35  ;;  %5680 = vst [vmem:[#allocation44_spill] sm:$0xff] %v5216_v30  ;;  %v5222_v35 = vld [vmem:[#allocation14 + $0x18] sm:$0xff]  ;;  %2736 = vmatpush1.msra.mxu1 %v5216_v30  ;;  %v5244_v32 = vld [vmem:[#allocation17 + $0x1f0] sm:$0xff] }
 0x251   : > { %2701 = vmatmul.mubr.f32.vlgmr.msra.gmra.mxu0 %v2570_v62  ;;  %2878 = vmatprep.subr.mxu0 %v5198_v41  ;;  %5682 = vst [vmem:[#allocation46_spill] sm:$0xff] %v5222_v35  ;;  %v5231_v41 = vld [vmem:[#allocation17 + $0x188] sm:$0xff]  ;;  %5689 = vst [vmem:[#allocation53_spill] sm:$0xff] %v5244_v32  ;;  %v5250_v30 = vld [vmem:[#allocation17 + $0x1d8] sm:$0xff] }
 0x252   : > { %2879 = vmatpush1.msra.mxu0 %v5202_v17  ;;  %5685 = vst [vmem:[#allocation49_spill] sm:$0xff] %v5231_v41  ;;  %v5234_v17 = vld [vmem:[#allocation17 + $0x1f8] sm:$0xff]  ;;  %2737 = vmatprep.subr.mxu1 %v5222_v35  ;;  %5691 = vst [vmem:[#allocation55_spill] sm:$0xff] %v5250_v30  ;;  %v5358_v35 = vld [vmem:[#allocation17 + $0x28] sm:$0xff] }
 0x253   : > { %2880 = vmatprep.subr.mxu0 %v5208_v1  ;;  %5686 = vst [vmem:[#allocation50_spill] sm:$0xff] %v5234_v17  ;;  %v5241_v1 = vld [vmem:[#allocation17 + $0x168] sm:$0xff]  ;;  %2738 = vmatpush1.msra.mxu1 %v5228_v29  ;;  %v5258_v29 = vld [vmem:[#allocation17 + $0x140] sm:$0xff]  ;;  %5728 = vst [vmem:[#allocation91_spill] sm:$0xff] %v5358_v35 }
 0x254   : > { %2881 = vmatpush1.msra.mxu0 %v5214_v34  ;;  %5688 = vst [vmem:[#allocation52_spill] sm:$0xff] %v5241_v1  ;;  %v5247_v34 = vld [vmem:[#allocation17 + $0x160] sm:$0xff]  ;;  %2949 = vmatprep.subr.mxu1 %v5234_v17  ;;  %5694 = vst [vmem:[#allocation58_spill] sm:$0xff] %v5258_v29  ;;  %v5264_v17 = vld [vmem:[#allocation17 + $0x128] sm:$0xff] }
 0x255   : > { %2882 = vmatprep.subr.mxu0 %v5219_v31  ;;  %5690 = vst [vmem:[#allocation54_spill] sm:$0xff] %v5247_v34  ;;  %v5253_v31 = vld [vmem:[#allocation17 + $0x148] sm:$0xff]  ;;  %2772 = vmatmul.mubr.f32.vlgmr.msra.gmra.mxu1 %v2570_v62  ;;  %5696 = vst [vmem:[#allocation60_spill] sm:$0xff] %v5264_v17  ;;  %v5270_v62 = vld [vmem:[#allocation17 + $0x120] sm:$0xff] }
 0x256   : > { %2883 = vmatpush1.msra.mxu0 %v5225_v28  ;;  %5692 = vst [vmem:[#allocation56_spill] sm:$0xff] %v5253_v31  ;;  %v5255_v28 = vld [vmem:[#allocation17 + $0x1d0] sm:$0xff]  ;;  %2950 = vmatpush1.msra.mxu1 %v5244_v32  ;;  %5698 = vst [vmem:[#allocation62_spill] sm:$0xff] %v5270_v62  ;;  %v5276_v32 = vld [vmem:[#allocation17 + $0x108] sm:$0xff] }
 0x257   : > { %2884 = vmatprep.subr.mxu0 %v5231_v41  ;;  %5693 = vst [vmem:[#allocation57_spill] sm:$0xff] %v5255_v28  ;;  %v5261_v41 = vld [vmem:[#allocation17 + $0x1b8] sm:$0xff]  ;;  %2951 = vmatprep.subr.mxu1 %v5250_v30  ;;  %5700 = vst [vmem:[#allocation64_spill] sm:$0xff] %v5276_v32  ;;  %v5282_v30 = vld [vmem:[#allocation17 + $0x100] sm:$0xff] }
 0x258   : > { %2885 = vmatpush1.msra.mxu0 %v5237_v2  ;;  %5695 = vst [vmem:[#allocation59_spill] sm:$0xff] %v5261_v41  ;;  %v5267_v2 = vld [vmem:[#allocation17 + $0x1b0] sm:$0xff]  ;;  %2952 = vmatpush1.msra.mxu1 %v5255_v28  ;;  %5702 = vst [vmem:[#allocation66_spill] sm:$0xff] %v5282_v30  ;;  %v5288_v28 = vld [vmem:[#allocation17 + $0xe8] sm:$0xff] }
 0x259   : > { %2886 = vmatprep.subr.mxu0 %v5241_v1  ;;  %5697 = vst [vmem:[#allocation61_spill] sm:$0xff] %v5267_v2  ;;  %v5273_v1 = vld [vmem:[#allocation17 + $0x198] sm:$0xff]  ;;  %2953 = vmatprep.subr.mxu1 %v5261_v41  ;;  %5704 = vst [vmem:[#allocation68_spill] sm:$0xff] %v5288_v28  ;;  %v5294_v41 = vld [vmem:[#allocation17 + $0xe0] sm:$0xff] }
 0x25a   : > { %2887 = vmatpush1.msra.mxu0 %v5247_v34  ;;  %5699 = vst [vmem:[#allocation63_spill] sm:$0xff] %v5273_v1  ;;  %v5279_v34 = vld [vmem:[#allocation17 + $0x190] sm:$0xff]  ;;  %2954 = vmatpush1.msra.mxu1 %v5267_v2  ;;  %5706 = vst [vmem:[#allocation70_spill] sm:$0xff] %v5294_v41  ;;  %v5300_v2 = vld [vmem:[#allocation17 + $0xc8] sm:$0xff] }
 0x25b   : > { %2888 = vmatprep.subr.mxu0 %v5253_v31  ;;  %5701 = vst [vmem:[#allocation65_spill] sm:$0xff] %v5279_v34  ;;  %v5285_v31 = vld [vmem:[#allocation17 + $0x178] sm:$0xff]  ;;  %2955 = vmatprep.subr.mxu1 %v5273_v1  ;;  %5708 = vst [vmem:[#allocation72_spill] sm:$0xff] %v5300_v2  ;;  %v5306_v1 = vld [vmem:[#allocation17 + $0xc0] sm:$0xff] }
 0x25c   : > { %2889 = vmatpush1.msra.mxu0 %v5258_v29  ;;  %5703 = vst [vmem:[#allocation67_spill] sm:$0xff] %v5285_v31  ;;  %v5291_v29 = vld [vmem:[#allocation17 + $0x170] sm:$0xff]  ;;  %2956 = vmatpush1.msra.mxu1 %v5279_v34  ;;  %5710 = vst [vmem:[#allocation74_spill] sm:$0xff] %v5306_v1  ;;  %v5312_v34 = vld [vmem:[#allocation17 + $0xa8] sm:$0xff] }
 0x25d   : > { %2890 = vmatprep.subr.mxu0 %v5264_v17  ;;  %5705 = vst [vmem:[#allocation69_spill] sm:$0xff] %v5291_v29  ;;  %v5297_v17 = vld [vmem:[#allocation17 + $0x158] sm:$0xff]  ;;  %2957 = vmatprep.subr.mxu1 %v5285_v31  ;;  %5712 = vst [vmem:[#allocation76_spill] sm:$0xff] %v5312_v34  ;;  %v5318_v31 = vld [vmem:[#allocation17 + $0xa0] sm:$0xff] }
 0x25e   : > { %2891 = vmatpush1.msra.mxu0 %v5270_v62  ;;  %5707 = vst [vmem:[#allocation71_spill] sm:$0xff] %v5297_v17  ;;  %v5303_v62 = vld [vmem:[#allocation17 + $0x150] sm:$0xff]  ;;  %2958 = vmatpush1.msra.mxu1 %v5291_v29  ;;  %5714 = vst [vmem:[#allocation78_spill] sm:$0xff] %v5318_v31  ;;  %v5324_v29 = vld [vmem:[#allocation17 + $0x88] sm:$0xff] }
 0x25f   : > { %2892 = vmatprep.subr.mxu0 %v5276_v32  ;;  %5709 = vst [vmem:[#allocation73_spill] sm:$0xff] %v5303_v62  ;;  %v5309_v32 = vld [vmem:[#allocation17 + $0x138] sm:$0xff]  ;;  %2959 = vmatprep.subr.mxu1 %v5297_v17  ;;  %5716 = vst [vmem:[#allocation80_spill] sm:$0xff] %v5324_v29  ;;  %v5331_v17 = vld [vmem:[#allocation17 + $0x110] sm:$0xff] }
 0x260   : > { %2893 = vmatpush1.msra.mxu0 %v5282_v30  ;;  %5711 = vst [vmem:[#allocation75_spill] sm:$0xff] %v5309_v32  ;;  %v5315_v30 = vld [vmem:[#allocation17 + $0x130] sm:$0xff]  ;;  %2960 = vmatpush1.msra.mxu1 %v5303_v62  ;;  %5718 = vst [vmem:[#allocation82_spill] sm:$0xff] %v5331_v17  ;;  %v5337_v62 = vld [vmem:[#allocation17 + $0xf8] sm:$0xff] }
 0x261   : > { %2894 = vmatprep.subr.mxu0 %v5288_v28  ;;  %5713 = vst [vmem:[#allocation77_spill] sm:$0xff] %v5315_v30  ;;  %v5321_v28 = vld [vmem:[#allocation17 + $0x118] sm:$0xff]  ;;  %2961 = vmatprep.subr.mxu1 %v5309_v32  ;;  %5720 = vst [vmem:[#allocation84_spill] sm:$0xff] %v5337_v62  ;;  %v5722_v32 = vmov 0.0  }
 0x262   : > { %2895 = vmatpush1.msra.mxu0 %v5294_v41  ;;  %5715 = vst [vmem:[#allocation79_spill] sm:$0xff] %v5321_v28  ;;  %v5328_v41 = vld [vmem:[#allocation17 + $0x80] sm:$0xff]  ;;  %2962 = vmatpush1.msra.mxu1 %v5315_v30  ;;  %v5346_v30 = vld [vmem:[#allocation17 + $0x48] sm:$0xff] }
 0x263   : > { %2896 = vmatprep.subr.mxu0 %v5300_v2  ;;  %5717 = vst [vmem:[#allocation81_spill] sm:$0xff] %v5328_v41  ;;  %v5334_v2 = vld [vmem:[#allocation17 + $0x68] sm:$0xff]  ;;  %2963 = vmatprep.subr.mxu1 %v5321_v28  ;;  %5724 = vst [vmem:[#allocation87_spill] sm:$0xff] %v5346_v30  ;;  %v5352_v28 = vld [vmem:[#allocation17 + $0x40] sm:$0xff] }
 0x264   : > { %2897 = vmatpush1.msra.mxu0 %v5306_v1  ;;  %5719 = vst [vmem:[#allocation83_spill] sm:$0xff] %v5334_v2  ;;  %v5340_v1 = vld [vmem:[#allocation17 + $0x60] sm:$0xff]  ;;  %2942 = vmatprep.mubr.f32.mxu0 %v5722_v32  ;;  %5726 = vst [vmem:[#allocation89_spill] sm:$0xff] %v5352_v28 }
 0x265   : > { %2898 = vmatprep.subr.mxu0 %v5312_v34  ;;  %5721 = vst [vmem:[#allocation85_spill] sm:$0xff] %v5340_v1  ;;  %v5343_v34 = vld [vmem:[#allocation17 + $0xf0] sm:$0xff]  ;;  %2964 = vmatpush1.msra.mxu1 %v5331_v17  ;;  %v5364_v17 = vld [vmem:[#allocation17 + $0x20] sm:$0xff] }
 0x266   : > { %2899 = vmatpush1.msra.mxu0 %v5318_v31  ;;  %5723 = vst [vmem:[#allocation86_spill] sm:$0xff] %v5343_v34  ;;  %v5349_v31 = vld [vmem:[#allocation17 + $0xd8] sm:$0xff]  ;;  %2965 = vmatprep.subr.mxu1 %v5337_v62  ;;  %5729 = vst [vmem:[#allocation92_spill] sm:$0xff] %v5364_v17  ;;  %v5370_v62 = vld [vmem:[#allocation17 + $0x8] sm:$0xff] }
 0x267   : > { %2900 = vmatprep.subr.mxu0 %v5324_v29  ;;  %5725 = vst [vmem:[#allocation88_spill] sm:$0xff] %v5349_v31  ;;  %v5355_v29 = vld [vmem:[#allocation17 + $0xd0] sm:$0xff]  ;;  %2966 = vmatpush1.msra.mxu1 %v5343_v34  ;;  %5731 = vst [vmem:[#allocation94_spill] sm:$0xff] %v5370_v62  ;;  %v5376_v34 = vld [vmem:[#allocation17] sm:$0xff] }
 0x268   : > { %2901 = vmatpush1.msra.mxu0 %v5328_v41  ;;  %5727 = vst [vmem:[#allocation90_spill] sm:$0xff] %v5355_v29  ;;  %v5361_v41 = vld [vmem:[#allocation17 + $0xb8] sm:$0xff]  ;;  %2967 = vmatprep.subr.mxu1 %v5349_v31  ;;  %5732 = vst [vmem:[#allocation95_spill] sm:$0xff] %v5376_v34  ;;  %v2812_v31 = vld [vmem:[#allocation6] sm:$0xff] }
 0x269   : > { %2902 = vmatprep.subr.mxu0 %v5334_v2  ;;  %v5367_v2 = vld [vmem:[#allocation17 + $0xb0] sm:$0xff]  ;;  %2968 = vmatpush1.msra.mxu1 %v5355_v29 }
 0x26a   : > { %2903 = vmatpush1.msra.mxu0 %v5340_v1  ;;  %5730 = vst [vmem:[#allocation93_spill] sm:$0xff] %v5367_v2  ;;  %v5373_v1 = vld [vmem:[#allocation17 + $0x98] sm:$0xff]  ;;  %2969 = vmatprep.subr.mxu1 %v5361_v41  ;;  %v5387_v29 = vld [vmem:[#allocation17 + $0x70] sm:$0xff] }
 0x26b   : > { %2904 = vmatprep.subr.mxu0 %v5346_v30  ;;  %v5379_v30 = vld [vmem:[#allocation17 + $0x90] sm:$0xff]  ;;  %2970 = vmatpush1.msra.mxu1 %v5367_v2  ;;  %v5397_v2 = vld [vmem:[#allocation17 + $0x38] sm:$0xff] }
 0x26c   : > { %2905 = vmatpush1.msra.mxu0 %v5352_v28  ;;  %v5383_v28 = vld [vmem:[#allocation17 + $0x78] sm:$0xff]  ;;  %2971 = vmatprep.subr.mxu1 %v5373_v1 }
 0x26d   : > { %2906 = vmatprep.subr.mxu0 %v5358_v35  ;;  %5733 = vst [vmem:[#allocation96_spill] sm:$0xff] %v5383_v28  ;;  %2972 = vmatpush1.msra.mxu1 %v5379_v30  ;;  %v5391_v35 = vld [vmem:[#allocation17 + $0x58] sm:$0xff] }
 0x26e   : > { %2907 = vmatpush1.msra.mxu0 %v5364_v17  ;;  %2973 = vmatprep.subr.mxu1 %v5383_v28  ;;  %v5394_v17 = vld [vmem:[#allocation17 + $0x50] sm:$0xff] }
 0x26f   : > { %2908 = vmatprep.subr.mxu0 %v5370_v62  ;;  %2974 = vmatpush1.msra.mxu1 %v5387_v29  ;;  %v5401_v62 = vld [vmem:[#allocation17 + $0x30] sm:$0xff] }
 0x270   : > { %2909 = vmatpush1.msra.mxu0 %v5376_v34  ;;  %3013 = vmatprep.mubr.f32.mxu1 %v5722_v32  ;;  %v5405_v34 = vld [vmem:[#allocation17 + $0x18] sm:$0xff]  ;;  %v5409_v28 = vld [vmem:[#allocation17 + $0x10] sm:$0xff] }
 0x271   : > { %2943 = vmatmul.mubr.f32.vlgmr.msra.gmra.mxu0 %v2812_v31  ;;  %2975 = vmatprep.subr.mxu1 %v5391_v35 }
 0x272   : > { %3156 = vmatprep.subr.mxu0 %v5024_v36  ;;  %2976 = vmatpush1.msra.mxu1 %v5394_v17  ;;  %v5734_v36 = vld [vmem:[#allocation31_spill] sm:$0xff] }
 0x273   : > { %3157 = vmatpush1.msra.mxu0 %v5026_v59  ;;  %2977 = vmatprep.subr.mxu1 %v5397_v2  ;;  %v5735_v59 = vld [vmem:[#allocation33_spill] sm:$0xff] }
 0x274   : > { %3158 = vmatprep.subr.mxu0 %v5028_v37  ;;  %2978 = vmatpush1.msra.mxu1 %v5401_v62  ;;  %v5736_v37 = vld [vmem:[#allocation32_spill] sm:$0xff] }
 0x275   : > { %3159 = vmatpush1.msra.mxu0 %v5031_v45  ;;  %2979 = vmatprep.subr.mxu1 %v5405_v34  ;;  %v5737_v45 = vld [vmem:[#allocation35_spill] sm:$0xff] }
 0x276   : > { %3160 = vmatprep.subr.mxu0 %v5035_v42  ;;  %2980 = vmatpush1.msra.mxu1 %v5409_v28  ;;  %v5738_v42 = vld [vmem:[#allocation34_spill] sm:$0xff] }
 0x277   : > { %3161 = vmatpush1.msra.mxu0 %v5039_v15  ;;  %3014 = vmatmul.mubr.f32.vlgmr.msra.gmra.mxu1 %v2812_v31  ;;  %v5739_v15 = vld [vmem:[#allocation37_spill] sm:$0xff] }
 0x278   : > { %3227 = vmatprep.subr.mxu1 %v5047_v26  ;;  %3162 = vmatprep.subr.mxu0 %v5042_v51  ;;  %v5740_v51 = vld [vmem:[#allocation36_spill] sm:$0xff]  ;;  %v5742_v26 = vld [vmem:[#allocation42_spill] sm:$0xff] }
 0x279   : > { %3228 = vmatpush1.msra.mxu1 %v5053_v49  ;;  %3163 = vmatpush1.msra.mxu0 %v5045_v43  ;;  %v5741_v43 = vld [vmem:[#allocation40_spill] sm:$0xff]  ;;  %v5744_v49 = vld [vmem:[#allocation38_spill] sm:$0xff] }
 0x27a   : > { %3229 = vmatprep.subr.mxu1 %v5059_v48  ;;  %3164 = vmatprep.subr.mxu0 %v5050_v39  ;;  %v5743_v39 = vld [vmem:[#allocation44_spill] sm:$0xff] }
 0x27b   : > { %3230 = vmatpush1.msra.mxu1 %v5061_v46  ;;  %3165 = vmatpush1.msra.mxu0 %v5056_v47  ;;  %v5745_v47 = vld [vmem:[#allocation46_spill] sm:$0xff]  ;;  %v5746_v48 = vld [vmem:[#allocation48_spill] sm:$0xff] }
 0x27c   : > { %3231 = vmatprep.subr.mxu1 %v5067_v20  ;;  %3166 = vmatprep.subr.mxu0 %v5064_v63  ;;  %v5747_v46 = vld [vmem:[#allocation50_spill] sm:$0xff] }
 0x27d   : > { %3232 = vmatpush1.msra.mxu1 %v5073_v0  ;;  %3167 = vmatpush1.msra.mxu0 %v5070_v22  ;;  %v2566_v63 = vld [vmem:[%s2565_s1] sm:$0xff]  ;;  %v2567_v22 = vld [vmem:[%s2565_s1 + $0x8] sm:$0xff] }
 0x27e   : > { %3233 = vmatprep.subr.mxu1 %v5075_v54  ;;  %3168 = vmatprep.subr.mxu0 %v5078_v55 }
 0x27f   : > { %3234 = vmatpush1.msra.mxu1 %v5081_v56  ;;  %3169 = vmatpush1.msra.mxu0 %v5084_v57 }
 0x280   : > { %3235 = vmatprep.subr.mxu1 %v5087_v58  ;;  %3170 = vmatprep.subr.mxu0 %v5090_v33  ;;  %v2569_v33 = vld [vmem:[%s2565_s1 + $0x18] sm:$0xff] }
 0x281   : > { %3236 = vmatpush1.msra.mxu1 %v5093_v44  ;;  %3171 = vmatpush1.msra.mxu0 %v5096_v53 }
 0x282   : > { %3237 = vmatprep.subr.mxu1 %v5099_v3  ;;  %3172 = vmatprep.subr.mxu0 %v5102_v4  ;;  %v2568_v3 = vld [vmem:[%s2565_s1 + $0x10] sm:$0xff] }
 0x283   : > { %3238 = vmatpush1.msra.mxu1 %v5105_v5  ;;  %3173 = vmatpush1.msra.mxu0 %v5108_v6 }
 0x284   : > { %3239 = vmatprep.subr.mxu1 %v5111_v8  ;;  %3174 = vmatprep.subr.mxu0 %v5114_v7 }
 0x285   : > { %3240 = vmatpush1.msra.mxu1 %v5117_v11  ;;  %3175 = vmatpush1.msra.mxu0 %v5120_v12  ;;  %v2808_v12 = vld [vmem:[%s2807_s15] sm:$0xff] }
 0x286   : > { %3241 = vmatprep.subr.mxu1 %v5123_v13  ;;  %3176 = vmatprep.subr.mxu0 %v5126_v14 }
 0x287   : > { %3242 = vmatpush1.msra.mxu1 %v5129_v16  ;;  %3177 = vmatpush1.msra.mxu0 %v5132_v40  ;;  %v2809_v40 = vld [vmem:[%s2807_s15 + $0x8] sm:$0xff] }
 0x288   : > { %3243 = vmatprep.subr.mxu1 %v5135_v18  ;;  %3178 = vmatprep.subr.mxu0 %v5138_v9 }
 0x289   : > { %3244 = vmatpush1.msra.mxu1 %v5141_v10  ;;  %3179 = vmatpush1.msra.mxu0 %v5144_v19  ;;  %v2571_v10 = vld [vmem:[#allocation5] sm:$0xff] }
 0x28a   : > { %3245 = vmatprep.subr.mxu1 %v5147_v23  ;;  %3180 = vmatprep.subr.mxu0 %v5150_v24 }
 0x28b   : > { %3246 = vmatpush1.msra.mxu1 %v5153_v25  ;;  %3181 = vmatpush1.msra.mxu0 %v5156_v27 }
 0x28c   : > { %3247 = vmatprep.subr.mxu1 %v5159_v50  ;;  %3182 = vmatprep.subr.mxu0 %v5162_v52 }
 0x28d   : > { %3248 = vmatpush1.msra.mxu1 %v5165_v61  ;;  %3183 = vmatpush1.msra.mxu0 %v5168_v60 }
 0x28e   : > { %3249 = vmatprep.subr.mxu1 %v5171_v38  ;;  %3184 = vmatprep.subr.mxu0 %v5734_v36  ;;  %v2810_v36 = vld [vmem:[%s2807_s15 + $0x10] sm:$0xff] }
 0x28f   : > { %3250 = vmatpush1.msra.mxu1 %v5177_v21  ;;  %3185 = vmatpush1.msra.mxu0 %v5736_v37  ;;  %v2811_v21 = vld [vmem:[%s2807_s15 + $0x18] sm:$0xff] }
 0x290   : > { %3251 = vmatprep.subr.mxu1 %v5735_v59  ;;  %3186 = vmatprep.subr.mxu0 %v5738_v42 }
 0x291   : > { %3252 = vmatpush1.msra.mxu1 %v5737_v45  ;;  %3187 = vmatpush1.msra.mxu0 %v5740_v51 }
 0x292   : > { %3253 = vmatprep.subr.mxu1 %v5739_v15  ;;  %3220 = vmatprep.mubr.f32.mxu0 %v5722_v32 }
 0x293   : > { %3254 = vmatpush1.msra.mxu1 %v5741_v43  ;;  %3291 = vmatprep.mubr.f32.mxu1 %v5722_v32 }
 0x294   : > { %3255 = vmatprep.subr.mxu1 %v5742_v26  ;;  %3398 = vmatprep.subr.mxu0 %v5744_v49 }
 0x295   : > { %3256 = vmatpush1.msra.mxu1 %v5743_v39 }
 0x296   : > { %3257 = vmatprep.subr.mxu1 %v5745_v47  ;;  %v5748_v47 = vld [vmem:[#allocation28_spill] sm:$0xff] }
 0x297   : > { %3258 = vmatpush1.msra.mxu1 %v5746_v48 }
 0x298   : > { %3469 = vmatprep.subr.mxu1 %v5747_v46  ;;  %v5749_v46 = vld [vmem:[#allocation39_spill] sm:$0xff] }
 0x311   : > { %v2702_v20 = vpop.f32.mrf.mxu0 }
 0x312   : > { %v2778_v0 = vadd.f32 %v2702_v20, %v2566_v63  ;;  %v5750_v63 = vld [vmem:[#allocation53_spill] sm:$0xff] }
 0x313   : > { %v2704_v54 = vpop.f32.mrf.mxu0  ;;  %v5751_v20 = vld [vmem:[#allocation41_spill] sm:$0xff] }
 0x314   : > { %v3923_v55 = vmul.f32 -1.442695, %v2778_v0  ;;  %v2779_v56 = vadd.f32 %v2704_v54, %v2567_v22  ;;  %v5752_v22 = vld [vmem:[#allocation55_spill] sm:$0xff]  ;;  %v5754_v54 = vld [vmem:[#allocation57_spill] sm:$0xff] }
 0x315   : > { %v2773_v58 = vpop.f32.mrf.mxu1  ;;  %v5753_v0 = vld [vmem:[#allocation43_spill] sm:$0xff] }
 0x316   : > { %4403 = vpow2.f32 %v3923_v55  ;;  %v3924_v57 = vmul.f32 -1.442695, %v2779_v56  ;;  %v2780_v5 = vadd.f32 %v2773_v58, %v2568_v3  ;;  %v5755_v55 = vld [vmem:[#allocation45_spill] sm:$0xff]  ;;  %v5756_v56 = vld [vmem:[#allocation59_spill] sm:$0xff] }
 0x317   : > { %v2775_v44 = vpop.f32.mrf.mxu1  ;;  %v5758_v58 = vld [vmem:[#allocation61_spill] sm:$0xff]  ;;  %v5761_v3 = vld [vmem:[#allocation51_spill] sm:$0xff] }
 0x318   : > { %4405 = vpow2.f32 %v3924_v57  ;;  %v2781_v53 = vadd.f32 %v2775_v44, %v2569_v33  ;;  %v5757_v57 = vld [vmem:[#allocation47_spill] sm:$0xff]  ;;  %v5759_v33 = vld [vmem:[#allocation49_spill] sm:$0xff] }
 0x31a   : > { %v3925_v4 = vmul.f32 -1.442695, %v2781_v53  ;;  %v5760_v53 = vld [vmem:[#allocation63_spill] sm:$0xff] }
 0x31c   : > { %4407 = vpow2.f32 %v3925_v4 }
 0x31d   : > { %4409 = vtanh.f32 %v2780_v5  ;;  %v5762_v5 = vld [vmem:[#allocation65_spill] sm:$0xff] }
 0x323   : > { %v4404_v6 = vpop.eup %4403 }
 0x324   : > { %v2785_v8 = vadd.f32 1.0, %v4404_v6  ;;  %v5763_v6 = vld [vmem:[#allocation52_spill] sm:$0xff] }
 0x325   : > { %v4406_v7 = vpop.eup %4405 }
 0x326   : > { %4411 = vrcp.f32 %v2785_v8  ;;  %v2791_v11 = vadd.f32 1.0, %v4406_v7  ;;  %v2813_v7 = vld [vmem:[#allocation7] sm:$0xff] }
 0x328   : > { %4413 = vrcp.f32 %v2791_v11  ;;  %v5764_v11 = vld [vmem:[#allocation67_spill] sm:$0xff] }
 0x329   : > { %v4408_v13 = vpop.eup %4407 }
 0x32a   : > { %v4410_v14 = vpop.eup %4409  ;;  %v2798_v19 = vadd.f32 1.0, %v4408_v13  ;;  %v5766_v13 = vld [vmem:[#allocation69_spill] sm:$0xff] }
 0x331   : > { %v2944_v16 = vpop.f32.mrf.mxu0 }
 0x332   : > { %v3020_v18 = vadd.f32 %v2944_v16, %v2808_v12  ;;  %v5765_v12 = vld [vmem:[#allocation54_spill] sm:$0xff] }
 0x333   : > { %v4412_v9 = vpop.eup %4411  ;;  %v2946_v23 = vpop.f32.mrf.mxu0 }
 0x334   : > { %v2802_v24 = vmul.f32 %v4412_v9, %v4410_v14  ;;  %v3927_v25 = vmul.f32 -1.442695, %v3020_v18  ;;  %v3021_v27 = vadd.f32 %v2946_v23, %v2809_v40  ;;  %v5767_v14 = vld [vmem:[#allocation56_spill] sm:$0xff]  ;;  %v5768_v18 = vld [vmem:[#allocation71_spill] sm:$0xff]  ;;  %v5769_v9 = vld [vmem:[#allocation58_spill] sm:$0xff] }
 0x335   : > { %v4414_v50 = vpop.eup %4413  ;;  %v5770_v23 = vld [vmem:[#allocation73_spill] sm:$0xff] }
 0x336   : > { %v2801_v52 = vmul.f32 %v4414_v50, %v2571_v10  ;;  %4415 = vpow2.f32 %v3927_v25  ;;  %v3928_v61 = vmul.f32 -1.442695, %v3021_v27  ;;  %v5772_v25 = vld [vmem:[#allocation75_spill] sm:$0xff]  ;;  %v5773_v27 = vld [vmem:[#allocation62_spill] sm:$0xff] }
 0x337   : > { %4417 = vrcp.f32 %v2798_v19  ;;  %v3015_v38 = vpop.f32.mrf.mxu1 }
 0x338   : > { %v5483_v60 = vadd.f32 %v2802_v24, %v2801_v52  ;;  %4419 = vpow2.f32 %v3928_v61  ;;  %v3022_v37 = vadd.f32 %v3015_v38, %v2810_v36  ;;  %v5771_v24 = vld [vmem:[#allocation60_spill] sm:$0xff]  ;;  %v5774_v52 = vld [vmem:[#allocation77_spill] sm:$0xff]  ;;  %v5776_v38 = vld [vmem:[#allocation79_spill] sm:$0xff] }
 0x339   : > { %v3017_v31 = vpop.f32.mrf.mxu1  ;;  %v5775_v61 = vld [vmem:[#allocation64_spill] sm:$0xff] }
 0x33a   : > { %4421 = vtanh.f32 %v5483_v60  ;;  %v3023_v59 = vadd.f32 %v3017_v31, %v2811_v21  ;;  %v5777_v21 = vld [vmem:[#allocation66_spill] sm:$0xff]  ;;  %v5779_v36 = vld [vmem:[#allocation68_spill] sm:$0xff] }
 0x33b   : > { %4423 = vtanh.f32 %v3022_v37  ;;  %v5778_v31 = vld [vmem:[#allocation82_spill] sm:$0xff] }
 0x33c   : > { %v3929_v45 = vmul.f32 -1.442695, %v3023_v59  ;;  %v5780_v59 = vld [vmem:[#allocation84_spill] sm:$0xff]  ;;  %v5781_v37 = vld [vmem:[#allocation70_spill] sm:$0xff] }
 0x33e   : > { %4425 = vpow2.f32 %v3929_v45  ;;  %v5782_v45 = vld [vmem:[#allocation86_spill] sm:$0xff] }
 0x343   : > { %v4416_v42 = vpop.eup %4415 }
 0x344   : > { %v4418_v15 = vpop.eup %4417  ;;  %v3027_v51 = vadd.f32 1.0, %v4416_v42  ;;  %v5783_v42 = vld [vmem:[#allocation72_spill] sm:$0xff] }
 0x345   : > { %v4420_v43 = vpop.eup %4419 }
 0x346   : > { %4427 = vrcp.f32 %v3027_v51  ;;  %v3033_v26 = vadd.f32 1.0, %v4420_v43  ;;  %v5785_v51 = vld [vmem:[#allocation74_spill] sm:$0xff] }
 0x347   : > { %v4422_v39 = vpop.eup %4421  ;;  %v5786_v43 = vld [vmem:[#allocation90_spill] sm:$0xff] }
 0x348   : > { %4429 = vrcp.f32 %v3033_v26  ;;  %v2805_v49 = vmul.f32 %v4422_v39, %v4418_v15  ;;  %v4424_v44 = vpop.eup %4423  ;;  %v5784_v15 = vld [vmem:[#allocation88_spill] sm:$0xff]  ;;  %v5788_v39 = vld [vmem:[#allocation78_spill] sm:$0xff] }
 0x349   : > { %v5787_v26 = vld [vmem:[#allocation76_spill] sm:$0xff] }
 0x34a   : > { %v3060_v48 = vmul.f32 %v5748_v47, %v2805_v49  ;;  %3221 = vmatmul.mubr.f32.vlgmr.msra.gmra.mxu0 %v2805_v49  ;;  %3292 = vmatmul.mubr.f32.vlgmr.msra.gmra.mxu1 %v2805_v49  ;;  %v5789_v49 = vld [vmem:[#allocation93_spill] sm:$0xff] }
 0x34b   : > { %3399 = vmatpush1.msra.mxu0 %v5749_v46  ;;  %3470 = vmatpush1.msra.mxu1 %v5750_v63  ;;  %v4426_v4 = vpop.eup %4425  ;;  %v5791_v46 = vld [vmem:[#allocation81_spill] sm:$0xff]  ;;  %v5792_v63 = vld [vmem:[#allocation83_spill] sm:$0xff] }
 0x34c   : > { %3061 = vadd.xlane.f32.xlu0 %v3060_v48  ;;  %3400 = vmatprep.subr.mxu0 %v5751_v20  ;;  %v3040_v40 = vadd.f32 1.0, %v4426_v4  ;;  %v5790_v48 = vld [vmem:[#allocation80_spill] sm:$0xff]  ;;  %v3087_v4 = vld [vmem:[%s3085_s19 + $0x8] sm:$0xff] }
 0x34d   : > { %3471 = vmatprep.subr.mxu1 %v5752_v22  ;;  %3401 = vmatpush1.msra.mxu0 %v5753_v0  ;;  %v5793_v20 = vld [vmem:[#allocation96_spill] sm:$0xff]  ;;  %v5794_v22 = vld [vmem:[#allocation85_spill] sm:$0xff] }
 0x34e   : > { %3472 = vmatpush1.msra.mxu1 %v5754_v54  ;;  %3402 = vmatprep.subr.mxu0 %v5755_v55  ;;  %4431 = vrcp.f32 %v3040_v40  ;;  %v5796_v0 = vld [vmem:[#allocation89_spill] sm:$0xff]  ;;  %v5798_v55 = vld [vmem:[#allocation92_spill] sm:$0xff] }
 0x34f   : > { %3473 = vmatprep.subr.mxu1 %v5756_v56  ;;  %3403 = vmatpush1.msra.mxu0 %v5757_v57  ;;  %v5801_v57 = vld [vmem:[#allocation29_spill] sm:$0xff]  ;;  %v3088_v40 = vld [vmem:[%s3085_s19 + $0x10] sm:$0xff] }
 0x350   : > { %3474 = vmatpush1.msra.mxu1 %v5758_v58  ;;  %3404 = vmatprep.subr.mxu0 %v5759_v33  ;;  %v5802_v58 = vld [vmem:[#allocation30_spill] sm:$0xff] }
 0x351   : > { %3475 = vmatprep.subr.mxu1 %v5760_v53  ;;  %3405 = vmatpush1.msra.mxu0 %v5761_v3 }
 0x352   : > { %3476 = vmatpush1.msra.mxu1 %v5762_v5  ;;  %3406 = vmatprep.subr.mxu0 %v5763_v6 }
 0x353   : > { %v4428_v8 = vpop.eup %4427  ;;  %3477 = vmatprep.subr.mxu1 %v5764_v11  ;;  %3407 = vmatpush1.msra.mxu0 %v5765_v12 }
 0x354   : > { %3478 = vmatpush1.msra.mxu1 %v5766_v13  ;;  %3408 = vmatprep.subr.mxu0 %v5767_v14  ;;  %v3044_v19 = vmul.f32 %v4428_v8, %v4424_v44  ;;  %v3076_v44 = vld [vmem:[#allocation20] sm:$0xff]  ;;  %v3089_v13 = vld [vmem:[%s3085_s19 + $0x18] sm:$0xff] }
 0x355   : > { %v4430_v16 = vpop.eup %4429  ;;  %3479 = vmatprep.subr.mxu1 %v5768_v18  ;;  %3409 = vmatpush1.msra.mxu0 %v5769_v9 }
 0x356   : > { %v3043_v10 = vmul.f32 %v4430_v16, %v2813_v7  ;;  %3480 = vmatpush1.msra.mxu1 %v5770_v23  ;;  %3410 = vmatprep.subr.mxu0 %v5771_v24 }
 0x357   : > { %3481 = vmatprep.subr.mxu1 %v5772_v25  ;;  %3411 = vmatpush1.msra.mxu0 %v5773_v27  ;;  %v3328_v25 = vld [vmem:[%s3327_s20] sm:$0xff] }
 0x358   : > { %v5512_v50 = vadd.f32 %v3044_v19, %v3043_v10  ;;  %3482 = vmatpush1.msra.mxu1 %v5774_v52  ;;  %3412 = vmatprep.subr.mxu0 %v5775_v61  ;;  %v3329_v61 = vld [vmem:[%s3327_s20 + $0x8] sm:$0xff] }
 0x359   : > { %3483 = vmatprep.subr.mxu1 %v5776_v38  ;;  %3413 = vmatpush1.msra.mxu0 %v5777_v21 }
 0x35a   : > { %3484 = vmatpush1.msra.mxu1 %v5778_v31  ;;  %3414 = vmatprep.subr.mxu0 %v5779_v36  ;;  %4433 = vtanh.f32 %v5512_v50 }
 0x35b   : > { %3485 = vmatprep.subr.mxu1 %v5780_v59  ;;  %3415 = vmatpush1.msra.mxu0 %v5781_v37  ;;  %v4432_v54 = vpop.eup %4431 }
 0x35c   : > { %3486 = vmatpush1.msra.mxu1 %v5782_v45  ;;  %3416 = vmatprep.subr.mxu0 %v5783_v42 }
 0x35d   : > { %3487 = vmatprep.subr.mxu1 %v5784_v15  ;;  %3417 = vmatpush1.msra.mxu0 %v5785_v51 }
 0x35e   : > { %3488 = vmatpush1.msra.mxu1 %v5786_v43  ;;  %3418 = vmatprep.subr.mxu0 %v5787_v26 }
 0x35f   : > { %3489 = vmatprep.subr.mxu1 %v5361_v41  ;;  %3419 = vmatpush1.msra.mxu0 %v5788_v39  ;;  %v5795_v41 = vld [vmem:[#allocation87_spill] sm:$0xff] }
 0x360   : > { %3490 = vmatpush1.msra.mxu1 %v5789_v49  ;;  %3420 = vmatprep.subr.mxu0 %v5790_v48  ;;  %v3331_v49 = vld [vmem:[%s3327_s20 + $0x18] sm:$0xff] }
 0x361   : > { %3491 = vmatprep.subr.mxu1 %v5373_v1  ;;  %3421 = vmatpush1.msra.mxu0 %v5791_v46  ;;  %v5797_v1 = vld [vmem:[#allocation91_spill] sm:$0xff] }
 0x362   : > { %3492 = vmatpush1.msra.mxu1 %v5379_v30  ;;  %3422 = vmatprep.subr.mxu0 %v5792_v63  ;;  %v3330_v63 = vld [vmem:[%s3327_s20 + $0x10] sm:$0xff] }
 0x363   : > { %3493 = vmatprep.subr.mxu1 %v5793_v20  ;;  %3423 = vmatpush1.msra.mxu0 %v5794_v22 }
 0x364   : > { %3494 = vmatpush1.msra.mxu1 %v5387_v29  ;;  %3424 = vmatprep.subr.mxu0 %v5795_v41  ;;  %v5799_v29 = vld [vmem:[#allocation94_spill] sm:$0xff] }
 0x365   : > { %3495 = vmatprep.subr.mxu1 %v5391_v35  ;;  %3425 = vmatpush1.msra.mxu0 %v5796_v0  ;;  %v5800_v35 = vld [vmem:[#allocation95_spill] sm:$0xff] }
 0x366   : > { %3496 = vmatpush1.msra.mxu1 %v5394_v17  ;;  %3426 = vmatprep.subr.mxu0 %v5797_v1 }
 0x367   : > { %v4434_v30 = vpop.eup %4433  ;;  %3497 = vmatprep.subr.mxu1 %v5397_v2  ;;  %3427 = vmatpush1.msra.mxu0 %v5798_v55  ;;  %v3052_v2 = vstv %s3919_s16 }
 0x368   : > { %v3047_v56 = vmul.f32 %v4434_v30, %v4432_v54  ;;  %3498 = vmatpush1.msra.mxu1 %v5401_v62  ;;  %3428 = vmatprep.subr.mxu0 %v5799_v29  ;;  %v3072_v62 = vld [vmem:[#allocation19] sm:$0xff]  ;;  %vm3053_vm0 = vcmp.eq.s32.totalorder %v5802_v58, %v3052_v2 }
 0x369   : > { %3499 = vmatprep.subr.mxu1 %v5405_v34  ;;  %3429 = vmatpush1.msra.mxu0 %v5800_v35 }
 0x36a   : > { %v3069_v17 = vmul.f32 %v5801_v57, %v3047_v56  ;;  %3462 = vmatprep.mubr.f32.mxu0 %v5722_v32  ;;  %3500 = vmatpush1.msra.mxu1 %v5409_v28 }
 0x36b   : > { %3533 = vmatprep.mubr.f32.mxu1 %v5722_v32  ;;  %3463 = vmatmul.mubr.f32.vlgmr.msra.gmra.mxu0 %v3047_v56  ;;  %v3086_v32 = vld [vmem:[%s3085_s19] sm:$0xff] }
 0x36c   : > { %3070 = vadd.xlane.f32.xlu0 %v3069_v17  ;;  %3534 = vmatmul.mubr.f32.vlgmr.msra.gmra.mxu1 %v3047_v56 }
 0x3d5   : > { %v3062_v34 = vpop.xlane.xlu0 %3061 }
 0x3d6   : > { %v3073_v33 = vsel %vm3053_vm0, %v3062_v34, %v3072_v62 }
 0x3d7   : > { %3075 = vst.msk [vmem:[#allocation19] sm:$0xff] %vm3074_vm1, %v3073_v33 }
 0x3f5   : > { %v3071_v53 = vpop.xlane.xlu0 %3070 }
 0x3f6   : > { %v3077_v28 = vsel %vm3053_vm0, %v3071_v53, %v3076_v44 }
 0x3f7   : > { %3078 = vst.msk [vmem:[#allocation20] sm:$0xff] %vm3074_vm1, %v3077_v28 }
 0x40a   : > { %v3222_v3 = vpop.f32.mrf.mxu0  ;;  %v3293_v11 = vpop.f32.mrf.mxu1 }
 0x40b   : > { %v3298_v5 = vadd.f32 %v3222_v3, %v3086_v32  ;;  %v3300_v10 = vadd.f32 %v3293_v11, %v3088_v40 }
 0x40c   : > { %v3224_v6 = vpop.f32.mrf.mxu0  ;;  %v3295_v14 = vpop.f32.mrf.mxu1 }
 0x40d   : > { %v3935_v8 = vmul.f32 -1.442695, %v3298_v5  ;;  %v3299_v7 = vadd.f32 %v3224_v6, %v3087_v4  ;;  %v3301_v16 = vadd.f32 %v3295_v14, %v3089_v13  ;;  %v3572_v4 = vstv %s3079_s21  ;;  %v3580_v6 = vld [vmem:[#allocation19] sm:$0xff] }
 0x40e   : > { %vm3573_vm2 = vcmp.eq.s32.totalorder %v5802_v58, %v3572_v4 }
 0x40f   : > { %4435 = vpow2.f32 %v3935_v8  ;;  %v3936_v12 = vmul.f32 -1.442695, %v3299_v7  ;;  %v3937_v18 = vmul.f32 -1.442695, %v3301_v16  ;;  %v3583_v7 = vld [vmem:[#allocation20] sm:$0xff] }
 0x411   : > { %4437 = vpow2.f32 %v3936_v12 }
 0x412   : > { %4439 = vpow2.f32 %v3937_v18 }
 0x41c   : > { %v4436_v9 = vpop.eup %4435 }
 0x41d   : > { %v3305_v19 = vadd.f32 1.0, %v4436_v9 }
 0x41e   : > { %v4438_v23 = vpop.eup %4437 }
 0x41f   : > { %4441 = vrcp.f32 %v3305_v19  ;;  %v3311_v24 = vadd.f32 1.0, %v4438_v23  ;;  %v4440_v27 = vpop.eup %4439 }
 0x420   : > { %4443 = vtanh.f32 %v3300_v10  ;;  %v3318_v51 = vadd.f32 1.0, %v4440_v27 }
 0x421   : > { %4445 = vrcp.f32 %v3311_v24 }
 0x42b   : > { %v3464_v52 = vpop.f32.mrf.mxu0 }
 0x42c   : > { %v4442_v38 = vpop.eup %4441  ;;  %v3540_v21 = vadd.f32 %v3464_v52, %v3328_v25  ;;  %v3535_v43 = vpop.f32.mrf.mxu1 }
 0x42d   : > { %v4444_v31 = vpop.eup %4443  ;;  %v3466_v36 = vpop.f32.mrf.mxu0  ;;  %v3542_v41 = vadd.f32 %v3535_v43, %v3330_v63 }
 0x42e   : > { %v4446_v59 = vpop.eup %4445  ;;  %v3939_v37 = vmul.f32 -1.442695, %v3540_v21  ;;  %v3541_v45 = vadd.f32 %v3466_v36, %v3329_v61  ;;  %v3322_v42 = vmul.f32 %v4444_v31, %v4442_v38  ;;  %v3537_v48 = vpop.f32.mrf.mxu1 }
 0x42f   : > { %v3321_v15 = vmul.f32 %v4446_v59, %v5483_v60  ;;  %v3543_v46 = vadd.f32 %v3537_v48, %v3331_v49 }
 0x430   : > { %4447 = vpow2.f32 %v3939_v37  ;;  %v3940_v26 = vmul.f32 -1.442695, %v3541_v45 }
 0x431   : > { %v3323_v39 = vadd.f32 %v3322_v42, %v3321_v15  ;;  %v3941_v20 = vmul.f32 -1.442695, %v3543_v46 }
 0x432   : > { %4449 = vpow2.f32 %v3940_v26 }
 0x433   : > { %4451 = vrcp.f32 %v3318_v51  ;;  %3569 = vst [vmem:[#allocation5] sm:$0xff] %v3323_v39 }
 0x434   : > { %4453 = vtanh.f32 %v3323_v39 }
 0x435   : > { %4455 = vpow2.f32 %v3941_v20 }
 0x43d   : > { %v4448_v22 = vpop.eup %4447 }
 0x43e   : > { %v3547_v0 = vadd.f32 1.0, %v4448_v22 }
 0x43f   : > { %v4450_v54 = vpop.eup %4449 }
 0x440   : > { %v4452_v60 = vpop.eup %4451  ;;  %4457 = vrcp.f32 %v3547_v0  ;;  %v3553_v1 = vadd.f32 1.0, %v4450_v54 }
 0x441   : > { %v4454_v30 = vpop.eup %4453  ;;  %4459 = vtanh.f32 %v3542_v41 }
 0x442   : > { %4461 = vrcp.f32 %v3553_v1  ;;  %v3325_v55 = vmul.f32 %v4454_v30, %v4452_v60  ;;  %v4456_v29 = vpop.eup %4455 }
 0x443   : > { %v3560_v62 = vadd.f32 1.0, %v4456_v29 }
 0x444   : > { %v3574_v56 = vmul.f32 %v5748_v47, %v3325_v55  ;;  %3568 = vst [vmem:[#allocation4] sm:$0xff] %v3325_v55 }
 0x445   : > { %4463 = vrcp.f32 %v3560_v62 }
 0x446   : > { %3575 = vadd.xlane.f32.xlu1 %v3574_v56 }
 0x44d   : > { %v4458_v35 = vpop.eup %4457 }
 0x44e   : > { %v4460_v17 = vpop.eup %4459 }
 0x44f   : > { %v4462_v2 = vpop.eup %4461  ;;  %v3564_v34 = vmul.f32 %v4460_v17, %v4458_v35 }
 0x450   : > { %v3563_v33 = vmul.f32 %v4462_v2, %v5512_v50 }
 0x452   : > { %v3565_v44 = vadd.f32 %v3564_v34, %v3563_v33  ;;  %v4464_v53 = vpop.eup %4463 }
 0x454   : > { %4465 = vtanh.f32 %v3565_v44  ;;  %3571 = vst [vmem:[#allocation7] sm:$0xff] %v3565_v44 }
 0x461   : > { %v4466_v28 = vpop.eup %4465 }
 0x462   : > { %v3567_v32 = vmul.f32 %v4466_v28, %v4464_v53 }
 0x464   : > { %3570 = vst [vmem:[#allocation6] sm:$0xff] %v3567_v32  ;;  %v3577_v3 = vmul.f32 %v5801_v57, %v3567_v32 }
 0x466   : > { %3578 = vadd.xlane.f32.xlu1 %v3577_v3 }
 0x4cf   : > { %v3576_v5 = vpop.xlane.xlu1 %3575 }
 0x4d0   : > { %v3581_v8 = vsel %vm3573_vm2, %v3576_v5, %v3580_v6 }
 0x4d1   : > { %3582 = vst.msk [vmem:[#allocation19] sm:$0xff] %vm3074_vm1, %v3581_v8 }
 0x4ed   :  { %2557 = sbr.rel (!%p2555_p2) target bundleno = 560 (0x230), region = 107 }
 0x4ef   : > { %v3579_v50 = vpop.xlane.xlu1 %3578 }
 0x4f0   : > { %v3584_v11 = vsel %vm3573_vm2, %v3579_v50, %v3583_v7 }
 0x4f1   : > { %3585 = vst.msk [vmem:[#allocation20] sm:$0xff] %vm3074_vm1, %v3584_v11 }
 0x4f2   :  { %4598 = shalt.err (!%p4595_p7)
}
 0x4f3   :  { %3595 = dma.vmem_to_hbm [thread:$0]  %s3593_s25, 128, %s5591_s10, [#allocation10]  }
 0x4f4   :  { %s4607_s12 = scalar_lea.vmem %s3603_s26, 128  ;;  %p4612_p9 = scmp.lt.s32.totalorder %s3603_s26, %s3603_s26 }
 0x4f5   :  { %p4608_p8 = scmp.ne.s32.totalorder %s3603_s26, %s4607_s12  ;;  %p4613_p10 = scmp.lt.s32.totalorder %s4607_s12, %s4607_s12 }
 0x4f7   :  { %p4614_p11 = por %p4613_p10, %p4612_p9 }
 0x4f9   :  { %p4615_p12 = pnand %p4614_p11, %p4608_p8 }
 0x4fb   :  { %4618 = shalt.err (!%p4615_p12)
}
 0x4fc   :  { %3605 = dma.vmem_to_hbm [thread:$0]  %s3603_s26, 128, %s5592_s11, [#allocation21]  }
 0x4fd   :  { %4639 = dma.done.wait [#allocation10], 128  }
 0x4fe   :  { %4640 = vsyncadd [#allocation10], 4294967168 }
 0x4ff   :  { %4641 = dma.done.wait [#allocation21], 128  }
 0x500   :  { %4642 = vsyncadd [#allocation21], 4294967168 }
 0x501   :  { %3612 = vsyncpa [#allocation9], 1 }
 0x502   :  { %3613 = vsyncpa [#allocation12], 1 }
 0x503   :  { %3614 = vsyncpa [#allocation15], 1 }
 0x504   :  { %3615 = vsyncpa [#allocation18], 1 }
 0x505   :  { %3616 = vsyncpa [#allocation10], 1 }
 0x506   :  { %3617 = vsyncpa [#allocation21], 1 }

</bundles_post_ra>
